<compile_context>
chip_gen: v6e
topology: v6e:2x2x1
jax: 0.10.0
libtpu: 0.0.40
codegen_flags: <defaults>
</compile_context>

<pallas_src>
import functools

import jax
import jax.numpy as jnp
from jax.experimental import pallas as pl
from jax.experimental.pallas import tpu as pltpu

SUBLANE = 8     # f32 sublane tile
LANE = 128      # lane tile


# ----------------------------------------------------------------------------
# Kernel.  Ref order:
#   x, w_ih0, w_hh0, b0, (w_fused_l, b_l) for l=1..L-1, w_out, b_out
#   | out, h_n, c_n
# ----------------------------------------------------------------------------
def _fused_lstm_kernel(*refs, seq_len, batch_pad, hidden_dim, num_layers):
    T, B, H, L = seq_len, batch_pad, hidden_dim, num_layers
    H4 = 4 * H
    f32 = jnp.float32

    x_ref = refs[0]                         # (T*B, D) time-major, batch padded
    w0_ref, whh0_ref, b0_ref = refs[1], refs[2], refs[3]
    wf_refs = refs[4:4 + 2 * (L - 1)]       # (w_fused, bias) per layer >= 1
    wout_ref = refs[4 + 2 * (L - 1)]        # (H, O_pad)
    bout_ref = refs[5 + 2 * (L - 1)]        # (1, O_pad)
    out_ref = refs[6 + 2 * (L - 1)]         # (T*B, O_pad) time-major
    hn_ref = refs[7 + 2 * (L - 1)]          # (L, B, H)
    cn_ref = refs[8 + 2 * (L - 1)]          # (L, B, H)

    # Layer-0 input projection hoisted out of the recurrence: one matmul for the
    # whole sequence, then leading-axis per-step indexing (whole-tile reads).
    gx0 = jnp.dot(x_ref[...], w0_ref[...], preferred_element_type=f32) + b0_ref[...]
    gx0 = gx0.reshape(T, B, H4)

    def cell(gates, c_prev):
        # Full-vreg sigmoid via tanh identity (single EUP pass, no divide).
        sig = 0.5 * jnp.tanh(0.5 * gates) + 0.5
        i_g = sig[:, 0 * H:1 * H]
        f_g = sig[:, 1 * H:2 * H]
        o_g = sig[:, 2 * H:3 * H]           # gate columns pre-ordered [i, f, o, g]
        g_g = jnp.tanh(gates[:, 3 * H:4 * H])
        c_new = f_g * c_prev + i_g * g_g
        h_new = o_g * jnp.tanh(c_new)
        return h_new, c_new

    h = [jnp.zeros((B, H), f32) for _ in range(L)]
    c = [jnp.zeros((B, H), f32) for _ in range(L)]
    y_latest = [None] * L                   # most recent output of each layer
    ys_top = [None] * T                     # last-layer output per timestep

    # Wavefront over diagonals d = t + l: cells on one diagonal are mutually
    # independent, so the MXU/EUP pipelines can overlap them.
    for d in range(T + L - 1):
        y_in = list(y_latest)               # outputs produced on diagonal d-1
        for l in range(L):
            t = d - l
            if t < 0 or t >= T:
                continue
            if l == 0:
                gates = gx0[t] + jnp.dot(h[0], whh0_ref[...],
                                         preferred_element_type=f32)
            else:
                w_f = wf_refs[2 * (l - 1)][...]         # (2H, 4H)
                b_f = wf_refs[2 * (l - 1) + 1][...]     # (1, 4H)
                lhs = jnp.concatenate([y_in[l - 1], h[l]], axis=1)   # (B, 2H)
                gates = jnp.dot(lhs, w_f, preferred_element_type=f32) + b_f
            h[l], c[l] = cell(gates, c[l])
            y_latest[l] = h[l]
            if l == L - 1:
                ys_top[t] = h[l]

    # Final states written once per layer (not per timestep).
    for l in range(L):
        hn_ref[l] = h[l]
        cn_ref[l] = c[l]

    # Fused Linear head on the resident last-layer activations; lane-dense store.
    y_tm = jnp.concatenate(ys_top, axis=0)                       # (T*B, H)
    out_ref[...] = (jnp.dot(y_tm, wout_ref[...], preferred_element_type=f32)
                    + bout_ref[...])


def fused_lstm_forward(x_tm, kparams, *, seq_len, batch_pad, hidden_dim,
                       out_pad, num_layers):
    """x_tm: (T*B_pad, D) time-major flattened, batch-padded input."""
    T, B, H, L = seq_len, batch_pad, hidden_dim, num_layers
    kernel = functools.partial(_fused_lstm_kernel, seq_len=T, batch_pad=B,
                               hidden_dim=H, num_layers=L)
    n_inputs = 1 + 3 + 2 * (L - 1) + 2
    vmem = pl.BlockSpec(memory_space=pltpu.MemorySpace.VMEM)
    return pl.pallas_call(
        kernel,
        out_shape=(
            jax.ShapeDtypeStruct((T * B, out_pad), jnp.float32),   # out (time-major)
            jax.ShapeDtypeStruct((L, B, H), jnp.float32),          # h_n (padded B)
            jax.ShapeDtypeStruct((L, B, H), jnp.float32),          # c_n (padded B)
        ),
        in_specs=[vmem] * n_inputs,
        out_specs=(vmem, vmem, vmem),
    )(x_tm, *kparams)


# ----------------------------------------------------------------------------
# Parameter init (PyTorch layout) and one-time kernel-ready preparation.
# ----------------------------------------------------------------------------
def init_params(key, input_dim, hidden_dim, output_dim, num_layers):
    params = {"lstm": [], "linear": {}}
    k = 1.0 / jnp.sqrt(hidden_dim)
    for layer in range(num_layers):
        d_in = input_dim if layer == 0 else hidden_dim
        key, k1, k2, k3, k4 = jax.random.split(key, 5)
        params["lstm"].append({
            "w_ih": jax.random.uniform(k1, (4 * hidden_dim, d_in), jnp.float32, -k, k),
            "w_hh": jax.random.uniform(k2, (4 * hidden_dim, hidden_dim), jnp.float32, -k, k),
            "b_ih": jax.random.uniform(k3, (4 * hidden_dim,), jnp.float32, -k, k),
            "b_hh": jax.random.uniform(k4, (4 * hidden_dim,), jnp.float32, -k, k),
        })
    key, k1, k2 = jax.random.split(key, 3)
    params["linear"]["w"] = jax.random.uniform(k1, (output_dim, hidden_dim),
                                               jnp.float32, -k, k)
    params["linear"]["b"] = jax.random.uniform(k2, (output_dim,), jnp.float32, -k, k)
    return params


def prepare_kernel_params(params, hidden_dim, output_dim, out_pad):
    """Hoisted once: transpose, reorder gates [i,f,g,o]->[i,f,o,g], sum biases,
    fuse W_ih/W_hh for layers >= 1, lane-pad the head weights."""
    H = hidden_dim

    def reorder(w):  # split the 4H axis into PyTorch gate blocks, swap g/o
        i_b, f_b, g_b, o_b = jnp.split(w, 4, axis=0)
        return jnp.concatenate([i_b, f_b, o_b, g_b], axis=0)

    flat = []
    # Layer 0: separate input / recurrent weights (input projection is hoisted).
    p0 = params["lstm"][0]
    flat.append(jnp.transpose(reorder(p0["w_ih"])))                    # (D, 4H)
    flat.append(jnp.transpose(reorder(p0["w_hh"])))                    # (H, 4H)
    flat.append(reorder(p0["b_ih"] + p0["b_hh"]).reshape(1, 4 * H))    # (1, 4H)
    # Layers >= 1: fused [W_ih^T ; W_hh^T] -> (2H, 4H).
    for p in params["lstm"][1:]:
        w_f = jnp.concatenate([jnp.transpose(reorder(p["w_ih"])),
                               jnp.transpose(reorder(p["w_hh"]))], axis=0)
        flat.append(w_f)                                               # (2H, 4H)
        flat.append(reorder(p["b_ih"] + p["b_hh"]).reshape(1, 4 * H))  # (1, 4H)
    # Head, lane-padded to out_pad for an unmasked output store.
    w_out = jnp.transpose(params["linear"]["w"])                       # (H, O)
    w_out = jnp.pad(w_out, ((0, 0), (0, out_pad - output_dim)))
    b_out = jnp.pad(params["linear"]["b"], (0, out_pad - output_dim)).reshape(1, out_pad)
    flat += [w_out, b_out]
    return tuple(flat)


# ----------------------------------------------------------------------------
# Model forward (matches PyTorch Model.forward with hidden=None, eval mode).
# ----------------------------------------------------------------------------
def model_forward(kparams, x, *, hidden_dim, output_dim, num_layers, out_pad):
    """x: (B, T, D) batch_first. Returns (out (B*T, O), (h_n, c_n))."""
    B, T, D = x.shape
    B_pad = max(SUBLANE, ((B + SUBLANE - 1) // SUBLANE) * SUBLANE)
    # Time-major layout with the batch zero-padded to a full sublane tile.
    x_tm = jnp.transpose(x, (1, 0, 2))                         # (T, B, D)
    x_tm = jnp.pad(x_tm, ((0, 0), (0, B_pad - B), (0, 0)))     # (T, B_pad, D)
    x_flat = x_tm.reshape(T * B_pad, D)
    out_tm, h_n, c_n = fused_lstm_forward(
        x_flat, kparams, seq_len=T, batch_pad=B_pad, hidden_dim=hidden_dim,
        out_pad=out_pad, num_layers=num_layers)
    out = (out_tm.reshape(T, B_pad, out_pad)[:, :B, :output_dim]
           .transpose(1, 0, 2).reshape(B * T, output_dim))
    return out, (h_n[:, :B, :], c_n[:, :B, :])


# ----------------------------------------------------------------------------
# Pure-JAX reference (PyTorch gate order [i,f,g,o]) for a correctness check.
# ----------------------------------------------------------------------------
def reference_forward(params, x, hidden_dim, num_layers):
    B, T, _ = x.shape
    h = [jnp.zeros((B, hidden_dim), jnp.float32) for _ in range(num_layers)]
    c = [jnp.zeros((B, hidden_dim), jnp.float32) for _ in range(num_layers)]
    outs = []
    for t in range(T):
        inp = x[:, t, :]
        for l in range(num_layers):
            p = params["lstm"][l]
            gates = (inp @ p["w_ih"].T + h[l] @ p["w_hh"].T
                     + p["b_ih"] + p["b_hh"])
            i_g, f_g, g_g, o_g = jnp.split(gates, 4, axis=-1)
            i_g = jax.nn.sigmoid(i_g)
            f_g = jax.nn.sigmoid(f_g)
            g_g = jnp.tanh(g_g)
            o_g = jax.nn.sigmoid(o_g)
            c[l] = f_g * c[l] + i_g * g_g
            h[l] = o_g * jnp.tanh(c[l])
            inp = h[l]
        outs.append(h[-1])
    lstm_out = jnp.stack(outs, axis=1).reshape(-1, hidden_dim)       # (B*T, H)
    out = lstm_out @ params["linear"]["w"].T + params["linear"]["b"]
    return out, (jnp.stack(h, 0), jnp.stack(c, 0))


if __name__ == "__main__":
    # Small shapes consistent with the module's forward semantics.
    batch, seq, input_dim = 2, 8, 49
    hidden_dim, output_dim, num_layers = 32, 4, 3
    out_pad = ((output_dim + LANE - 1) // LANE) * LANE               # 128

    key = jax.random.PRNGKey(0)
    key, kx, kp = jax.random.split(key, 3)
    x = jax.random.normal(kx, (batch, seq, input_dim), jnp.float32)
    params = init_params(kp, input_dim, hidden_dim, output_dim, num_layers)
    kparams = prepare_kernel_params(params, hidden_dim, output_dim, out_pad)

    fwd = jax.jit(functools.partial(model_forward, hidden_dim=hidden_dim,
                                    output_dim=output_dim, num_layers=num_layers,
                                    out_pad=out_pad))
    out, (h_n, c_n) = fwd(kparams, x)
    jax.block_until_ready((out, h_n, c_n))

    assert out.shape == (batch * seq, output_dim)
    assert h_n.shape == (num_layers, batch, hidden_dim)
    assert c_n.shape == (num_layers, batch, hidden_dim)

    # Numerical check against the pure-JAX reference.
    out_ref, (h_ref, c_ref) = reference_forward(params, x, hidden_dim, num_layers)
    assert jnp.allclose(out, out_ref, rtol=1e-3, atol=1e-3)
    assert jnp.allclose(h_n, h_ref, rtol=1e-3, atol=1e-3)
    assert jnp.allclose(c_n, c_ref, rtol=1e-3, atol=1e-3)

    print("KERNEL_OK")
</pallas_src>

<mosaic_0001>
module attributes {stable_mosaic.version = 11 : i64} {
  func.func @_fused_lstm_kernel(%arg0: memref<64x49xf32, #tpu.memory_space<vmem>>, %arg1: memref<49x128xf32, #tpu.memory_space<vmem>>, %arg2: memref<32x128xf32, #tpu.memory_space<vmem>>, %arg3: memref<1x128xf32, #tpu.memory_space<vmem>>, %arg4: memref<64x128xf32, #tpu.memory_space<vmem>>, %arg5: memref<1x128xf32, #tpu.memory_space<vmem>>, %arg6: memref<64x128xf32, #tpu.memory_space<vmem>>, %arg7: memref<1x128xf32, #tpu.memory_space<vmem>>, %arg8: memref<32x128xf32, #tpu.memory_space<vmem>>, %arg9: memref<1x128xf32, #tpu.memory_space<vmem>>, %arg10: memref<64x128xf32, #tpu.memory_space<vmem>>, %arg11: memref<3x8x32xf32, #tpu.memory_space<vmem>>, %arg12: memref<3x8x32xf32, #tpu.memory_space<vmem>>) attributes {dimension_semantics = [], scalar_prefetch = 0 : i64, scratch_operands = 0 : i64, tpu.core_type = #tpu.core_type<tc>} {
    %c0 = arith.constant 0 : index
    %c0_0 = arith.constant 0 : index
    %0 = vector.load %arg0[%c0, %c0_0] : memref<64x49xf32, #tpu.memory_space<vmem>>, vector<64x49xf32>
    %c0_1 = arith.constant 0 : index
    %c0_2 = arith.constant 0 : index
    %1 = vector.load %arg1[%c0_1, %c0_2] : memref<49x128xf32, #tpu.memory_space<vmem>>, vector<49x128xf32>
    %cst = arith.constant dense<0.000000e+00> : vector<64x128xf32>
    %2 = tpu.matmul %0, %1, %cst {dimension_numbers = #tpu.dot_dimension_numbers<[1], [0], [0], [1], [0, 0, 1, 1], [], []>} : vector<64x49xf32>, vector<49x128xf32>, vector<64x128xf32> -> vector<64x128xf32>
    %c0_3 = arith.constant 0 : index
    %c0_4 = arith.constant 0 : index
    %3 = vector.load %arg3[%c0_3, %c0_4] : memref<1x128xf32, #tpu.memory_space<vmem>>, vector<1x128xf32>
    %4 = vector.broadcast %3 : vector<1x128xf32> to vector<64x128xf32>
    %5 = arith.addf %2, %4 : vector<64x128xf32>
    %6 = vector.shape_cast %5 : vector<64x128xf32> to vector<8x8x128xf32>
    %cst_5 = arith.constant 0.000000e+00 : f32
    %7 = vector.broadcast %cst_5 : f32 to vector<8x32xf32>
    %cst_6 = arith.constant 0.000000e+00 : f32
    %8 = vector.broadcast %cst_6 : f32 to vector<8x32xf32>
    %cst_7 = arith.constant 0.000000e+00 : f32
    %9 = vector.broadcast %cst_7 : f32 to vector<8x32xf32>
    %cst_8 = arith.constant 0.000000e+00 : f32
    %10 = vector.broadcast %cst_8 : f32 to vector<8x32xf32>
    %cst_9 = arith.constant 0.000000e+00 : f32
    %11 = vector.broadcast %cst_9 : f32 to vector<8x32xf32>
    %cst_10 = arith.constant 0.000000e+00 : f32
    %12 = vector.broadcast %cst_10 : f32 to vector<8x32xf32>
    %13 = vector.extract_strided_slice %6 {offsets = [0, 0, 0], sizes = [1, 8, 128], strides = [1, 1, 1]} : vector<8x8x128xf32> to vector<1x8x128xf32>
    %14 = vector.shape_cast %13 : vector<1x8x128xf32> to vector<8x128xf32>
    %c0_11 = arith.constant 0 : index
    %c0_12 = arith.constant 0 : index
    %15 = vector.load %arg2[%c0_11, %c0_12] : memref<32x128xf32, #tpu.memory_space<vmem>>, vector<32x128xf32>
    %cst_13 = arith.constant dense<0.000000e+00> : vector<8x128xf32>
    %16 = tpu.matmul %7, %15, %cst_13 {dimension_numbers = #tpu.dot_dimension_numbers<[1], [0], [0], [1], [0, 0, 1, 1], [], []>} : vector<8x32xf32>, vector<32x128xf32>, vector<8x128xf32> -> vector<8x128xf32>
    %17 = arith.addf %14, %16 : vector<8x128xf32>
    %cst_14 = arith.constant 5.000000e-01 : f32
    %18 = vector.broadcast %cst_14 : f32 to vector<8x128xf32>
    %19 = arith.mulf %18, %17 : vector<8x128xf32>
    %20 = math.tanh %19 : vector<8x128xf32>
    %cst_15 = arith.constant 5.000000e-01 : f32
    %21 = vector.broadcast %cst_15 : f32 to vector<8x128xf32>
    %22 = arith.mulf %21, %20 : vector<8x128xf32>
    %cst_16 = arith.constant 5.000000e-01 : f32
    %23 = vector.broadcast %cst_16 : f32 to vector<8x128xf32>
    %24 = arith.addf %22, %23 : vector<8x128xf32>
    %25 = vector.extract_strided_slice %24 {offsets = [0, 0], sizes = [8, 32], strides = [1, 1]} : vector<8x128xf32> to vector<8x32xf32>
    %26 = vector.extract_strided_slice %24 {offsets = [0, 32], sizes = [8, 32], strides = [1, 1]} : vector<8x128xf32> to vector<8x32xf32>
    %27 = vector.extract_strided_slice %24 {offsets = [0, 64], sizes = [8, 32], strides = [1, 1]} : vector<8x128xf32> to vector<8x32xf32>
    %28 = vector.extract_strided_slice %17 {offsets = [0, 96], sizes = [8, 32], strides = [1, 1]} : vector<8x128xf32> to vector<8x32xf32>
    %29 = math.tanh %28 : vector<8x32xf32>
    %30 = arith.mulf %26, %10 : vector<8x32xf32>
    %31 = arith.mulf %25, %29 : vector<8x32xf32>
    %32 = arith.addf %30, %31 : vector<8x32xf32>
    %33 = math.tanh %32 : vector<8x32xf32>
    %34 = arith.mulf %27, %33 : vector<8x32xf32>
    %35 = vector.extract_strided_slice %6 {offsets = [1, 0, 0], sizes = [1, 8, 128], strides = [1, 1, 1]} : vector<8x8x128xf32> to vector<1x8x128xf32>
    %36 = vector.shape_cast %35 : vector<1x8x128xf32> to vector<8x128xf32>
    %c0_17 = arith.constant 0 : index
    %c0_18 = arith.constant 0 : index
    %37 = vector.load %arg2[%c0_17, %c0_18] : memref<32x128xf32, #tpu.memory_space<vmem>>, vector<32x128xf32>
    %cst_19 = arith.constant dense<0.000000e+00> : vector<8x128xf32>
    %38 = tpu.matmul %34, %37, %cst_19 {dimension_numbers = #tpu.dot_dimension_numbers<[1], [0], [0], [1], [0, 0, 1, 1], [], []>} : vector<8x32xf32>, vector<32x128xf32>, vector<8x128xf32> -> vector<8x128xf32>
    %39 = arith.addf %36, %38 : vector<8x128xf32>
    %cst_20 = arith.constant 5.000000e-01 : f32
    %40 = vector.broadcast %cst_20 : f32 to vector<8x128xf32>
    %41 = arith.mulf %40, %39 : vector<8x128xf32>
    %42 = math.tanh %41 : vector<8x128xf32>
    %cst_21 = arith.constant 5.000000e-01 : f32
    %43 = vector.broadcast %cst_21 : f32 to vector<8x128xf32>
    %44 = arith.mulf %43, %42 : vector<8x128xf32>
    %cst_22 = arith.constant 5.000000e-01 : f32
    %45 = vector.broadcast %cst_22 : f32 to vector<8x128xf32>
    %46 = arith.addf %44, %45 : vector<8x128xf32>
    %47 = vector.extract_strided_slice %46 {offsets = [0, 0], sizes = [8, 32], strides = [1, 1]} : vector<8x128xf32> to vector<8x32xf32>
    %48 = vector.extract_strided_slice %46 {offsets = [0, 32], sizes = [8, 32], strides = [1, 1]} : vector<8x128xf32> to vector<8x32xf32>
    %49 = vector.extract_strided_slice %46 {offsets = [0, 64], sizes = [8, 32], strides = [1, 1]} : vector<8x128xf32> to vector<8x32xf32>
    %50 = vector.extract_strided_slice %39 {offsets = [0, 96], sizes = [8, 32], strides = [1, 1]} : vector<8x128xf32> to vector<8x32xf32>
    %51 = math.tanh %50 : vector<8x32xf32>
    %52 = arith.mulf %48, %32 : vector<8x32xf32>
    %53 = arith.mulf %47, %51 : vector<8x32xf32>
    %54 = arith.addf %52, %53 : vector<8x32xf32>
    %55 = math.tanh %54 : vector<8x32xf32>
    %56 = arith.mulf %49, %55 : vector<8x32xf32>
    %c0_23 = arith.constant 0 : index
    %c0_24 = arith.constant 0 : index
    %57 = vector.load %arg4[%c0_23, %c0_24] : memref<64x128xf32, #tpu.memory_space<vmem>>, vector<64x128xf32>
    %c0_25 = arith.constant 0 : index
    %c0_26 = arith.constant 0 : index
    %58 = vector.load %arg5[%c0_25, %c0_26] : memref<1x128xf32, #tpu.memory_space<vmem>>, vector<1x128xf32>
    %59 = tpu.concatenate %34, %8 in 1 : vector<8x32xf32>, vector<8x32xf32> -> vector<8x64xf32>
    %cst_27 = arith.constant dense<0.000000e+00> : vector<8x128xf32>
    %60 = tpu.matmul %59, %57, %cst_27 {dimension_numbers = #tpu.dot_dimension_numbers<[1], [0], [0], [1], [0, 0, 1, 1], [], []>} : vector<8x64xf32>, vector<64x128xf32>, vector<8x128xf32> -> vector<8x128xf32>
    %61 = vector.broadcast %58 : vector<1x128xf32> to vector<8x128xf32>
    %62 = arith.addf %60, %61 : vector<8x128xf32>
    %cst_28 = arith.constant 5.000000e-01 : f32
    %63 = vector.broadcast %cst_28 : f32 to vector<8x128xf32>
    %64 = arith.mulf %63, %62 : vector<8x128xf32>
    %65 = math.tanh %64 : vector<8x128xf32>
    %cst_29 = arith.constant 5.000000e-01 : f32
    %66 = vector.broadcast %cst_29 : f32 to vector<8x128xf32>
    %67 = arith.mulf %66, %65 : vector<8x128xf32>
    %cst_30 = arith.constant 5.000000e-01 : f32
    %68 = vector.broadcast %cst_30 : f32 to vector<8x128xf32>
    %69 = arith.addf %67, %68 : vector<8x128xf32>
    %70 = vector.extract_strided_slice %69 {offsets = [0, 0], sizes = [8, 32], strides = [1, 1]} : vector<8x128xf32> to vector<8x32xf32>
    %71 = vector.extract_strided_slice %69 {offsets = [0, 32], sizes = [8, 32], strides = [1, 1]} : vector<8x128xf32> to vector<8x32xf32>
    %72 = vector.extract_strided_slice %69 {offsets = [0, 64], sizes = [8, 32], strides = [1, 1]} : vector<8x128xf32> to vector<8x32xf32>
    %73 = vector.extract_strided_slice %62 {offsets = [0, 96], sizes = [8, 32], strides = [1, 1]} : vector<8x128xf32> to vector<8x32xf32>
    %74 = math.tanh %73 : vector<8x32xf32>
    %75 = arith.mulf %71, %11 : vector<8x32xf32>
    %76 = arith.mulf %70, %74 : vector<8x32xf32>
    %77 = arith.addf %75, %76 : vector<8x32xf32>
    %78 = math.tanh %77 : vector<8x32xf32>
    %79 = arith.mulf %72, %78 : vector<8x32xf32>
    %80 = vector.extract_strided_slice %6 {offsets = [2, 0, 0], sizes = [1, 8, 128], strides = [1, 1, 1]} : vector<8x8x128xf32> to vector<1x8x128xf32>
    %81 = vector.shape_cast %80 : vector<1x8x128xf32> to vector<8x128xf32>
    %c0_31 = arith.constant 0 : index
    %c0_32 = arith.constant 0 : index
    %82 = vector.load %arg2[%c0_31, %c0_32] : memref<32x128xf32, #tpu.memory_space<vmem>>, vector<32x128xf32>
    %cst_33 = arith.constant dense<0.000000e+00> : vector<8x128xf32>
    %83 = tpu.matmul %56, %82, %cst_33 {dimension_numbers = #tpu.dot_dimension_numbers<[1], [0], [0], [1], [0, 0, 1, 1], [], []>} : vector<8x32xf32>, vector<32x128xf32>, vector<8x128xf32> -> vector<8x128xf32>
    %84 = arith.addf %81, %83 : vector<8x128xf32>
    %cst_34 = arith.constant 5.000000e-01 : f32
    %85 = vector.broadcast %cst_34 : f32 to vector<8x128xf32>
    %86 = arith.mulf %85, %84 : vector<8x128xf32>
    %87 = math.tanh %86 : vector<8x128xf32>
    %cst_35 = arith.constant 5.000000e-01 : f32
    %88 = vector.broadcast %cst_35 : f32 to vector<8x128xf32>
    %89 = arith.mulf %88, %87 : vector<8x128xf32>
    %cst_36 = arith.constant 5.000000e-01 : f32
    %90 = vector.broadcast %cst_36 : f32 to vector<8x128xf32>
    %91 = arith.addf %89, %90 : vector<8x128xf32>
    %92 = vector.extract_strided_slice %91 {offsets = [0, 0], sizes = [8, 32], strides = [1, 1]} : vector<8x128xf32> to vector<8x32xf32>
    %93 = vector.extract_strided_slice %91 {offsets = [0, 32], sizes = [8, 32], strides = [1, 1]} : vector<8x128xf32> to vector<8x32xf32>
    %94 = vector.extract_strided_slice %91 {offsets = [0, 64], sizes = [8, 32], strides = [1, 1]} : vector<8x128xf32> to vector<8x32xf32>
    %95 = vector.extract_strided_slice %84 {offsets = [0, 96], sizes = [8, 32], strides = [1, 1]} : vector<8x128xf32> to vector<8x32xf32>
    %96 = math.tanh %95 : vector<8x32xf32>
    %97 = arith.mulf %93, %54 : vector<8x32xf32>
    %98 = arith.mulf %92, %96 : vector<8x32xf32>
    %99 = arith.addf %97, %98 : vector<8x32xf32>
    %100 = math.tanh %99 : vector<8x32xf32>
    %101 = arith.mulf %94, %100 : vector<8x32xf32>
    %c0_37 = arith.constant 0 : index
    %c0_38 = arith.constant 0 : index
    %102 = vector.load %arg4[%c0_37, %c0_38] : memref<64x128xf32, #tpu.memory_space<vmem>>, vector<64x128xf32>
    %c0_39 = arith.constant 0 : index
    %c0_40 = arith.constant 0 : index
    %103 = vector.load %arg5[%c0_39, %c0_40] : memref<1x128xf32, #tpu.memory_space<vmem>>, vector<1x128xf32>
    %104 = tpu.concatenate %56, %79 in 1 : vector<8x32xf32>, vector<8x32xf32> -> vector<8x64xf32>
    %cst_41 = arith.constant dense<0.000000e+00> : vector<8x128xf32>
    %105 = tpu.matmul %104, %102, %cst_41 {dimension_numbers = #tpu.dot_dimension_numbers<[1], [0], [0], [1], [0, 0, 1, 1], [], []>} : vector<8x64xf32>, vector<64x128xf32>, vector<8x128xf32> -> vector<8x128xf32>
    %106 = vector.broadcast %103 : vector<1x128xf32> to vector<8x128xf32>
    %107 = arith.addf %105, %106 : vector<8x128xf32>
    %cst_42 = arith.constant 5.000000e-01 : f32
    %108 = vector.broadcast %cst_42 : f32 to vector<8x128xf32>
    %109 = arith.mulf %108, %107 : vector<8x128xf32>
    %110 = math.tanh %109 : vector<8x128xf32>
    %cst_43 = arith.constant 5.000000e-01 : f32
    %111 = vector.broadcast %cst_43 : f32 to vector<8x128xf32>
    %112 = arith.mulf %111, %110 : vector<8x128xf32>
    %cst_44 = arith.constant 5.000000e-01 : f32
    %113 = vector.broadcast %cst_44 : f32 to vector<8x128xf32>
    %114 = arith.addf %112, %113 : vector<8x128xf32>
    %115 = vector.extract_strided_slice %114 {offsets = [0, 0], sizes = [8, 32], strides = [1, 1]} : vector<8x128xf32> to vector<8x32xf32>
    %116 = vector.extract_strided_slice %114 {offsets = [0, 32], sizes = [8, 32], strides = [1, 1]} : vector<8x128xf32> to vector<8x32xf32>
    %117 = vector.extract_strided_slice %114 {offsets = [0, 64], sizes = [8, 32], strides = [1, 1]} : vector<8x128xf32> to vector<8x32xf32>
    %118 = vector.extract_strided_slice %107 {offsets = [0, 96], sizes = [8, 32], strides = [1, 1]} : vector<8x128xf32> to vector<8x32xf32>
    %119 = math.tanh %118 : vector<8x32xf32>
    %120 = arith.mulf %116, %77 : vector<8x32xf32>
    %121 = arith.mulf %115, %119 : vector<8x32xf32>
    %122 = arith.addf %120, %121 : vector<8x32xf32>
    %123 = math.tanh %122 : vector<8x32xf32>
    %124 = arith.mulf %117, %123 : vector<8x32xf32>
    %c0_45 = arith.constant 0 : index
    %c0_46 = arith.constant 0 : index
    %125 = vector.load %arg6[%c0_45, %c0_46] : memref<64x128xf32, #tpu.memory_space<vmem>>, vector<64x128xf32>
    %c0_47 = arith.constant 0 : index
    %c0_48 = arith.constant 0 : index
    %126 = vector.load %arg7[%c0_47, %c0_48] : memref<1x128xf32, #tpu.memory_space<vmem>>, vector<1x128xf32>
    %127 = tpu.concatenate %79, %9 in 1 : vector<8x32xf32>, vector<8x32xf32> -> vector<8x64xf32>
    %cst_49 = arith.constant dense<0.000000e+00> : vector<8x128xf32>
    %128 = tpu.matmul %127, %125, %cst_49 {dimension_numbers = #tpu.dot_dimension_numbers<[1], [0], [0], [1], [0, 0, 1, 1], [], []>} : vector<8x64xf32>, vector<64x128xf32>, vector<8x128xf32> -> vector<8x128xf32>
    %129 = vector.broadcast %126 : vector<1x128xf32> to vector<8x128xf32>
    %130 = arith.addf %128, %129 : vector<8x128xf32>
    %cst_50 = arith.constant 5.000000e-01 : f32
    %131 = vector.broadcast %cst_50 : f32 to vector<8x128xf32>
    %132 = arith.mulf %131, %130 : vector<8x128xf32>
    %133 = math.tanh %132 : vector<8x128xf32>
    %cst_51 = arith.constant 5.000000e-01 : f32
    %134 = vector.broadcast %cst_51 : f32 to vector<8x128xf32>
    %135 = arith.mulf %134, %133 : vector<8x128xf32>
    %cst_52 = arith.constant 5.000000e-01 : f32
    %136 = vector.broadcast %cst_52 : f32 to vector<8x128xf32>
    %137 = arith.addf %135, %136 : vector<8x128xf32>
    %138 = vector.extract_strided_slice %137 {offsets = [0, 0], sizes = [8, 32], strides = [1, 1]} : vector<8x128xf32> to vector<8x32xf32>
    %139 = vector.extract_strided_slice %137 {offsets = [0, 32], sizes = [8, 32], strides = [1, 1]} : vector<8x128xf32> to vector<8x32xf32>
    %140 = vector.extract_strided_slice %137 {offsets = [0, 64], sizes = [8, 32], strides = [1, 1]} : vector<8x128xf32> to vector<8x32xf32>
    %141 = vector.extract_strided_slice %130 {offsets = [0, 96], sizes = [8, 32], strides = [1, 1]} : vector<8x128xf32> to vector<8x32xf32>
    %142 = math.tanh %141 : vector<8x32xf32>
    %143 = arith.mulf %139, %12 : vector<8x32xf32>
    %144 = arith.mulf %138, %142 : vector<8x32xf32>
    %145 = arith.addf %143, %144 : vector<8x32xf32>
    %146 = math.tanh %145 : vector<8x32xf32>
    %147 = arith.mulf %140, %146 : vector<8x32xf32>
    %148 = vector.extract_strided_slice %6 {offsets = [3, 0, 0], sizes = [1, 8, 128], strides = [1, 1, 1]} : vector<8x8x128xf32> to vector<1x8x128xf32>
    %149 = vector.shape_cast %148 : vector<1x8x128xf32> to vector<8x128xf32>
    %c0_53 = arith.constant 0 : index
    %c0_54 = arith.constant 0 : index
    %150 = vector.load %arg2[%c0_53, %c0_54] : memref<32x128xf32, #tpu.memory_space<vmem>>, vector<32x128xf32>
    %cst_55 = arith.constant dense<0.000000e+00> : vector<8x128xf32>
    %151 = tpu.matmul %101, %150, %cst_55 {dimension_numbers = #tpu.dot_dimension_numbers<[1], [0], [0], [1], [0, 0, 1, 1], [], []>} : vector<8x32xf32>, vector<32x128xf32>, vector<8x128xf32> -> vector<8x128xf32>
    %152 = arith.addf %149, %151 : vector<8x128xf32>
    %cst_56 = arith.constant 5.000000e-01 : f32
    %153 = vector.broadcast %cst_56 : f32 to vector<8x128xf32>
    %154 = arith.mulf %153, %152 : vector<8x128xf32>
    %155 = math.tanh %154 : vector<8x128xf32>
    %cst_57 = arith.constant 5.000000e-01 : f32
    %156 = vector.broadcast %cst_57 : f32 to vector<8x128xf32>
    %157 = arith.mulf %156, %155 : vector<8x128xf32>
    %cst_58 = arith.constant 5.000000e-01 : f32
    %158 = vector.broadcast %cst_58 : f32 to vector<8x128xf32>
    %159 = arith.addf %157, %158 : vector<8x128xf32>
    %160 = vector.extract_strided_slice %159 {offsets = [0, 0], sizes = [8, 32], strides = [1, 1]} : vector<8x128xf32> to vector<8x32xf32>
    %161 = vector.extract_strided_slice %159 {offsets = [0, 32], sizes = [8, 32], strides = [1, 1]} : vector<8x128xf32> to vector<8x32xf32>
    %162 = vector.extract_strided_slice %159 {offsets = [0, 64], sizes = [8, 32], strides = [1, 1]} : vector<8x128xf32> to vector<8x32xf32>
    %163 = vector.extract_strided_slice %152 {offsets = [0, 96], sizes = [8, 32], strides = [1, 1]} : vector<8x128xf32> to vector<8x32xf32>
    %164 = math.tanh %163 : vector<8x32xf32>
    %165 = arith.mulf %161, %99 : vector<8x32xf32>
    %166 = arith.mulf %160, %164 : vector<8x32xf32>
    %167 = arith.addf %165, %166 : vector<8x32xf32>
    %168 = math.tanh %167 : vector<8x32xf32>
    %169 = arith.mulf %162, %168 : vector<8x32xf32>
    %c0_59 = arith.constant 0 : index
    %c0_60 = arith.constant 0 : index
    %170 = vector.load %arg4[%c0_59, %c0_60] : memref<64x128xf32, #tpu.memory_space<vmem>>, vector<64x128xf32>
    %c0_61 = arith.constant 0 : index
    %c0_62 = arith.constant 0 : index
    %171 = vector.load %arg5[%c0_61, %c0_62] : memref<1x128xf32, #tpu.memory_space<vmem>>, vector<1x128xf32>
    %172 = tpu.concatenate %101, %124 in 1 : vector<8x32xf32>, vector<8x32xf32> -> vector<8x64xf32>
    %cst_63 = arith.constant dense<0.000000e+00> : vector<8x128xf32>
    %173 = tpu.matmul %172, %170, %cst_63 {dimension_numbers = #tpu.dot_dimension_numbers<[1], [0], [0], [1], [0, 0, 1, 1], [], []>} : vector<8x64xf32>, vector<64x128xf32>, vector<8x128xf32> -> vector<8x128xf32>
    %174 = vector.broadcast %171 : vector<1x128xf32> to vector<8x128xf32>
    %175 = arith.addf %173, %174 : vector<8x128xf32>
    %cst_64 = arith.constant 5.000000e-01 : f32
    %176 = vector.broadcast %cst_64 : f32 to vector<8x128xf32>
    %177 = arith.mulf %176, %175 : vector<8x128xf32>
    %178 = math.tanh %177 : vector<8x128xf32>
    %cst_65 = arith.constant 5.000000e-01 : f32
    %179 = vector.broadcast %cst_65 : f32 to vector<8x128xf32>
    %180 = arith.mulf %179, %178 : vector<8x128xf32>
    %cst_66 = arith.constant 5.000000e-01 : f32
    %181 = vector.broadcast %cst_66 : f32 to vector<8x128xf32>
    %182 = arith.addf %180, %181 : vector<8x128xf32>
    %183 = vector.extract_strided_slice %182 {offsets = [0, 0], sizes = [8, 32], strides = [1, 1]} : vector<8x128xf32> to vector<8x32xf32>
    %184 = vector.extract_strided_slice %182 {offsets = [0, 32], sizes = [8, 32], strides = [1, 1]} : vector<8x128xf32> to vector<8x32xf32>
    %185 = vector.extract_strided_slice %182 {offsets = [0, 64], sizes = [8, 32], strides = [1, 1]} : vector<8x128xf32> to vector<8x32xf32>
    %186 = vector.extract_strided_slice %175 {offsets = [0, 96], sizes = [8, 32], strides = [1, 1]} : vector<8x128xf32> to vector<8x32xf32>
    %187 = math.tanh %186 : vector<8x32xf32>
    %188 = arith.mulf %184, %122 : vector<8x32xf32>
    %189 = arith.mulf %183, %187 : vector<8x32xf32>
    %190 = arith.addf %188, %189 : vector<8x32xf32>
    %191 = math.tanh %190 : vector<8x32xf32>
    %192 = arith.mulf %185, %191 : vector<8x32xf32>
    %c0_67 = arith.constant 0 : index
    %c0_68 = arith.constant 0 : index
    %193 = vector.load %arg6[%c0_67, %c0_68] : memref<64x128xf32, #tpu.memory_space<vmem>>, vector<64x128xf32>
    %c0_69 = arith.constant 0 : index
    %c0_70 = arith.constant 0 : index
    %194 = vector.load %arg7[%c0_69, %c0_70] : memref<1x128xf32, #tpu.memory_space<vmem>>, vector<1x128xf32>
    %195 = tpu.concatenate %124, %147 in 1 : vector<8x32xf32>, vector<8x32xf32> -> vector<8x64xf32>
    %cst_71 = arith.constant dense<0.000000e+00> : vector<8x128xf32>
    %196 = tpu.matmul %195, %193, %cst_71 {dimension_numbers = #tpu.dot_dimension_numbers<[1], [0], [0], [1], [0, 0, 1, 1], [], []>} : vector<8x64xf32>, vector<64x128xf32>, vector<8x128xf32> -> vector<8x128xf32>
    %197 = vector.broadcast %194 : vector<1x128xf32> to vector<8x128xf32>
    %198 = arith.addf %196, %197 : vector<8x128xf32>
    %cst_72 = arith.constant 5.000000e-01 : f32
    %199 = vector.broadcast %cst_72 : f32 to vector<8x128xf32>
    %200 = arith.mulf %199, %198 : vector<8x128xf32>
    %201 = math.tanh %200 : vector<8x128xf32>
    %cst_73 = arith.constant 5.000000e-01 : f32
    %202 = vector.broadcast %cst_73 : f32 to vector<8x128xf32>
    %203 = arith.mulf %202, %201 : vector<8x128xf32>
    %cst_74 = arith.constant 5.000000e-01 : f32
    %204 = vector.broadcast %cst_74 : f32 to vector<8x128xf32>
    %205 = arith.addf %203, %204 : vector<8x128xf32>
    %206 = vector.extract_strided_slice %205 {offsets = [0, 0], sizes = [8, 32], strides = [1, 1]} : vector<8x128xf32> to vector<8x32xf32>
    %207 = vector.extract_strided_slice %205 {offsets = [0, 32], sizes = [8, 32], strides = [1, 1]} : vector<8x128xf32> to vector<8x32xf32>
    %208 = vector.extract_strided_slice %205 {offsets = [0, 64], sizes = [8, 32], strides = [1, 1]} : vector<8x128xf32> to vector<8x32xf32>
    %209 = vector.extract_strided_slice %198 {offsets = [0, 96], sizes = [8, 32], strides = [1, 1]} : vector<8x128xf32> to vector<8x32xf32>
    %210 = math.tanh %209 : vector<8x32xf32>
    %211 = arith.mulf %207, %145 : vector<8x32xf32>
    %212 = arith.mulf %206, %210 : vector<8x32xf32>
    %213 = arith.addf %211, %212 : vector<8x32xf32>
    %214 = math.tanh %213 : vector<8x32xf32>
    %215 = arith.mulf %208, %214 : vector<8x32xf32>
    %216 = vector.extract_strided_slice %6 {offsets = [4, 0, 0], sizes = [1, 8, 128], strides = [1, 1, 1]} : vector<8x8x128xf32> to vector<1x8x128xf32>
    %217 = vector.shape_cast %216 : vector<1x8x128xf32> to vector<8x128xf32>
    %c0_75 = arith.constant 0 : index
    %c0_76 = arith.constant 0 : index
    %218 = vector.load %arg2[%c0_75, %c0_76] : memref<32x128xf32, #tpu.memory_space<vmem>>, vector<32x128xf32>
    %cst_77 = arith.constant dense<0.000000e+00> : vector<8x128xf32>
    %219 = tpu.matmul %169, %218, %cst_77 {dimension_numbers = #tpu.dot_dimension_numbers<[1], [0], [0], [1], [0, 0, 1, 1], [], []>} : vector<8x32xf32>, vector<32x128xf32>, vector<8x128xf32> -> vector<8x128xf32>
    %220 = arith.addf %217, %219 : vector<8x128xf32>
    %cst_78 = arith.constant 5.000000e-01 : f32
    %221 = vector.broadcast %cst_78 : f32 to vector<8x128xf32>
    %222 = arith.mulf %221, %220 : vector<8x128xf32>
    %223 = math.tanh %222 : vector<8x128xf32>
    %cst_79 = arith.constant 5.000000e-01 : f32
    %224 = vector.broadcast %cst_79 : f32 to vector<8x128xf32>
    %225 = arith.mulf %224, %223 : vector<8x128xf32>
    %cst_80 = arith.constant 5.000000e-01 : f32
    %226 = vector.broadcast %cst_80 : f32 to vector<8x128xf32>
    %227 = arith.addf %225, %226 : vector<8x128xf32>
    %228 = vector.extract_strided_slice %227 {offsets = [0, 0], sizes = [8, 32], strides = [1, 1]} : vector<8x128xf32> to vector<8x32xf32>
    %229 = vector.extract_strided_slice %227 {offsets = [0, 32], sizes = [8, 32], strides = [1, 1]} : vector<8x128xf32> to vector<8x32xf32>
    %230 = vector.extract_strided_slice %227 {offsets = [0, 64], sizes = [8, 32], strides = [1, 1]} : vector<8x128xf32> to vector<8x32xf32>
    %231 = vector.extract_strided_slice %220 {offsets = [0, 96], sizes = [8, 32], strides = [1, 1]} : vector<8x128xf32> to vector<8x32xf32>
    %232 = math.tanh %231 : vector<8x32xf32>
    %233 = arith.mulf %229, %167 : vector<8x32xf32>
    %234 = arith.mulf %228, %232 : vector<8x32xf32>
    %235 = arith.addf %233, %234 : vector<8x32xf32>
    %236 = math.tanh %235 : vector<8x32xf32>
    %237 = arith.mulf %230, %236 : vector<8x32xf32>
    %c0_81 = arith.constant 0 : index
    %c0_82 = arith.constant 0 : index
    %238 = vector.load %arg4[%c0_81, %c0_82] : memref<64x128xf32, #tpu.memory_space<vmem>>, vector<64x128xf32>
    %c0_83 = arith.constant 0 : index
    %c0_84 = arith.constant 0 : index
    %239 = vector.load %arg5[%c0_83, %c0_84] : memref<1x128xf32, #tpu.memory_space<vmem>>, vector<1x128xf32>
    %240 = tpu.concatenate %169, %192 in 1 : vector<8x32xf32>, vector<8x32xf32> -> vector<8x64xf32>
    %cst_85 = arith.constant dense<0.000000e+00> : vector<8x128xf32>
    %241 = tpu.matmul %240, %238, %cst_85 {dimension_numbers = #tpu.dot_dimension_numbers<[1], [0], [0], [1], [0, 0, 1, 1], [], []>} : vector<8x64xf32>, vector<64x128xf32>, vector<8x128xf32> -> vector<8x128xf32>
    %242 = vector.broadcast %239 : vector<1x128xf32> to vector<8x128xf32>
    %243 = arith.addf %241, %242 : vector<8x128xf32>
    %cst_86 = arith.constant 5.000000e-01 : f32
    %244 = vector.broadcast %cst_86 : f32 to vector<8x128xf32>
    %245 = arith.mulf %244, %243 : vector<8x128xf32>
    %246 = math.tanh %245 : vector<8x128xf32>
    %cst_87 = arith.constant 5.000000e-01 : f32
    %247 = vector.broadcast %cst_87 : f32 to vector<8x128xf32>
    %248 = arith.mulf %247, %246 : vector<8x128xf32>
    %cst_88 = arith.constant 5.000000e-01 : f32
    %249 = vector.broadcast %cst_88 : f32 to vector<8x128xf32>
    %250 = arith.addf %248, %249 : vector<8x128xf32>
    %251 = vector.extract_strided_slice %250 {offsets = [0, 0], sizes = [8, 32], strides = [1, 1]} : vector<8x128xf32> to vector<8x32xf32>
    %252 = vector.extract_strided_slice %250 {offsets = [0, 32], sizes = [8, 32], strides = [1, 1]} : vector<8x128xf32> to vector<8x32xf32>
    %253 = vector.extract_strided_slice %250 {offsets = [0, 64], sizes = [8, 32], strides = [1, 1]} : vector<8x128xf32> to vector<8x32xf32>
    %254 = vector.extract_strided_slice %243 {offsets = [0, 96], sizes = [8, 32], strides = [1, 1]} : vector<8x128xf32> to vector<8x32xf32>
    %255 = math.tanh %254 : vector<8x32xf32>
    %256 = arith.mulf %252, %190 : vector<8x32xf32>
    %257 = arith.mulf %251, %255 : vector<8x32xf32>
    %258 = arith.addf %256, %257 : vector<8x32xf32>
    %259 = math.tanh %258 : vector<8x32xf32>
    %260 = arith.mulf %253, %259 : vector<8x32xf32>
    %c0_89 = arith.constant 0 : index
    %c0_90 = arith.constant 0 : index
    %261 = vector.load %arg6[%c0_89, %c0_90] : memref<64x128xf32, #tpu.memory_space<vmem>>, vector<64x128xf32>
    %c0_91 = arith.constant 0 : index
    %c0_92 = arith.constant 0 : index
    %262 = vector.load %arg7[%c0_91, %c0_92] : memref<1x128xf32, #tpu.memory_space<vmem>>, vector<1x128xf32>
    %263 = tpu.concatenate %192, %215 in 1 : vector<8x32xf32>, vector<8x32xf32> -> vector<8x64xf32>
    %cst_93 = arith.constant dense<0.000000e+00> : vector<8x128xf32>
    %264 = tpu.matmul %263, %261, %cst_93 {dimension_numbers = #tpu.dot_dimension_numbers<[1], [0], [0], [1], [0, 0, 1, 1], [], []>} : vector<8x64xf32>, vector<64x128xf32>, vector<8x128xf32> -> vector<8x128xf32>
    %265 = vector.broadcast %262 : vector<1x128xf32> to vector<8x128xf32>
    %266 = arith.addf %264, %265 : vector<8x128xf32>
    %cst_94 = arith.constant 5.000000e-01 : f32
    %267 = vector.broadcast %cst_94 : f32 to vector<8x128xf32>
    %268 = arith.mulf %267, %266 : vector<8x128xf32>
    %269 = math.tanh %268 : vector<8x128xf32>
    %cst_95 = arith.constant 5.000000e-01 : f32
    %270 = vector.broadcast %cst_95 : f32 to vector<8x128xf32>
    %271 = arith.mulf %270, %269 : vector<8x128xf32>
    %cst_96 = arith.constant 5.000000e-01 : f32
    %272 = vector.broadcast %cst_96 : f32 to vector<8x128xf32>
    %273 = arith.addf %271, %272 : vector<8x128xf32>
    %274 = vector.extract_strided_slice %273 {offsets = [0, 0], sizes = [8, 32], strides = [1, 1]} : vector<8x128xf32> to vector<8x32xf32>
    %275 = vector.extract_strided_slice %273 {offsets = [0, 32], sizes = [8, 32], strides = [1, 1]} : vector<8x128xf32> to vector<8x32xf32>
    %276 = vector.extract_strided_slice %273 {offsets = [0, 64], sizes = [8, 32], strides = [1, 1]} : vector<8x128xf32> to vector<8x32xf32>
    %277 = vector.extract_strided_slice %266 {offsets = [0, 96], sizes = [8, 32], strides = [1, 1]} : vector<8x128xf32> to vector<8x32xf32>
    %278 = math.tanh %277 : vector<8x32xf32>
    %279 = arith.mulf %275, %213 : vector<8x32xf32>
    %280 = arith.mulf %274, %278 : vector<8x32xf32>
    %281 = arith.addf %279, %280 : vector<8x32xf32>
    %282 = math.tanh %281 : vector<8x32xf32>
    %283 = arith.mulf %276, %282 : vector<8x32xf32>
    %284 = vector.extract_strided_slice %6 {offsets = [5, 0, 0], sizes = [1, 8, 128], strides = [1, 1, 1]} : vector<8x8x128xf32> to vector<1x8x128xf32>
    %285 = vector.shape_cast %284 : vector<1x8x128xf32> to vector<8x128xf32>
    %c0_97 = arith.constant 0 : index
    %c0_98 = arith.constant 0 : index
    %286 = vector.load %arg2[%c0_97, %c0_98] : memref<32x128xf32, #tpu.memory_space<vmem>>, vector<32x128xf32>
    %cst_99 = arith.constant dense<0.000000e+00> : vector<8x128xf32>
    %287 = tpu.matmul %237, %286, %cst_99 {dimension_numbers = #tpu.dot_dimension_numbers<[1], [0], [0], [1], [0, 0, 1, 1], [], []>} : vector<8x32xf32>, vector<32x128xf32>, vector<8x128xf32> -> vector<8x128xf32>
    %288 = arith.addf %285, %287 : vector<8x128xf32>
    %cst_100 = arith.constant 5.000000e-01 : f32
    %289 = vector.broadcast %cst_100 : f32 to vector<8x128xf32>
    %290 = arith.mulf %289, %288 : vector<8x128xf32>
    %291 = math.tanh %290 : vector<8x128xf32>
    %cst_101 = arith.constant 5.000000e-01 : f32
    %292 = vector.broadcast %cst_101 : f32 to vector<8x128xf32>
    %293 = arith.mulf %292, %291 : vector<8x128xf32>
    %cst_102 = arith.constant 5.000000e-01 : f32
    %294 = vector.broadcast %cst_102 : f32 to vector<8x128xf32>
    %295 = arith.addf %293, %294 : vector<8x128xf32>
    %296 = vector.extract_strided_slice %295 {offsets = [0, 0], sizes = [8, 32], strides = [1, 1]} : vector<8x128xf32> to vector<8x32xf32>
    %297 = vector.extract_strided_slice %295 {offsets = [0, 32], sizes = [8, 32], strides = [1, 1]} : vector<8x128xf32> to vector<8x32xf32>
    %298 = vector.extract_strided_slice %295 {offsets = [0, 64], sizes = [8, 32], strides = [1, 1]} : vector<8x128xf32> to vector<8x32xf32>
    %299 = vector.extract_strided_slice %288 {offsets = [0, 96], sizes = [8, 32], strides = [1, 1]} : vector<8x128xf32> to vector<8x32xf32>
    %300 = math.tanh %299 : vector<8x32xf32>
    %301 = arith.mulf %297, %235 : vector<8x32xf32>
    %302 = arith.mulf %296, %300 : vector<8x32xf32>
    %303 = arith.addf %301, %302 : vector<8x32xf32>
    %304 = math.tanh %303 : vector<8x32xf32>
    %305 = arith.mulf %298, %304 : vector<8x32xf32>
    %c0_103 = arith.constant 0 : index
    %c0_104 = arith.constant 0 : index
    %306 = vector.load %arg4[%c0_103, %c0_104] : memref<64x128xf32, #tpu.memory_space<vmem>>, vector<64x128xf32>
    %c0_105 = arith.constant 0 : index
    %c0_106 = arith.constant 0 : index
    %307 = vector.load %arg5[%c0_105, %c0_106] : memref<1x128xf32, #tpu.memory_space<vmem>>, vector<1x128xf32>
    %308 = tpu.concatenate %237, %260 in 1 : vector<8x32xf32>, vector<8x32xf32> -> vector<8x64xf32>
    %cst_107 = arith.constant dense<0.000000e+00> : vector<8x128xf32>
    %309 = tpu.matmul %308, %306, %cst_107 {dimension_numbers = #tpu.dot_dimension_numbers<[1], [0], [0], [1], [0, 0, 1, 1], [], []>} : vector<8x64xf32>, vector<64x128xf32>, vector<8x128xf32> -> vector<8x128xf32>
    %310 = vector.broadcast %307 : vector<1x128xf32> to vector<8x128xf32>
    %311 = arith.addf %309, %310 : vector<8x128xf32>
    %cst_108 = arith.constant 5.000000e-01 : f32
    %312 = vector.broadcast %cst_108 : f32 to vector<8x128xf32>
    %313 = arith.mulf %312, %311 : vector<8x128xf32>
    %314 = math.tanh %313 : vector<8x128xf32>
    %cst_109 = arith.constant 5.000000e-01 : f32
    %315 = vector.broadcast %cst_109 : f32 to vector<8x128xf32>
    %316 = arith.mulf %315, %314 : vector<8x128xf32>
    %cst_110 = arith.constant 5.000000e-01 : f32
    %317 = vector.broadcast %cst_110 : f32 to vector<8x128xf32>
    %318 = arith.addf %316, %317 : vector<8x128xf32>
    %319 = vector.extract_strided_slice %318 {offsets = [0, 0], sizes = [8, 32], strides = [1, 1]} : vector<8x128xf32> to vector<8x32xf32>
    %320 = vector.extract_strided_slice %318 {offsets = [0, 32], sizes = [8, 32], strides = [1, 1]} : vector<8x128xf32> to vector<8x32xf32>
    %321 = vector.extract_strided_slice %318 {offsets = [0, 64], sizes = [8, 32], strides = [1, 1]} : vector<8x128xf32> to vector<8x32xf32>
    %322 = vector.extract_strided_slice %311 {offsets = [0, 96], sizes = [8, 32], strides = [1, 1]} : vector<8x128xf32> to vector<8x32xf32>
    %323 = math.tanh %322 : vector<8x32xf32>
    %324 = arith.mulf %320, %258 : vector<8x32xf32>
    %325 = arith.mulf %319, %323 : vector<8x32xf32>
    %326 = arith.addf %324, %325 : vector<8x32xf32>
    %327 = math.tanh %326 : vector<8x32xf32>
    %328 = arith.mulf %321, %327 : vector<8x32xf32>
    %c0_111 = arith.constant 0 : index
    %c0_112 = arith.constant 0 : index
    %329 = vector.load %arg6[%c0_111, %c0_112] : memref<64x128xf32, #tpu.memory_space<vmem>>, vector<64x128xf32>
    %c0_113 = arith.constant 0 : index
    %c0_114 = arith.constant 0 : index
    %330 = vector.load %arg7[%c0_113, %c0_114] : memref<1x128xf32, #tpu.memory_space<vmem>>, vector<1x128xf32>
    %331 = tpu.concatenate %260, %283 in 1 : vector<8x32xf32>, vector<8x32xf32> -> vector<8x64xf32>
    %cst_115 = arith.constant dense<0.000000e+00> : vector<8x128xf32>
    %332 = tpu.matmul %331, %329, %cst_115 {dimension_numbers = #tpu.dot_dimension_numbers<[1], [0], [0], [1], [0, 0, 1, 1], [], []>} : vector<8x64xf32>, vector<64x128xf32>, vector<8x128xf32> -> vector<8x128xf32>
    %333 = vector.broadcast %330 : vector<1x128xf32> to vector<8x128xf32>
    %334 = arith.addf %332, %333 : vector<8x128xf32>
    %cst_116 = arith.constant 5.000000e-01 : f32
    %335 = vector.broadcast %cst_116 : f32 to vector<8x128xf32>
    %336 = arith.mulf %335, %334 : vector<8x128xf32>
    %337 = math.tanh %336 : vector<8x128xf32>
    %cst_117 = arith.constant 5.000000e-01 : f32
    %338 = vector.broadcast %cst_117 : f32 to vector<8x128xf32>
    %339 = arith.mulf %338, %337 : vector<8x128xf32>
    %cst_118 = arith.constant 5.000000e-01 : f32
    %340 = vector.broadcast %cst_118 : f32 to vector<8x128xf32>
    %341 = arith.addf %339, %340 : vector<8x128xf32>
    %342 = vector.extract_strided_slice %341 {offsets = [0, 0], sizes = [8, 32], strides = [1, 1]} : vector<8x128xf32> to vector<8x32xf32>
    %343 = vector.extract_strided_slice %341 {offsets = [0, 32], sizes = [8, 32], strides = [1, 1]} : vector<8x128xf32> to vector<8x32xf32>
    %344 = vector.extract_strided_slice %341 {offsets = [0, 64], sizes = [8, 32], strides = [1, 1]} : vector<8x128xf32> to vector<8x32xf32>
    %345 = vector.extract_strided_slice %334 {offsets = [0, 96], sizes = [8, 32], strides = [1, 1]} : vector<8x128xf32> to vector<8x32xf32>
    %346 = math.tanh %345 : vector<8x32xf32>
    %347 = arith.mulf %343, %281 : vector<8x32xf32>
    %348 = arith.mulf %342, %346 : vector<8x32xf32>
    %349 = arith.addf %347, %348 : vector<8x32xf32>
    %350 = math.tanh %349 : vector<8x32xf32>
    %351 = arith.mulf %344, %350 : vector<8x32xf32>
    %352 = vector.extract_strided_slice %6 {offsets = [6, 0, 0], sizes = [1, 8, 128], strides = [1, 1, 1]} : vector<8x8x128xf32> to vector<1x8x128xf32>
    %353 = vector.shape_cast %352 : vector<1x8x128xf32> to vector<8x128xf32>
    %c0_119 = arith.constant 0 : index
    %c0_120 = arith.constant 0 : index
    %354 = vector.load %arg2[%c0_119, %c0_120] : memref<32x128xf32, #tpu.memory_space<vmem>>, vector<32x128xf32>
    %cst_121 = arith.constant dense<0.000000e+00> : vector<8x128xf32>
    %355 = tpu.matmul %305, %354, %cst_121 {dimension_numbers = #tpu.dot_dimension_numbers<[1], [0], [0], [1], [0, 0, 1, 1], [], []>} : vector<8x32xf32>, vector<32x128xf32>, vector<8x128xf32> -> vector<8x128xf32>
    %356 = arith.addf %353, %355 : vector<8x128xf32>
    %cst_122 = arith.constant 5.000000e-01 : f32
    %357 = vector.broadcast %cst_122 : f32 to vector<8x128xf32>
    %358 = arith.mulf %357, %356 : vector<8x128xf32>
    %359 = math.tanh %358 : vector<8x128xf32>
    %cst_123 = arith.constant 5.000000e-01 : f32
    %360 = vector.broadcast %cst_123 : f32 to vector<8x128xf32>
    %361 = arith.mulf %360, %359 : vector<8x128xf32>
    %cst_124 = arith.constant 5.000000e-01 : f32
    %362 = vector.broadcast %cst_124 : f32 to vector<8x128xf32>
    %363 = arith.addf %361, %362 : vector<8x128xf32>
    %364 = vector.extract_strided_slice %363 {offsets = [0, 0], sizes = [8, 32], strides = [1, 1]} : vector<8x128xf32> to vector<8x32xf32>
    %365 = vector.extract_strided_slice %363 {offsets = [0, 32], sizes = [8, 32], strides = [1, 1]} : vector<8x128xf32> to vector<8x32xf32>
    %366 = vector.extract_strided_slice %363 {offsets = [0, 64], sizes = [8, 32], strides = [1, 1]} : vector<8x128xf32> to vector<8x32xf32>
    %367 = vector.extract_strided_slice %356 {offsets = [0, 96], sizes = [8, 32], strides = [1, 1]} : vector<8x128xf32> to vector<8x32xf32>
    %368 = math.tanh %367 : vector<8x32xf32>
    %369 = arith.mulf %365, %303 : vector<8x32xf32>
    %370 = arith.mulf %364, %368 : vector<8x32xf32>
    %371 = arith.addf %369, %370 : vector<8x32xf32>
    %372 = math.tanh %371 : vector<8x32xf32>
    %373 = arith.mulf %366, %372 : vector<8x32xf32>
    %c0_125 = arith.constant 0 : index
    %c0_126 = arith.constant 0 : index
    %374 = vector.load %arg4[%c0_125, %c0_126] : memref<64x128xf32, #tpu.memory_space<vmem>>, vector<64x128xf32>
    %c0_127 = arith.constant 0 : index
    %c0_128 = arith.constant 0 : index
    %375 = vector.load %arg5[%c0_127, %c0_128] : memref<1x128xf32, #tpu.memory_space<vmem>>, vector<1x128xf32>
    %376 = tpu.concatenate %305, %328 in 1 : vector<8x32xf32>, vector<8x32xf32> -> vector<8x64xf32>
    %cst_129 = arith.constant dense<0.000000e+00> : vector<8x128xf32>
    %377 = tpu.matmul %376, %374, %cst_129 {dimension_numbers = #tpu.dot_dimension_numbers<[1], [0], [0], [1], [0, 0, 1, 1], [], []>} : vector<8x64xf32>, vector<64x128xf32>, vector<8x128xf32> -> vector<8x128xf32>
    %378 = vector.broadcast %375 : vector<1x128xf32> to vector<8x128xf32>
    %379 = arith.addf %377, %378 : vector<8x128xf32>
    %cst_130 = arith.constant 5.000000e-01 : f32
    %380 = vector.broadcast %cst_130 : f32 to vector<8x128xf32>
    %381 = arith.mulf %380, %379 : vector<8x128xf32>
    %382 = math.tanh %381 : vector<8x128xf32>
    %cst_131 = arith.constant 5.000000e-01 : f32
    %383 = vector.broadcast %cst_131 : f32 to vector<8x128xf32>
    %384 = arith.mulf %383, %382 : vector<8x128xf32>
    %cst_132 = arith.constant 5.000000e-01 : f32
    %385 = vector.broadcast %cst_132 : f32 to vector<8x128xf32>
    %386 = arith.addf %384, %385 : vector<8x128xf32>
    %387 = vector.extract_strided_slice %386 {offsets = [0, 0], sizes = [8, 32], strides = [1, 1]} : vector<8x128xf32> to vector<8x32xf32>
    %388 = vector.extract_strided_slice %386 {offsets = [0, 32], sizes = [8, 32], strides = [1, 1]} : vector<8x128xf32> to vector<8x32xf32>
    %389 = vector.extract_strided_slice %386 {offsets = [0, 64], sizes = [8, 32], strides = [1, 1]} : vector<8x128xf32> to vector<8x32xf32>
    %390 = vector.extract_strided_slice %379 {offsets = [0, 96], sizes = [8, 32], strides = [1, 1]} : vector<8x128xf32> to vector<8x32xf32>
    %391 = math.tanh %390 : vector<8x32xf32>
    %392 = arith.mulf %388, %326 : vector<8x32xf32>
    %393 = arith.mulf %387, %391 : vector<8x32xf32>
    %394 = arith.addf %392, %393 : vector<8x32xf32>
    %395 = math.tanh %394 : vector<8x32xf32>
    %396 = arith.mulf %389, %395 : vector<8x32xf32>
    %c0_133 = arith.constant 0 : index
    %c0_134 = arith.constant 0 : index
    %397 = vector.load %arg6[%c0_133, %c0_134] : memref<64x128xf32, #tpu.memory_space<vmem>>, vector<64x128xf32>
    %c0_135 = arith.constant 0 : index
    %c0_136 = arith.constant 0 : index
    %398 = vector.load %arg7[%c0_135, %c0_136] : memref<1x128xf32, #tpu.memory_space<vmem>>, vector<1x128xf32>
    %399 = tpu.concatenate %328, %351 in 1 : vector<8x32xf32>, vector<8x32xf32> -> vector<8x64xf32>
    %cst_137 = arith.constant dense<0.000000e+00> : vector<8x128xf32>
    %400 = tpu.matmul %399, %397, %cst_137 {dimension_numbers = #tpu.dot_dimension_numbers<[1], [0], [0], [1], [0, 0, 1, 1], [], []>} : vector<8x64xf32>, vector<64x128xf32>, vector<8x128xf32> -> vector<8x128xf32>
    %401 = vector.broadcast %398 : vector<1x128xf32> to vector<8x128xf32>
    %402 = arith.addf %400, %401 : vector<8x128xf32>
    %cst_138 = arith.constant 5.000000e-01 : f32
    %403 = vector.broadcast %cst_138 : f32 to vector<8x128xf32>
    %404 = arith.mulf %403, %402 : vector<8x128xf32>
    %405 = math.tanh %404 : vector<8x128xf32>
    %cst_139 = arith.constant 5.000000e-01 : f32
    %406 = vector.broadcast %cst_139 : f32 to vector<8x128xf32>
    %407 = arith.mulf %406, %405 : vector<8x128xf32>
    %cst_140 = arith.constant 5.000000e-01 : f32
    %408 = vector.broadcast %cst_140 : f32 to vector<8x128xf32>
    %409 = arith.addf %407, %408 : vector<8x128xf32>
    %410 = vector.extract_strided_slice %409 {offsets = [0, 0], sizes = [8, 32], strides = [1, 1]} : vector<8x128xf32> to vector<8x32xf32>
    %411 = vector.extract_strided_slice %409 {offsets = [0, 32], sizes = [8, 32], strides = [1, 1]} : vector<8x128xf32> to vector<8x32xf32>
    %412 = vector.extract_strided_slice %409 {offsets = [0, 64], sizes = [8, 32], strides = [1, 1]} : vector<8x128xf32> to vector<8x32xf32>
    %413 = vector.extract_strided_slice %402 {offsets = [0, 96], sizes = [8, 32], strides = [1, 1]} : vector<8x128xf32> to vector<8x32xf32>
    %414 = math.tanh %413 : vector<8x32xf32>
    %415 = arith.mulf %411, %349 : vector<8x32xf32>
    %416 = arith.mulf %410, %414 : vector<8x32xf32>
    %417 = arith.addf %415, %416 : vector<8x32xf32>
    %418 = math.tanh %417 : vector<8x32xf32>
    %419 = arith.mulf %412, %418 : vector<8x32xf32>
    %420 = vector.extract_strided_slice %6 {offsets = [7, 0, 0], sizes = [1, 8, 128], strides = [1, 1, 1]} : vector<8x8x128xf32> to vector<1x8x128xf32>
    %421 = vector.shape_cast %420 : vector<1x8x128xf32> to vector<8x128xf32>
    %c0_141 = arith.constant 0 : index
    %c0_142 = arith.constant 0 : index
    %422 = vector.load %arg2[%c0_141, %c0_142] : memref<32x128xf32, #tpu.memory_space<vmem>>, vector<32x128xf32>
    %cst_143 = arith.constant dense<0.000000e+00> : vector<8x128xf32>
    %423 = tpu.matmul %373, %422, %cst_143 {dimension_numbers = #tpu.dot_dimension_numbers<[1], [0], [0], [1], [0, 0, 1, 1], [], []>} : vector<8x32xf32>, vector<32x128xf32>, vector<8x128xf32> -> vector<8x128xf32>
    %424 = arith.addf %421, %423 : vector<8x128xf32>
    %cst_144 = arith.constant 5.000000e-01 : f32
    %425 = vector.broadcast %cst_144 : f32 to vector<8x128xf32>
    %426 = arith.mulf %425, %424 : vector<8x128xf32>
    %427 = math.tanh %426 : vector<8x128xf32>
    %cst_145 = arith.constant 5.000000e-01 : f32
    %428 = vector.broadcast %cst_145 : f32 to vector<8x128xf32>
    %429 = arith.mulf %428, %427 : vector<8x128xf32>
    %cst_146 = arith.constant 5.000000e-01 : f32
    %430 = vector.broadcast %cst_146 : f32 to vector<8x128xf32>
    %431 = arith.addf %429, %430 : vector<8x128xf32>
    %432 = vector.extract_strided_slice %431 {offsets = [0, 0], sizes = [8, 32], strides = [1, 1]} : vector<8x128xf32> to vector<8x32xf32>
    %433 = vector.extract_strided_slice %431 {offsets = [0, 32], sizes = [8, 32], strides = [1, 1]} : vector<8x128xf32> to vector<8x32xf32>
    %434 = vector.extract_strided_slice %431 {offsets = [0, 64], sizes = [8, 32], strides = [1, 1]} : vector<8x128xf32> to vector<8x32xf32>
    %435 = vector.extract_strided_slice %424 {offsets = [0, 96], sizes = [8, 32], strides = [1, 1]} : vector<8x128xf32> to vector<8x32xf32>
    %436 = math.tanh %435 : vector<8x32xf32>
    %437 = arith.mulf %433, %371 : vector<8x32xf32>
    %438 = arith.mulf %432, %436 : vector<8x32xf32>
    %439 = arith.addf %437, %438 : vector<8x32xf32>
    %440 = math.tanh %439 : vector<8x32xf32>
    %441 = arith.mulf %434, %440 : vector<8x32xf32>
    %c0_147 = arith.constant 0 : index
    %c0_148 = arith.constant 0 : index
    %442 = vector.load %arg4[%c0_147, %c0_148] : memref<64x128xf32, #tpu.memory_space<vmem>>, vector<64x128xf32>
    %c0_149 = arith.constant 0 : index
    %c0_150 = arith.constant 0 : index
    %443 = vector.load %arg5[%c0_149, %c0_150] : memref<1x128xf32, #tpu.memory_space<vmem>>, vector<1x128xf32>
    %444 = tpu.concatenate %373, %396 in 1 : vector<8x32xf32>, vector<8x32xf32> -> vector<8x64xf32>
    %cst_151 = arith.constant dense<0.000000e+00> : vector<8x128xf32>
    %445 = tpu.matmul %444, %442, %cst_151 {dimension_numbers = #tpu.dot_dimension_numbers<[1], [0], [0], [1], [0, 0, 1, 1], [], []>} : vector<8x64xf32>, vector<64x128xf32>, vector<8x128xf32> -> vector<8x128xf32>
    %446 = vector.broadcast %443 : vector<1x128xf32> to vector<8x128xf32>
    %447 = arith.addf %445, %446 : vector<8x128xf32>
    %cst_152 = arith.constant 5.000000e-01 : f32
    %448 = vector.broadcast %cst_152 : f32 to vector<8x128xf32>
    %449 = arith.mulf %448, %447 : vector<8x128xf32>
    %450 = math.tanh %449 : vector<8x128xf32>
    %cst_153 = arith.constant 5.000000e-01 : f32
    %451 = vector.broadcast %cst_153 : f32 to vector<8x128xf32>
    %452 = arith.mulf %451, %450 : vector<8x128xf32>
    %cst_154 = arith.constant 5.000000e-01 : f32
    %453 = vector.broadcast %cst_154 : f32 to vector<8x128xf32>
    %454 = arith.addf %452, %453 : vector<8x128xf32>
    %455 = vector.extract_strided_slice %454 {offsets = [0, 0], sizes = [8, 32], strides = [1, 1]} : vector<8x128xf32> to vector<8x32xf32>
    %456 = vector.extract_strided_slice %454 {offsets = [0, 32], sizes = [8, 32], strides = [1, 1]} : vector<8x128xf32> to vector<8x32xf32>
    %457 = vector.extract_strided_slice %454 {offsets = [0, 64], sizes = [8, 32], strides = [1, 1]} : vector<8x128xf32> to vector<8x32xf32>
    %458 = vector.extract_strided_slice %447 {offsets = [0, 96], sizes = [8, 32], strides = [1, 1]} : vector<8x128xf32> to vector<8x32xf32>
    %459 = math.tanh %458 : vector<8x32xf32>
    %460 = arith.mulf %456, %394 : vector<8x32xf32>
    %461 = arith.mulf %455, %459 : vector<8x32xf32>
    %462 = arith.addf %460, %461 : vector<8x32xf32>
    %463 = math.tanh %462 : vector<8x32xf32>
    %464 = arith.mulf %457, %463 : vector<8x32xf32>
    %c0_155 = arith.constant 0 : index
    %c0_156 = arith.constant 0 : index
    %465 = vector.load %arg6[%c0_155, %c0_156] : memref<64x128xf32, #tpu.memory_space<vmem>>, vector<64x128xf32>
    %c0_157 = arith.constant 0 : index
    %c0_158 = arith.constant 0 : index
    %466 = vector.load %arg7[%c0_157, %c0_158] : memref<1x128xf32, #tpu.memory_space<vmem>>, vector<1x128xf32>
    %467 = tpu.concatenate %396, %419 in 1 : vector<8x32xf32>, vector<8x32xf32> -> vector<8x64xf32>
    %cst_159 = arith.constant dense<0.000000e+00> : vector<8x128xf32>
    %468 = tpu.matmul %467, %465, %cst_159 {dimension_numbers = #tpu.dot_dimension_numbers<[1], [0], [0], [1], [0, 0, 1, 1], [], []>} : vector<8x64xf32>, vector<64x128xf32>, vector<8x128xf32> -> vector<8x128xf32>
    %469 = vector.broadcast %466 : vector<1x128xf32> to vector<8x128xf32>
    %470 = arith.addf %468, %469 : vector<8x128xf32>
    %cst_160 = arith.constant 5.000000e-01 : f32
    %471 = vector.broadcast %cst_160 : f32 to vector<8x128xf32>
    %472 = arith.mulf %471, %470 : vector<8x128xf32>
    %473 = math.tanh %472 : vector<8x128xf32>
    %cst_161 = arith.constant 5.000000e-01 : f32
    %474 = vector.broadcast %cst_161 : f32 to vector<8x128xf32>
    %475 = arith.mulf %474, %473 : vector<8x128xf32>
    %cst_162 = arith.constant 5.000000e-01 : f32
    %476 = vector.broadcast %cst_162 : f32 to vector<8x128xf32>
    %477 = arith.addf %475, %476 : vector<8x128xf32>
    %478 = vector.extract_strided_slice %477 {offsets = [0, 0], sizes = [8, 32], strides = [1, 1]} : vector<8x128xf32> to vector<8x32xf32>
    %479 = vector.extract_strided_slice %477 {offsets = [0, 32], sizes = [8, 32], strides = [1, 1]} : vector<8x128xf32> to vector<8x32xf32>
    %480 = vector.extract_strided_slice %477 {offsets = [0, 64], sizes = [8, 32], strides = [1, 1]} : vector<8x128xf32> to vector<8x32xf32>
    %481 = vector.extract_strided_slice %470 {offsets = [0, 96], sizes = [8, 32], strides = [1, 1]} : vector<8x128xf32> to vector<8x32xf32>
    %482 = math.tanh %481 : vector<8x32xf32>
    %483 = arith.mulf %479, %417 : vector<8x32xf32>
    %484 = arith.mulf %478, %482 : vector<8x32xf32>
    %485 = arith.addf %483, %484 : vector<8x32xf32>
    %486 = math.tanh %485 : vector<8x32xf32>
    %487 = arith.mulf %480, %486 : vector<8x32xf32>
    %c0_163 = arith.constant 0 : index
    %c0_164 = arith.constant 0 : index
    %488 = vector.load %arg4[%c0_163, %c0_164] : memref<64x128xf32, #tpu.memory_space<vmem>>, vector<64x128xf32>
    %c0_165 = arith.constant 0 : index
    %c0_166 = arith.constant 0 : index
    %489 = vector.load %arg5[%c0_165, %c0_166] : memref<1x128xf32, #tpu.memory_space<vmem>>, vector<1x128xf32>
    %490 = tpu.concatenate %441, %464 in 1 : vector<8x32xf32>, vector<8x32xf32> -> vector<8x64xf32>
    %cst_167 = arith.constant dense<0.000000e+00> : vector<8x128xf32>
    %491 = tpu.matmul %490, %488, %cst_167 {dimension_numbers = #tpu.dot_dimension_numbers<[1], [0], [0], [1], [0, 0, 1, 1], [], []>} : vector<8x64xf32>, vector<64x128xf32>, vector<8x128xf32> -> vector<8x128xf32>
    %492 = vector.broadcast %489 : vector<1x128xf32> to vector<8x128xf32>
    %493 = arith.addf %491, %492 : vector<8x128xf32>
    %cst_168 = arith.constant 5.000000e-01 : f32
    %494 = vector.broadcast %cst_168 : f32 to vector<8x128xf32>
    %495 = arith.mulf %494, %493 : vector<8x128xf32>
    %496 = math.tanh %495 : vector<8x128xf32>
    %cst_169 = arith.constant 5.000000e-01 : f32
    %497 = vector.broadcast %cst_169 : f32 to vector<8x128xf32>
    %498 = arith.mulf %497, %496 : vector<8x128xf32>
    %cst_170 = arith.constant 5.000000e-01 : f32
    %499 = vector.broadcast %cst_170 : f32 to vector<8x128xf32>
    %500 = arith.addf %498, %499 : vector<8x128xf32>
    %501 = vector.extract_strided_slice %500 {offsets = [0, 0], sizes = [8, 32], strides = [1, 1]} : vector<8x128xf32> to vector<8x32xf32>
    %502 = vector.extract_strided_slice %500 {offsets = [0, 32], sizes = [8, 32], strides = [1, 1]} : vector<8x128xf32> to vector<8x32xf32>
    %503 = vector.extract_strided_slice %500 {offsets = [0, 64], sizes = [8, 32], strides = [1, 1]} : vector<8x128xf32> to vector<8x32xf32>
    %504 = vector.extract_strided_slice %493 {offsets = [0, 96], sizes = [8, 32], strides = [1, 1]} : vector<8x128xf32> to vector<8x32xf32>
    %505 = math.tanh %504 : vector<8x32xf32>
    %506 = arith.mulf %502, %462 : vector<8x32xf32>
    %507 = arith.mulf %501, %505 : vector<8x32xf32>
    %508 = arith.addf %506, %507 : vector<8x32xf32>
    %509 = math.tanh %508 : vector<8x32xf32>
    %510 = arith.mulf %503, %509 : vector<8x32xf32>
    %c0_171 = arith.constant 0 : index
    %c0_172 = arith.constant 0 : index
    %511 = vector.load %arg6[%c0_171, %c0_172] : memref<64x128xf32, #tpu.memory_space<vmem>>, vector<64x128xf32>
    %c0_173 = arith.constant 0 : index
    %c0_174 = arith.constant 0 : index
    %512 = vector.load %arg7[%c0_173, %c0_174] : memref<1x128xf32, #tpu.memory_space<vmem>>, vector<1x128xf32>
    %513 = tpu.concatenate %464, %487 in 1 : vector<8x32xf32>, vector<8x32xf32> -> vector<8x64xf32>
    %cst_175 = arith.constant dense<0.000000e+00> : vector<8x128xf32>
    %514 = tpu.matmul %513, %511, %cst_175 {dimension_numbers = #tpu.dot_dimension_numbers<[1], [0], [0], [1], [0, 0, 1, 1], [], []>} : vector<8x64xf32>, vector<64x128xf32>, vector<8x128xf32> -> vector<8x128xf32>
    %515 = vector.broadcast %512 : vector<1x128xf32> to vector<8x128xf32>
    %516 = arith.addf %514, %515 : vector<8x128xf32>
    %cst_176 = arith.constant 5.000000e-01 : f32
    %517 = vector.broadcast %cst_176 : f32 to vector<8x128xf32>
    %518 = arith.mulf %517, %516 : vector<8x128xf32>
    %519 = math.tanh %518 : vector<8x128xf32>
    %cst_177 = arith.constant 5.000000e-01 : f32
    %520 = vector.broadcast %cst_177 : f32 to vector<8x128xf32>
    %521 = arith.mulf %520, %519 : vector<8x128xf32>
    %cst_178 = arith.constant 5.000000e-01 : f32
    %522 = vector.broadcast %cst_178 : f32 to vector<8x128xf32>
    %523 = arith.addf %521, %522 : vector<8x128xf32>
    %524 = vector.extract_strided_slice %523 {offsets = [0, 0], sizes = [8, 32], strides = [1, 1]} : vector<8x128xf32> to vector<8x32xf32>
    %525 = vector.extract_strided_slice %523 {offsets = [0, 32], sizes = [8, 32], strides = [1, 1]} : vector<8x128xf32> to vector<8x32xf32>
    %526 = vector.extract_strided_slice %523 {offsets = [0, 64], sizes = [8, 32], strides = [1, 1]} : vector<8x128xf32> to vector<8x32xf32>
    %527 = vector.extract_strided_slice %516 {offsets = [0, 96], sizes = [8, 32], strides = [1, 1]} : vector<8x128xf32> to vector<8x32xf32>
    %528 = math.tanh %527 : vector<8x32xf32>
    %529 = arith.mulf %525, %485 : vector<8x32xf32>
    %530 = arith.mulf %524, %528 : vector<8x32xf32>
    %531 = arith.addf %529, %530 : vector<8x32xf32>
    %532 = math.tanh %531 : vector<8x32xf32>
    %533 = arith.mulf %526, %532 : vector<8x32xf32>
    %c0_179 = arith.constant 0 : index
    %c0_180 = arith.constant 0 : index
    %534 = vector.load %arg6[%c0_179, %c0_180] : memref<64x128xf32, #tpu.memory_space<vmem>>, vector<64x128xf32>
    %c0_181 = arith.constant 0 : index
    %c0_182 = arith.constant 0 : index
    %535 = vector.load %arg7[%c0_181, %c0_182] : memref<1x128xf32, #tpu.memory_space<vmem>>, vector<1x128xf32>
    %536 = tpu.concatenate %510, %533 in 1 : vector<8x32xf32>, vector<8x32xf32> -> vector<8x64xf32>
    %cst_183 = arith.constant dense<0.000000e+00> : vector<8x128xf32>
    %537 = tpu.matmul %536, %534, %cst_183 {dimension_numbers = #tpu.dot_dimension_numbers<[1], [0], [0], [1], [0, 0, 1, 1], [], []>} : vector<8x64xf32>, vector<64x128xf32>, vector<8x128xf32> -> vector<8x128xf32>
    %538 = vector.broadcast %535 : vector<1x128xf32> to vector<8x128xf32>
    %539 = arith.addf %537, %538 : vector<8x128xf32>
    %cst_184 = arith.constant 5.000000e-01 : f32
    %540 = vector.broadcast %cst_184 : f32 to vector<8x128xf32>
    %541 = arith.mulf %540, %539 : vector<8x128xf32>
    %542 = math.tanh %541 : vector<8x128xf32>
    %cst_185 = arith.constant 5.000000e-01 : f32
    %543 = vector.broadcast %cst_185 : f32 to vector<8x128xf32>
    %544 = arith.mulf %543, %542 : vector<8x128xf32>
    %cst_186 = arith.constant 5.000000e-01 : f32
    %545 = vector.broadcast %cst_186 : f32 to vector<8x128xf32>
    %546 = arith.addf %544, %545 : vector<8x128xf32>
    %547 = vector.extract_strided_slice %546 {offsets = [0, 0], sizes = [8, 32], strides = [1, 1]} : vector<8x128xf32> to vector<8x32xf32>
    %548 = vector.extract_strided_slice %546 {offsets = [0, 32], sizes = [8, 32], strides = [1, 1]} : vector<8x128xf32> to vector<8x32xf32>
    %549 = vector.extract_strided_slice %546 {offsets = [0, 64], sizes = [8, 32], strides = [1, 1]} : vector<8x128xf32> to vector<8x32xf32>
    %550 = vector.extract_strided_slice %539 {offsets = [0, 96], sizes = [8, 32], strides = [1, 1]} : vector<8x128xf32> to vector<8x32xf32>
    %551 = math.tanh %550 : vector<8x32xf32>
    %552 = arith.mulf %548, %531 : vector<8x32xf32>
    %553 = arith.mulf %547, %551 : vector<8x32xf32>
    %554 = arith.addf %552, %553 : vector<8x32xf32>
    %555 = math.tanh %554 : vector<8x32xf32>
    %556 = arith.mulf %549, %555 : vector<8x32xf32>
    %c0_187 = arith.constant 0 : index
    %c0_188 = arith.constant 0 : index
    %c0_189 = arith.constant 0 : index
    %557 = vector.load %arg11[%c0_187, %c0_188, %c0_189] : memref<3x8x32xf32, #tpu.memory_space<vmem>>, vector<1x8x32xf32>
    %558 = vector.shape_cast %557 : vector<1x8x32xf32> to vector<8x32xf32>
    %559 = vector.shape_cast %441 : vector<8x32xf32> to vector<1x8x32xf32>
    tpu.vector_store %arg11[%c0_187, %c0_188, %c0_189], %559 {strides = array<i32>} : memref<3x8x32xf32, #tpu.memory_space<vmem>>, vector<1x8x32xf32>,
    %c0_190 = arith.constant 0 : index
    %c0_191 = arith.constant 0 : index
    %c0_192 = arith.constant 0 : index
    %560 = vector.load %arg12[%c0_190, %c0_191, %c0_192] : memref<3x8x32xf32, #tpu.memory_space<vmem>>, vector<1x8x32xf32>
    %561 = vector.shape_cast %560 : vector<1x8x32xf32> to vector<8x32xf32>
    %562 = vector.shape_cast %439 : vector<8x32xf32> to vector<1x8x32xf32>
    tpu.vector_store %arg12[%c0_190, %c0_191, %c0_192], %562 {strides = array<i32>} : memref<3x8x32xf32, #tpu.memory_space<vmem>>, vector<1x8x32xf32>,
    %c1 = arith.constant 1 : index
    %c0_193 = arith.constant 0 : index
    %c0_194 = arith.constant 0 : index
    %563 = vector.load %arg11[%c1, %c0_193, %c0_194] : memref<3x8x32xf32, #tpu.memory_space<vmem>>, vector<1x8x32xf32>
    %564 = vector.shape_cast %563 : vector<1x8x32xf32> to vector<8x32xf32>
    %565 = vector.shape_cast %510 : vector<8x32xf32> to vector<1x8x32xf32>
    tpu.vector_store %arg11[%c1, %c0_193, %c0_194], %565 {strides = array<i32>} : memref<3x8x32xf32, #tpu.memory_space<vmem>>, vector<1x8x32xf32>,
    %c1_195 = arith.constant 1 : index
    %c0_196 = arith.constant 0 : index
    %c0_197 = arith.constant 0 : index
    %566 = vector.load %arg12[%c1_195, %c0_196, %c0_197] : memref<3x8x32xf32, #tpu.memory_space<vmem>>, vector<1x8x32xf32>
    %567 = vector.shape_cast %566 : vector<1x8x32xf32> to vector<8x32xf32>
    %568 = vector.shape_cast %508 : vector<8x32xf32> to vector<1x8x32xf32>
    tpu.vector_store %arg12[%c1_195, %c0_196, %c0_197], %568 {strides = array<i32>} : memref<3x8x32xf32, #tpu.memory_space<vmem>>, vector<1x8x32xf32>,
    %c2 = arith.constant 2 : index
    %c0_198 = arith.constant 0 : index
    %c0_199 = arith.constant 0 : index
    %569 = vector.load %arg11[%c2, %c0_198, %c0_199] : memref<3x8x32xf32, #tpu.memory_space<vmem>>, vector<1x8x32xf32>
    %570 = vector.shape_cast %569 : vector<1x8x32xf32> to vector<8x32xf32>
    %571 = vector.shape_cast %556 : vector<8x32xf32> to vector<1x8x32xf32>
    tpu.vector_store %arg11[%c2, %c0_198, %c0_199], %571 {strides = array<i32>} : memref<3x8x32xf32, #tpu.memory_space<vmem>>, vector<1x8x32xf32>,
    %c2_200 = arith.constant 2 : index
    %c0_201 = arith.constant 0 : index
    %c0_202 = arith.constant 0 : index
    %572 = vector.load %arg12[%c2_200, %c0_201, %c0_202] : memref<3x8x32xf32, #tpu.memory_space<vmem>>, vector<1x8x32xf32>
    %573 = vector.shape_cast %572 : vector<1x8x32xf32> to vector<8x32xf32>
    %574 = vector.shape_cast %554 : vector<8x32xf32> to vector<1x8x32xf32>
    tpu.vector_store %arg12[%c2_200, %c0_201, %c0_202], %574 {strides = array<i32>} : memref<3x8x32xf32, #tpu.memory_space<vmem>>, vector<1x8x32xf32>,
    %575 = tpu.concatenate %147, %215, %283, %351, %419, %487, %533, %556 in 0 : vector<8x32xf32>, vector<8x32xf32>, vector<8x32xf32>, vector<8x32xf32>, vector<8x32xf32>, vector<8x32xf32>, vector<8x32xf32>, vector<8x32xf32> -> vector<64x32xf32>
    %c0_203 = arith.constant 0 : index
    %c0_204 = arith.constant 0 : index
    %576 = vector.load %arg8[%c0_203, %c0_204] : memref<32x128xf32, #tpu.memory_space<vmem>>, vector<32x128xf32>
    %cst_205 = arith.constant dense<0.000000e+00> : vector<64x128xf32>
    %577 = tpu.matmul %575, %576, %cst_205 {dimension_numbers = #tpu.dot_dimension_numbers<[1], [0], [0], [1], [0, 0, 1, 1], [], []>} : vector<64x32xf32>, vector<32x128xf32>, vector<64x128xf32> -> vector<64x128xf32>
    %c0_206 = arith.constant 0 : index
    %c0_207 = arith.constant 0 : index
    %578 = vector.load %arg9[%c0_206, %c0_207] : memref<1x128xf32, #tpu.memory_space<vmem>>, vector<1x128xf32>
    %579 = vector.broadcast %578 : vector<1x128xf32> to vector<64x128xf32>
    %580 = arith.addf %577, %579 : vector<64x128xf32>
    %c0_208 = arith.constant 0 : index
    %c0_209 = arith.constant 0 : index
    %581 = vector.load %arg10[%c0_208, %c0_209] : memref<64x128xf32, #tpu.memory_space<vmem>>, vector<64x128xf32>
    tpu.vector_store %arg10[%c0_208, %c0_209], %580 {strides = array<i32>} : memref<64x128xf32, #tpu.memory_space<vmem>>, vector<64x128xf32>,
    return
  }
}

</mosaic_0001>

<bundles_post_ra>
// kernel: model_forward.1
= control target key start
LH: loop header
LB: loop body
LE: loop exit
PB: predicated region body
PF: predicated region fallthrough
CT: control target
= control target key end

     0   :  { %18 = vsyncpa [#allocation3], 0  ;;  %s4848_s0 = inlined_call_operand.vmem [shape: f32[64,49], index: 0, kind: input, shape index: {}]   ;;  %s4849_s1 = inlined_call_operand.hbm [shape: f32[49,128], index: 1, kind: input, shape index: {}]   ;;  %s4850_s2 = inlined_call_operand.vmem [shape: f32[32,128], index: 2, kind: input, shape index: {}]   ;;  %s4851_s3 = inlined_call_operand.vmem [shape: f32[1,128], index: 3, kind: input, shape index: {}]   ;;  %s4852_s4 = inlined_call_operand.vmem [shape: f32[64,128], index: 4, kind: input, shape index: {}]   ;;  %s4853_s5 = inlined_call_operand.vmem [shape: f32[1,128], index: 5, kind: input, shape index: {}]   ;;  %s4854_s6 = inlined_call_operand.hbm [shape: f32[64,128], index: 6, kind: input, shape index: {}]   ;;  %s4855_s7 = inlined_call_operand.vmem [shape: f32[1,128], index: 7, kind: input, shape index: {}]   ;;  %s4856_s8 = inlined_call_operand.hbm [shape: f32[32,128], index: 8, kind: input, shape index: {}]   ;;  %s4857_s9 = inlined_call_operand.vmem [shape: f32[1,128], index: 9, kind: input, shape index: {}]   ;;  %s4858_s10 = inlined_call_operand.vmem [shape: f32[64,128], index: 10, kind: output, shape index: {0}]   ;;  %s4859_s11 = inlined_call_operand.vmem [shape: f32[3,8,32], index: 11, kind: output, shape index: {1}]   ;;  %s4860_s12 = inlined_call_operand.vmem [shape: f32[3,8,32], index: 12, kind: output, shape index: {2}]  }
   0x1   :  { %19 = vsyncpa [#allocation5], 0  ;;  %s3813_s21 = smov [#allocation4]   ;;  %s3814_s23 = smov [#allocation2]  }
   0x2   :  { %s47_s22 = sshll.u32 %s3813_s21, 4  ;;  %s27_s24 = sshll.u32 %s3814_s23, 4  ;;  %s48_s22 = int_to_ptr.vmem [resolvable:$true] %s47_s22  ;;  %s28_s24 = int_to_ptr.vmem [resolvable:$true] %s27_s24 }
   0x3   :  { %s3757_s25 = scalar_lea.vmem %s48_s22, 1024  ;;  %p3762_p1 = scmp.lt.s32.totalorder %s48_s22, %s48_s22 }
   0x4   :  { %p3758_p0 = scmp.ne.s32.totalorder %s48_s22, %s3757_s25  ;;  %p3763_p2 = scmp.lt.s32.totalorder %s3757_s25, %s3757_s25 }
   0x6   :  { %p3764_p3 = por %p3763_p2, %p3762_p1 }
   0x8   :  { %p3765_p4 = pnand %p3764_p3, %p3758_p0 }
   0xa   :  { %3768 = shalt.err (!%p3765_p4)
}
   0xb   :  { %s3815_s26 = smov 128   ;;  %s3816_s27 = smov 8  }
   0xc   :  { %53 = dma.hbm_to_vmem [thread:$0]  %s4854_s6, 1024, %s48_s22, [#allocation5], %s3815_s26, %s3815_s26, %s3816_s27  }
   0xd   :  { %s3777_s30 = scalar_lea.vmem %s28_s24, 896  ;;  %p3782_p6 = scmp.lt.s32.totalorder %s28_s24, %s28_s24 }
   0xe   :  { %p3778_p5 = scmp.ne.s32.totalorder %s28_s24, %s3777_s30  ;;  %p3783_p7 = scmp.lt.s32.totalorder %s3777_s30, %s3777_s30 }
  0x10   :  { %p3784_p8 = por %p3783_p7, %p3782_p6 }
  0x12   :  { %p3785_p9 = pnand %p3784_p8, %p3778_p5 }
  0x14   :  { %3788 = shalt.err (!%p3785_p9)
}
  0x15   :  { %33 = dma.hbm_to_vmem [thread:$0]  %s4849_s1, 896, %s28_s24, [#allocation3], %s3815_s26, %s3815_s26, %s3816_s27  }
  0x16   :  { %s3817_s15 = smov [#allocation6]  }
  0x17   :  { %s61_s16 = sshll.u32 %s3817_s15, 4  ;;  %s62_s16 = int_to_ptr.vmem [resolvable:$true] %s61_s16 }
  0x18   :  { %s3797_s17 = scalar_lea.vmem %s62_s16, 512  ;;  %p3802_p11 = scmp.lt.s32.totalorder %s62_s16, %s62_s16 }
  0x19   :  { %p3798_p10 = scmp.ne.s32.totalorder %s62_s16, %s3797_s17  ;;  %p3803_p12 = scmp.lt.s32.totalorder %s3797_s17, %s3797_s17 }
  0x1b   :  { %p3804_p13 = por %p3803_p12, %p3802_p11 }
  0x1d   :  { %p3805_p0 = pnand %p3804_p13, %p3798_p10 }
  0x1f   :  { %3808 = shalt.err (!%p3805_p0)
}
  0x20   :  { %67 = dma.hbm_to_vmem [thread:$0]  %s4856_s8, 512, %s62_s16, [#allocation5], %s3815_s26, %s3815_s26, %s3816_s27  }
  0x21   :  { %3809 = dma.done.wait [#allocation3], 896  }
  0x22   :  { %3810 = vsyncadd [#allocation3], 4294966400 }
  0x23   :  { %3811 = dma.done.wait [#allocation5], 1536  }
  0x24   :  { %3812 = vsyncadd [#allocation5], 4294965760  ;;  %v3818_v0 = vmov 0.0   ;;  %vm3819_vm0 = vmmov 0   ;;  %vm126_vm1 = vcmask 1040384   ;;  %v92_v2 = vld [vmem:[#allocation2 + $0x28] sm:$0xff] }
  0x25   :  { %3160 = vmatprep.subr.mxu1 %v3818_v0  ;;  %3168 = vmatprep.mubr.msk.f32.mxu1 %vm3819_vm0, %v3818_v0  ;;  %v93_v1 = vld [vmem:[#allocation2 + $0x30] sm:$0x1]  ;;  %v3903_v3 = vld [vmem:[%s4850_s2 + $0x18] sm:$0xff]  ;;  %v91_v4 = vld [vmem:[#allocation2 + $0x20] sm:$0xff]  ;;  %vm101_vm2 = vcmask 400384   ;;  %s3820_s13 = smov 32  }
  0x26   :  { %3134 = vmatprep.subr.msk.mxu0 %vm126_vm1, %v93_v1  ;;  %3161 = vmatpush3.msra.mxu1 %v3903_v3  ;;  %v3909_v5 = vld [vmem:[%s4850_s2 + $0x10] sm:$0xff]  ;;  %v79_v6 = vld [vmem:[%s4848_s0] sm:$0xff]  ;;  %v90_v7 = vld [vmem:[#allocation2 + $0x18] sm:$0xff]  ;;  %s3821_s19 = smov 64   ;;  %vm239_vm3 = vcmask 261120   ;;  %vm451_vm4 = vcmask 523264  }
  0x27   :  { %3135 = vmatpush3.msk.msra.mxu0 %vm126_vm1, %v93_v1  ;;  %3162 = vmatprep.subr.mxu1 %v3818_v0  ;;  %v3919_v8 = vld [vmem:[%s4850_s2 + $0x8] sm:$0xff]  ;;  %v89_v9 = vld [vmem:[#allocation2 + $0x10] sm:$0xff]  ;;  %v3926_v10 = vld [vmem:[%s4850_s2] sm:$0xff]  ;;  %s3822_s21 = smov 96  }
  0x28   :  { %3136 = vmatprep.subr.mxu0 %v92_v2  ;;  %3163 = vmatpush3.msra.mxu1 %v3909_v5  ;;  %v88_v11 = vld [vmem:[#allocation2 + $0x8] sm:$0xff]  ;;  %v87_v12 = vld [vmem:[#allocation2] sm:$0xff]  ;;  %v3964_v31 = vld [vmem:[%s4852_s4 + $0x38] sm:$0xff] }
  0x29   :  { %3137 = vmatpush3.msra.mxu0 %v92_v2  ;;  %3164 = vmatprep.subr.mxu1 %v3818_v0  ;;  %v80_v13 = vld [vmem:[%s4848_s0 + $0x8] sm:$0xff]  ;;  %v3953_v17 = vld [vmem:[%s4851_s3] ss:$0 sm:$0xff]  ;;  %v81_v32 = vld [vmem:[%s4848_s0 + $0x10] sm:$0xff] }
  0x2a   :  { %3138 = vmatprep.subr.mxu0 %v91_v4  ;;  %3148 = vmatprep.mubr.msk.f32.mxu0 %vm101_vm2, %v79_v6  ;;  %v3972_v33 = vld [vmem:[%s4852_s4 + $0x30] sm:$0xff]  ;;  %v82_v34 = vld [vmem:[%s4848_s0 + $0x18] sm:$0xff]  ;;  %v83_v35 = vld [vmem:[%s4848_s0 + $0x20] sm:$0xff] }
  0x2b   :  { %3139 = vmatpush3.msra.mxu0 %v91_v4  ;;  %3165 = vmatpush3.msra.mxu1 %v3919_v8  ;;  %v3987_v36 = vld [vmem:[%s4852_s4 + $0x28] sm:$0xff]  ;;  %v3998_v38 = vld [vmem:[%s4852_s4 + $0x20] sm:$0xff]  ;;  %v85_v39 = vld [vmem:[%s4848_s0 + $0x30] sm:$0xff] }
  0x2c   :  { %3140 = vmatprep.subr.mxu0 %v90_v7  ;;  %3166 = vmatprep.subr.mxu1 %v3818_v0  ;;  %v84_v37 = vld [vmem:[%s4848_s0 + $0x28] sm:$0xff]  ;;  %v4009_v40 = vld [vmem:[%s4852_s4 + $0x18] sm:$0xff]  ;;  %v4020_v42 = vld [vmem:[%s4852_s4 + $0x10] sm:$0xff] }
  0x2d   :  { %3141 = vmatpush3.msra.mxu0 %v90_v7  ;;  %3167 = vmatpush3.msra.mxu1 %v3926_v10  ;;  %v86_v41 = vld [vmem:[%s4848_s0 + $0x38] sm:$0xff]  ;;  %v4028_v44 = vld [vmem:[%s4852_s4 + $0x8] sm:$0xff]  ;;  %v4040_v45 = vld [vmem:[%s4852_s4] sm:$0xff] }
  0x2e   :  { %3142 = vmatprep.subr.mxu0 %v89_v9  ;;  %3169 = vmatmul.mubr.f32.vlgmr.msra.gmra.mxu1 %v3818_v0  ;;  %v4077_v57 = vld [vmem:[%s4853_s5] ss:$0 sm:$0xff] }
  0x2f   :  { %3143 = vmatpush3.msra.mxu0 %v89_v9  ;;  %3171 = vmatprep.subr.mxu1 %v3818_v0 }
  0x30   :  { %3144 = vmatprep.subr.mxu0 %v88_v11  ;;  %3172 = vmatpush3.msra.mxu1 %v3903_v3 }
  0x31   :  { %3145 = vmatpush3.msra.mxu0 %v88_v11  ;;  %3173 = vmatprep.subr.mxu1 %v3818_v0 }
  0x32   :  { %3146 = vmatprep.subr.mxu0 %v87_v12  ;;  %3174 = vmatpush3.msra.mxu1 %v3909_v5 }
  0x33   :  { %3147 = vmatpush3.msra.mxu0 %v87_v12  ;;  %3175 = vmatprep.subr.mxu1 %v3818_v0 }
  0x34   :  { %3149 = vmatmul.mubr.msk.f32.vlgmr.msra.gmra.mxu0 %vm101_vm2, %v80_v13  ;;  %3182 = vmatprep.subr.mxu0 %v3818_v0 }
  0x35   :  { %3179 = vmatprep.mubr.msk.f32.mxu1 %vm3819_vm0, %v3818_v0  ;;  %3176 = vmatpush3.msra.mxu1 %v3919_v8 }
  0x36   :  { %3177 = vmatprep.subr.mxu1 %v3818_v0  ;;  %3183 = vmatpush3.msra.mxu0 %v3964_v31 }
  0x37   :  { %3178 = vmatpush3.msra.mxu1 %v3926_v10  ;;  %3151 = vmatprep.mubr.msk.f32.mxu0 %vm101_vm2, %v81_v32  ;;  %v4105_v32 = vld [vmem:[#allocation4 + $0x18] sm:$0xff] }
  0x38   :  { %3201 = vmatprep.subr.mxu1 %v3818_v0  ;;  %3184 = vmatprep.subr.mxu0 %v3818_v0 }
  0x39   :  { %3152 = vmatmul.mubr.msk.f32.gmra.mxu0 %vm101_vm2, %v82_v34 }
  0x3a   :  { %3185 = vmatpush3.msra.mxu0 %v3972_v33  ;;  %3154 = vmatprep.mubr.msk.f32.mxu0 %vm101_vm2, %v83_v35  ;;  %v4113_v35 = vld [vmem:[#allocation4 + $0x10] sm:$0xff] }
  0x3b   :  { %3186 = vmatprep.subr.mxu0 %v3818_v0 }
  0x3c   :  { %3187 = vmatpush3.msra.mxu0 %v3987_v36 }
  0x3d   :  { %3188 = vmatprep.subr.mxu0 %v3818_v0  ;;  %3155 = vmatmul.mubr.msk.f32.gmra.mxu0 %vm101_vm2, %v84_v37  ;;  %v4117_v37 = vld [vmem:[#allocation4 + $0x8] sm:$0xff] }
  0x3e   :  { %3189 = vmatpush3.msra.mxu0 %v3998_v38  ;;  %3157 = vmatprep.mubr.msk.f32.mxu0 %vm101_vm2, %v85_v39  ;;  %v4121_v39 = vld [vmem:[#allocation4] sm:$0xff] }
  0x3f   :  { %3190 = vmatprep.subr.mxu0 %v3818_v0 }
  0x40   :  { %3191 = vmatpush3.msra.mxu0 %v4009_v40 }
  0x41   :  { %3192 = vmatprep.subr.mxu0 %v3818_v0  ;;  %3158 = vmatmul.mubr.msk.f32.gmra.mxu0 %vm101_vm2, %v86_v41 }
  0x42   :  { %3193 = vmatpush3.msra.mxu0 %v4020_v42  ;;  %3198 = vmatprep.mubr.msk.f32.mxu0 %vm3819_vm0, %v3818_v0 }
  0x43   :  { %3194 = vmatprep.subr.mxu0 %v3818_v0 }
  0x44   :  { %3195 = vmatpush3.msra.mxu0 %v4028_v44 }
  0x45   :  { %3196 = vmatprep.subr.mxu0 %v3818_v0 }
  0x46   :  { %3197 = vmatpush3.msra.mxu0 %v4040_v45 }
  0x47   :  { %3231 = vmatprep.subr.mxu0 %v3818_v0 }
  0xee   :  { %v309_v14 = vpop.f32.mrf.mxu1 }
  0xf0   :  { %v3170_v15 = vpop.f32.mrf.mxu1 }
  0xf4   :  { %v3948_v16 = vpop.f32.mrf.mxu0 }
  0xf5   :  { %v202_v56 = vadd.f32 %v3948_v16, %v3953_v17 }
  0xf6   :  { %v196_v18 = vpop.f32.mrf.mxu0 }
  0xf7   :  { %v197_v19 = vadd.f32 %v3953_v17, %v196_v18 }
  0xf9   :  { %v313_v20 = vadd.f32 %v309_v14, %v197_v19  ;;  %v4060_v50 = vpop.f32.mrf.mxu0 }
  0xfb   :  { %3582 = vtanh.f32 %v313_v20  ;;  %v314_v22 = vmul.f32 0.5, %v313_v20  ;;  %v4062_v51 = vpop.f32.mrf.mxu0 }
  0xfd   :  { %3584 = vtanh.f32 %v314_v22  ;;  %v4064_v52 = vpop.f32.mrf.mxu0 }
  0xff   :  { %v4066_v53 = vpop.f32.mrf.mxu0 }
 0x101   :  { %v4068_v54 = vpop.f32.mrf.mxu0 }
 0x103   :  { %v4070_v55 = vpop.f32.mrf.mxu0 }
 0x108   :  { %v3583_v21 = vpop.eup %3582 }
 0x109   :  { %321 = vrot.lane.b32.xlu0 %v3583_v21, %s3820_s13 }
 0x10a   :  { %v3585_v23 = vpop.eup %3584 }
 0x10b   :  { %v316_v24 = vmul.f32 0.5, %v3585_v23 }
 0x10d   :  { %v317_v25 = vadd.f32 0.5, %v316_v24 }
 0x10f   :  { %v319_v28 = vmul.f32 0.0, %v317_v25 }
 0x17b   :  { %v322_v26 = vpop.permute.xlu0 %321 }
 0x17c   :  { %v324_v27 = vmul.f32 %v322_v26, %v317_v25  ;;  %v4091_v26 = vld [vmem:[#allocation4 + $0x38] sm:$0xff] }
 0x17e   :  { %326 = vrot.lane.b32.xlu0 %v324_v27, %s3820_s13  ;;  %v4093_v27 = vld [vmem:[#allocation4 + $0x30] sm:$0xff] }
 0x1f0   :  { %v327_v29 = vpop.permute.xlu0 %326 }
 0x1f1   :  { %v3958_v30 = vadd.f32 %v327_v29, %v319_v28  ;;  %v4097_v28 = vld [vmem:[#allocation4 + $0x28] sm:$0xff]  ;;  %v4101_v29 = vld [vmem:[#allocation4 + $0x20] sm:$0xff] }
 0x1f3   :  { %3586 = vtanh.f32 %v3958_v30 }
 0x200   :  { %v3587_v43 = vpop.eup %3586 }
 0x201   :  { %332 = vrot.lane.b32.xlu1 %v3587_v43, %s3820_s13 }
 0x273   :  { %v333_v46 = vpop.permute.xlu1 %332 }
 0x274   :  { %v335_v47 = vmul.f32 %v333_v46, %v317_v25 }
 0x276   :  { %337 = vrot.lane.b32.xlu1 %v335_v47, %s3821_s19 }
 0x2e8   :  { %v338_v48 = vpop.permute.xlu1 %337 }
 0x2e9   :  { %v444_v49 = vsel %vm239_vm3, %v338_v48, 0.0  ;;  %3180 = vmatmul.mubr.msk.f32.vlgmr.msra.gmra.mxu1 %vm239_vm3, %v338_v48 }
 0x2ea   :  { %3199 = vmatmul.mubr.msk.f32.vlgmr.msra.gmra.mxu0 %vm451_vm4, %v444_v49  ;;  %3202 = vmatpush3.msra.mxu1 %v3903_v3 }
 0x2eb   :  { %3203 = vmatprep.subr.mxu1 %v3818_v0  ;;  %3209 = vmatprep.mubr.msk.f32.mxu1 %vm3819_vm0, %v3818_v0 }
 0x2ec   :  { %3204 = vmatpush3.msra.mxu1 %v3909_v5  ;;  %3247 = vmatprep.mubr.msk.f32.mxu0 %vm3819_vm0, %v3818_v0 }
 0x2ed   :  { %3205 = vmatprep.subr.mxu1 %v3818_v0  ;;  %3232 = vmatpush3.msra.mxu0 %v4091_v26 }
 0x2ee   :  { %3206 = vmatpush3.msra.mxu1 %v3919_v8  ;;  %3233 = vmatprep.subr.mxu0 %v3818_v0 }
 0x2ef   :  { %3207 = vmatprep.subr.mxu1 %v3818_v0  ;;  %3234 = vmatpush3.msra.mxu0 %v4093_v27 }
 0x2f0   :  { %3208 = vmatpush3.msra.mxu1 %v3926_v10  ;;  %3235 = vmatprep.subr.mxu0 %v3818_v0 }
 0x2f1   :  { %3212 = vmatprep.subr.mxu1 %v3818_v0  ;;  %3236 = vmatpush3.msra.mxu0 %v4097_v28 }
 0x2f2   :  { %3237 = vmatprep.subr.mxu0 %v3818_v0 }
 0x2f3   :  { %3238 = vmatpush3.msra.mxu0 %v4101_v29 }
 0x2f4   :  { %3239 = vmatprep.subr.mxu0 %v3818_v0 }
 0x2f5   :  { %3240 = vmatpush3.msra.mxu0 %v4105_v32 }
 0x2f6   :  { %3241 = vmatprep.subr.mxu0 %v3818_v0 }
 0x2f7   :  { %3242 = vmatpush3.msra.mxu0 %v4113_v35 }
 0x2f8   :  { %3243 = vmatprep.subr.mxu0 %v3818_v0 }
 0x2f9   :  { %3244 = vmatpush3.msra.mxu0 %v4117_v37 }
 0x2fa   :  { %3245 = vmatprep.subr.mxu0 %v3818_v0 }
 0x2fb   :  { %3246 = vmatpush3.msra.mxu0 %v4121_v39 }
 0x2fc   :  { %3261 = vmatprep.subr.mxu0 %v3818_v0 }
 0x3a9   :  { %v407_v58 = vpop.f32.mrf.mxu1 }
 0x3aa   :  { %v411_v59 = vadd.f32 %v407_v58, %v202_v56  ;;  %v521_v60 = vpop.f32.mrf.mxu0 }
 0x3ab   :  { %v522_v61 = vadd.f32 %v4077_v57, %v521_v60  ;;  %v3181_v62 = vpop.f32.mrf.mxu1  ;;  %v207_v60 = vadd.f32 %v3953_v17, %v4062_v51 }
 0x3ac   :  { %3588 = vtanh.f32 %v411_v59  ;;  %v3200_v63 = vpop.f32.mrf.mxu0  ;;  %v412_v4 = vmul.f32 0.5, %v411_v59 }
 0x3ad   :  { %3590 = vtanh.f32 %v522_v61  ;;  %v525_v6 = vmul.f32 0.5, %v522_v61 }
 0x3ae   :  { %3592 = vtanh.f32 %v412_v4 }
 0x3af   :  { %3594 = vtanh.f32 %v525_v6 }
 0x3b9   :  { %v3589_v1 = vpop.eup %3588 }
 0x3ba   :  { %v3591_v2 = vpop.eup %3590  ;;  %419 = vrot.lane.b32.xlu0 %v3589_v1, %s3820_s13  ;;  %v4184_v1 = vld [vmem:[%s4855_s7] ss:$0 sm:$0xff] }
 0x3bb   :  { %532 = vrot.lane.b32.xlu1 %v3591_v2, %s3820_s13  ;;  %v3593_v7 = vpop.eup %3592 }
 0x3bc   :  { %v3595_v9 = vpop.eup %3594  ;;  %v414_v11 = vmul.f32 0.5, %v3593_v7 }
 0x3bd   :  { %v527_v12 = vmul.f32 0.5, %v3595_v9 }
 0x3be   :  { %v415_v13 = vadd.f32 0.5, %v414_v11 }
 0x3bf   :  { %v528_v15 = vadd.f32 0.5, %v527_v12 }
 0x3c0   :  { %v417_v20 = vmul.f32 %v415_v13, %v3958_v30 }
 0x3c1   :  { %v530_v22 = vmul.f32 0.0, %v528_v15 }
 0x42c   :  { %v420_v14 = vpop.permute.xlu0 %419 }
 0x42d   :  { %v422_v16 = vmul.f32 %v420_v14, %v415_v13  ;;  %v533_v18 = vpop.permute.xlu1 %532 }
 0x42e   :  { %v535_v19 = vmul.f32 %v533_v18, %v528_v15 }
 0x42f   :  { %424 = vrot.lane.b32.xlu0 %v422_v16, %s3820_s13 }
 0x430   :  { %537 = vrot.lane.b32.xlu1 %v535_v19, %s3820_s13 }
 0x4a1   :  { %v425_v21 = vpop.permute.xlu0 %424 }
 0x4a2   :  { %v4085_v23 = vadd.f32 %v425_v21, %v417_v20  ;;  %v538_v24 = vpop.permute.xlu1 %537 }
 0x4a3   :  { %v4087_v25 = vadd.f32 %v538_v24, %v530_v22 }
 0x4a4   :  { %3596 = vtanh.f32 %v4085_v23 }
 0x4a5   :  { %3598 = vtanh.f32 %v4087_v25 }
 0x4b1   :  { %v3597_v30 = vpop.eup %3596 }
 0x4b2   :  { %v3599_v34 = vpop.eup %3598  ;;  %430 = vrot.lane.b32.xlu0 %v3597_v30, %s3820_s13 }
 0x4b3   :  { %543 = vrot.lane.b32.xlu1 %v3599_v34, %s3820_s13 }
 0x524   :  { %v431_v41 = vpop.permute.xlu0 %430 }
 0x525   :  { %v433_v43 = vmul.f32 %v431_v41, %v415_v13  ;;  %v544_v46 = vpop.permute.xlu1 %543 }
 0x526   :  { %v546_v47 = vmul.f32 %v544_v46, %v528_v15 }
 0x527   :  { %548 = vrot.lane.b32.xlu0 %v433_v43, %s3821_s19 }
 0x528   :  { %647 = vrot.lane.b32.xlu1 %v546_v47, %s3822_s21 }
 0x52b   :  { %755 = vrot.lane.b32.xlu0 %v546_v47, %s3821_s19 }
 0x599   :  { %v549_v48 = vpop.permute.xlu0 %548 }
 0x59a   :  { %3210 = vmatmul.mubr.msk.f32.vlgmr.msra.gmra.mxu1 %vm239_vm3, %v549_v48  ;;  %v648_v58 = vpop.permute.xlu1 %647 }
 0x59b   :  { %3213 = vmatpush3.msra.mxu1 %v3964_v31  ;;  %3228 = vmatprep.mubr.msk.f32.mxu1 %vm3819_vm0, %v3818_v0  ;;  %v650_v59 = vsel %vm239_vm3, %v549_v48, %v648_v58 }
 0x59c   :  { %3214 = vmatprep.subr.mxu1 %v3818_v0 }
 0x59d   :  { %3215 = vmatpush3.msra.mxu1 %v3972_v33  ;;  %v756_v49 = vpop.permute.xlu0 %755 }
 0x59e   :  { %3216 = vmatprep.subr.mxu1 %v3818_v0  ;;  %v758_v56 = vsel %vm239_vm3, %v756_v49, 0.0 }
 0x59f   :  { %3217 = vmatpush3.msra.mxu1 %v3987_v36  ;;  %3248 = vmatmul.mubr.msk.f32.vlgmr.msra.gmra.mxu0 %vm451_vm4, %v758_v56 }
 0x5a0   :  { %3218 = vmatprep.subr.mxu1 %v3818_v0  ;;  %3262 = vmatpush3.msra.mxu0 %v3964_v31 }
 0x5a1   :  { %3219 = vmatpush3.msra.mxu1 %v3998_v38  ;;  %3263 = vmatprep.subr.mxu0 %v3818_v0 }
 0x5a2   :  { %3220 = vmatprep.subr.mxu1 %v3818_v0  ;;  %3264 = vmatpush3.msra.mxu0 %v3972_v33 }
 0x5a3   :  { %3221 = vmatpush3.msra.mxu1 %v4009_v40  ;;  %3265 = vmatprep.subr.mxu0 %v3818_v0 }
 0x5a4   :  { %3222 = vmatprep.subr.mxu1 %v3818_v0  ;;  %3266 = vmatpush3.msra.mxu0 %v3987_v36 }
 0x5a5   :  { %3223 = vmatpush3.msra.mxu1 %v4020_v42  ;;  %3267 = vmatprep.subr.mxu0 %v3818_v0 }
 0x5a6   :  { %3224 = vmatprep.subr.mxu1 %v3818_v0  ;;  %3268 = vmatpush3.msra.mxu0 %v3998_v38 }
 0x5a7   :  { %3225 = vmatpush3.msra.mxu1 %v4028_v44  ;;  %3269 = vmatprep.subr.mxu0 %v3818_v0 }
 0x5a8   :  { %3226 = vmatprep.subr.mxu1 %v3818_v0  ;;  %3270 = vmatpush3.msra.mxu0 %v4009_v40 }
 0x5a9   :  { %3227 = vmatpush3.msra.mxu1 %v4040_v45  ;;  %3271 = vmatprep.subr.mxu0 %v3818_v0 }
 0x5aa   :  { %3229 = vmatmul.mubr.msk.f32.vlgmr.msra.gmra.mxu1 %vm451_vm4, %v650_v59  ;;  %3250 = vmatprep.subr.mxu1 %v3818_v0 }
 0x5ab   :  { %3251 = vmatpush3.msra.mxu1 %v3903_v3  ;;  %3258 = vmatprep.mubr.msk.f32.mxu1 %vm3819_vm0, %v3818_v0 }
 0x5ac   :  { %3252 = vmatprep.subr.mxu1 %v3818_v0  ;;  %3272 = vmatpush3.msra.mxu0 %v4020_v42 }
 0x5ad   :  { %3253 = vmatpush3.msra.mxu1 %v3909_v5  ;;  %3273 = vmatprep.subr.mxu0 %v3818_v0 }
 0x5ae   :  { %3254 = vmatprep.subr.mxu1 %v3818_v0  ;;  %3274 = vmatpush3.msra.mxu0 %v4028_v44 }
 0x5af   :  { %3255 = vmatpush3.msra.mxu1 %v3919_v8  ;;  %3275 = vmatprep.subr.mxu0 %v3818_v0 }
 0x5b0   :  { %3256 = vmatprep.subr.mxu1 %v3818_v0  ;;  %3276 = vmatpush3.msra.mxu0 %v4040_v45 }
 0x5b1   :  { %3257 = vmatpush3.msra.mxu1 %v3926_v10  ;;  %3277 = vmatprep.mubr.msk.f32.mxu0 %vm3819_vm0, %v3818_v0 }
 0x5b2   :  { %3280 = vmatprep.subr.mxu1 %v3818_v0  ;;  %3299 = vmatprep.subr.mxu0 %v3818_v0 }
 0x65a   :  { %v618_v61 = vpop.f32.mrf.mxu1 }
 0x65b   :  { %v622_v62 = vadd.f32 %v618_v61, %v207_v60 }
 0x65c   :  { %v3211_v63 = vpop.f32.mrf.mxu1 }
 0x65d   :  { %3600 = vtanh.f32 %v622_v62  ;;  %v623_v14 = vmul.f32 0.5, %v622_v62 }
 0x65f   :  { %v834_v2 = vpop.f32.mrf.mxu0 }
 0x660   :  { %v835_v4 = vadd.f32 %v4184_v1, %v834_v2 }
 0x661   :  { %v3249_v6 = vpop.f32.mrf.mxu0 }
 0x662   :  { %3602 = vtanh.f32 %v835_v4  ;;  %v838_v15 = vmul.f32 0.5, %v835_v4 }
 0x66a   :  { %v3601_v7 = vpop.eup %3600  ;;  %v720_v9 = vpop.f32.mrf.mxu1 }
 0x66b   :  { %v721_v11 = vadd.f32 %v4077_v57, %v720_v9  ;;  %630 = vrot.lane.b32.xlu1 %v3601_v7, %s3820_s13 }
 0x66c   :  { %v3230_v51 = vpop.f32.mrf.mxu1 }
 0x66d   :  { %3604 = vtanh.f32 %v721_v11  ;;  %v724_v16 = vmul.f32 0.5, %v721_v11 }
 0x66e   :  { %3606 = vtanh.f32 %v623_v14 }
 0x66f   :  { %v3603_v12 = vpop.eup %3602  ;;  %3608 = vtanh.f32 %v838_v15 }
 0x670   :  { %845 = vrot.lane.b32.xlu1 %v3603_v12, %s3820_s13  ;;  %3610 = vtanh.f32 %v724_v16 }
 0x67a   :  { %v3605_v13 = vpop.eup %3604 }
 0x67b   :  { %731 = vrot.lane.b32.xlu0 %v3605_v13, %s3820_s13  ;;  %v3607_v18 = vpop.eup %3606 }
 0x67c   :  { %v625_v19 = vmul.f32 0.5, %v3607_v18  ;;  %v3609_v20 = vpop.eup %3608 }
 0x67d   :  { %v840_v24 = vmul.f32 0.5, %v3609_v20  ;;  %v3611_v46 = vpop.eup %3610 }
 0x67e   :  { %v626_v21 = vadd.f32 0.5, %v625_v19  ;;  %v726_v47 = vmul.f32 0.5, %v3611_v46 }
 0x67f   :  { %v841_v34 = vadd.f32 0.5, %v840_v24 }
 0x680   :  { %v727_v48 = vadd.f32 0.5, %v726_v47  ;;  %v628_v58 = vmul.f32 %v626_v21, %v4085_v23 }
 0x681   :  { %v843_v61 = vmul.f32 0.0, %v841_v34 }
 0x682   :  { %v729_v2 = vmul.f32 %v727_v48, %v4087_v25 }
 0x6dd   :  { %v631_v22 = vpop.permute.xlu1 %630 }
 0x6de   :  { %v633_v30 = vmul.f32 %v631_v22, %v626_v21  ;;  %v212_v22 = vadd.f32 %v4060_v50, %v3953_v17 }
 0x6e0   :  { %635 = vrot.lane.b32.xlu0 %v633_v30, %s3820_s13 }
 0x6e2   :  { %v846_v41 = vpop.permute.xlu1 %845 }
 0x6e3   :  { %v848_v43 = vmul.f32 %v846_v41, %v841_v34 }
 0x6e5   :  { %850 = vrot.lane.b32.xlu0 %v848_v43, %s3820_s13 }
 0x6ed   :  { %v732_v49 = vpop.permute.xlu0 %731 }
 0x6ee   :  { %v734_v56 = vmul.f32 %v732_v49, %v727_v48 }
 0x6f0   :  { %736 = vrot.lane.b32.xlu1 %v734_v56, %s3820_s13 }
 0x752   :  { %v636_v59 = vpop.permute.xlu0 %635 }
 0x753   :  { %v4195_v60 = vadd.f32 %v636_v59, %v628_v58 }
 0x755   :  { %3612 = vtanh.f32 %v4195_v60 }
 0x757   :  { %v851_v62 = vpop.permute.xlu0 %850 }
 0x758   :  { %v4198_v63 = vadd.f32 %v851_v62, %v843_v61 }
 0x75a   :  { %3614 = vtanh.f32 %v4198_v63 }
 0x762   :  { %v3613_v4 = vpop.eup %3612  ;;  %v737_v6 = vpop.permute.xlu1 %736 }
 0x763   :  { %v4202_v7 = vadd.f32 %v737_v6, %v729_v2  ;;  %641 = vrot.lane.b32.xlu1 %v3613_v4, %s3820_s13 }
 0x765   :  { %3616 = vtanh.f32 %v4202_v7 }
 0x767   :  { %v3615_v23 = vpop.eup %3614 }
 0x768   :  { %856 = vrot.lane.b32.xlu1 %v3615_v23, %s3820_s13 }
 0x772   :  { %v3617_v9 = vpop.eup %3616 }
 0x773   :  { %742 = vrot.lane.b32.xlu0 %v3617_v9, %s3820_s13 }
 0x7d5   :  { %v642_v11 = vpop.permute.xlu1 %641 }
 0x7d6   :  { %v644_v51 = vmul.f32 %v642_v11, %v626_v21 }
 0x7d8   :  { %861 = vrot.lane.b32.xlu0 %v644_v51, %s3821_s19 }
 0x7da   :  { %v857_v13 = vpop.permute.xlu1 %856 }
 0x7db   :  { %v4211_v14 = vmul.f32 %v857_v13, %v841_v34 }
 0x7e5   :  { %v743_v12 = vpop.permute.xlu0 %742 }
 0x7e6   :  { %v745_v25 = vmul.f32 %v743_v12, %v727_v48 }
 0x7e8   :  { %1059 = vrot.lane.b32.xlu0 %v745_v25, %s3821_s19  ;;  %960 = vrot.lane.b32.xlu1 %v745_v25, %s3822_s21 }
 0x7ec   :  { %1063 = vrot.lane.b32.xlu1 %v4211_v14, %s3822_s21 }
 0x84a   :  { %v862_v15 = vpop.permute.xlu0 %861 }
 0x84b   :  { %3259 = vmatmul.mubr.msk.f32.vlgmr.msra.gmra.mxu1 %vm239_vm3, %v862_v15 }
 0x84c   :  { %3281 = vmatpush3.msra.mxu1 %v4091_v26  ;;  %3296 = vmatprep.mubr.msk.f32.mxu1 %vm3819_vm0, %v3818_v0 }
 0x84d   :  { %3282 = vmatprep.subr.mxu1 %v3818_v0 }
 0x84e   :  { %3283 = vmatpush3.msra.mxu1 %v4093_v27 }
 0x84f   :  { %3284 = vmatprep.subr.mxu1 %v3818_v0 }
 0x850   :  { %3285 = vmatpush3.msra.mxu1 %v4097_v28 }
 0x851   :  { %3286 = vmatprep.subr.mxu1 %v3818_v0 }
 0x852   :  { %3287 = vmatpush3.msra.mxu1 %v4101_v29 }
 0x853   :  { %3288 = vmatprep.subr.mxu1 %v3818_v0 }
 0x854   :  { %3289 = vmatpush3.msra.mxu1 %v4105_v32 }
 0x855   :  { %3290 = vmatprep.subr.mxu1 %v3818_v0 }
 0x856   :  { %3291 = vmatpush3.msra.mxu1 %v4113_v35 }
 0x857   :  { %3292 = vmatprep.subr.mxu1 %v3818_v0 }
 0x858   :  { %3293 = vmatpush3.msra.mxu1 %v4117_v37 }
 0x859   :  { %3294 = vmatprep.subr.mxu1 %v3818_v0 }
 0x85a   :  { %v961_v16 = vpop.permute.xlu1 %960  ;;  %3295 = vmatpush3.msra.mxu1 %v4121_v39  ;;  %v1060_v19 = vpop.permute.xlu0 %1059 }
 0x85b   :  { %v963_v18 = vsel %vm239_vm3, %v862_v15, %v961_v16  ;;  %3310 = vmatprep.subr.mxu1 %v3818_v0 }
 0x85c   :  { %3278 = vmatmul.mubr.msk.f32.vlgmr.msra.gmra.mxu0 %vm451_vm4, %v963_v18 }
 0x85d   :  { %3300 = vmatpush3.msra.mxu0 %v3903_v3  ;;  %3307 = vmatprep.mubr.msk.f32.mxu0 %vm3819_vm0, %v3818_v0 }
 0x85e   :  { %v1064_v20 = vpop.permute.xlu1 %1063  ;;  %3301 = vmatprep.subr.mxu0 %v3818_v0 }
 0x85f   :  { %v1066_v21 = vsel %vm239_vm3, %v1060_v19, %v1064_v20  ;;  %3302 = vmatpush3.msra.mxu0 %v3909_v5 }
 0x860   :  { %3297 = vmatmul.mubr.msk.f32.vlgmr.msra.gmra.mxu1 %vm451_vm4, %v1066_v21  ;;  %3303 = vmatprep.subr.mxu0 %v3818_v0 }
 0x861   :  { %3304 = vmatpush3.msra.mxu0 %v3919_v8  ;;  %3311 = vmatpush3.msra.mxu1 %v3964_v31 }
 0x862   :  { %3305 = vmatprep.subr.mxu0 %v3818_v0  ;;  %3312 = vmatprep.subr.mxu1 %v3818_v0 }
 0x863   :  { %3306 = vmatpush3.msra.mxu0 %v3926_v10  ;;  %3313 = vmatpush3.msra.mxu1 %v3972_v33 }
 0x864   :  { %3314 = vmatprep.subr.mxu1 %v3818_v0  ;;  %3329 = vmatprep.subr.mxu0 %v3818_v0 }
 0x865   :  { %3315 = vmatpush3.msra.mxu1 %v3987_v36  ;;  %3326 = vmatprep.mubr.msk.f32.mxu1 %vm3819_vm0, %v3818_v0 }
 0x866   :  { %3316 = vmatprep.subr.mxu1 %v3818_v0 }
 0x867   :  { %3317 = vmatpush3.msra.mxu1 %v3998_v38 }
 0x868   :  { %3318 = vmatprep.subr.mxu1 %v3818_v0 }
 0x869   :  { %3319 = vmatpush3.msra.mxu1 %v4009_v40 }
 0x86a   :  { %3320 = vmatprep.subr.mxu1 %v3818_v0 }
 0x86b   :  { %3321 = vmatpush3.msra.mxu1 %v4020_v42 }
 0x86c   :  { %3322 = vmatprep.subr.mxu1 %v3818_v0 }
 0x86d   :  { %3323 = vmatpush3.msra.mxu1 %v4028_v44 }
 0x86e   :  { %3324 = vmatprep.subr.mxu1 %v3818_v0 }
 0x86f   :  { %3325 = vmatpush3.msra.mxu1 %v4040_v45 }
 0x870   :  { %3348 = vmatprep.subr.mxu1 %v3818_v0 }
 0x90b   :  { %v931_v24 = vpop.f32.mrf.mxu1 }
 0x90c   :  { %v935_v30 = vadd.f32 %v931_v24, %v212_v22 }
 0x90d   :  { %v3260_v34 = vpop.f32.mrf.mxu1 }
 0x90e   :  { %3618 = vtanh.f32 %v935_v30  ;;  %v936_v59 = vmul.f32 0.5, %v935_v30 }
 0x91b   :  { %v3619_v41 = vpop.eup %3618 }
 0x91c   :  { %v1033_v43 = vpop.f32.mrf.mxu0  ;;  %943 = vrot.lane.b32.xlu0 %v3619_v41, %s3820_s13 }
 0x91d   :  { %v1034_v46 = vadd.f32 %v4077_v57, %v1033_v43 }
 0x91e   :  { %v3279_v47 = vpop.f32.mrf.mxu0 }
 0x91f   :  { %3620 = vtanh.f32 %v1034_v46  ;;  %v1037_v62 = vmul.f32 0.5, %v1034_v46 }
 0x920   :  { %v1136_v48 = vpop.f32.mrf.mxu1 }
 0x921   :  { %v1137_v49 = vadd.f32 %v4184_v1, %v1136_v48 }
 0x922   :  { %v3298_v56 = vpop.f32.mrf.mxu1 }
 0x923   :  { %3622 = vtanh.f32 %v1137_v49  ;;  %v1140_v4 = vmul.f32 0.5, %v1137_v49 }
 0x924   :  { %3624 = vtanh.f32 %v936_v59 }
 0x925   :  { %3626 = vtanh.f32 %v1037_v62 }
 0x926   :  { %3628 = vtanh.f32 %v1140_v4 }
 0x92c   :  { %v3621_v58 = vpop.eup %3620 }
 0x92d   :  { %1044 = vrot.lane.b32.xlu1 %v3621_v58, %s3820_s13 }
 0x930   :  { %v3623_v50 = vpop.eup %3622 }
 0x931   :  { %1147 = vrot.lane.b32.xlu0 %v3623_v50, %s3820_s13  ;;  %v3625_v61 = vpop.eup %3624 }
 0x932   :  { %v938_v2 = vmul.f32 0.5, %v3625_v61  ;;  %v3627_v11 = vpop.eup %3626 }
 0x933   :  { %v1039_v51 = vmul.f32 0.5, %v3627_v11  ;;  %v3629_v12 = vpop.eup %3628 }
 0x934   :  { %v939_v6 = vadd.f32 0.5, %v938_v2  ;;  %v1142_v13 = vmul.f32 0.5, %v3629_v12 }
 0x935   :  { %v1040_v25 = vadd.f32 0.5, %v1039_v51 }
 0x936   :  { %v1143_v18 = vadd.f32 0.5, %v1142_v13  ;;  %v941_v21 = vmul.f32 %v939_v6, %v4195_v60 }
 0x937   :  { %v1042_v34 = vmul.f32 %v1040_v25, %v4202_v7 }
 0x938   :  { %v1145_v46 = vmul.f32 %v1143_v18, %v4198_v63 }
 0x98e   :  { %v944_v23 = vpop.permute.xlu0 %943 }
 0x98f   :  { %v946_v9 = vmul.f32 %v944_v23, %v939_v6 }
 0x991   :  { %948 = vrot.lane.b32.xlu1 %v946_v9, %s3820_s13 }
 0x99f   :  { %v1045_v15 = vpop.permute.xlu1 %1044 }
 0x9a0   :  { %v1047_v16 = vmul.f32 %v1045_v15, %v1040_v25 }
 0x9a2   :  { %1049 = vrot.lane.b32.xlu0 %v1047_v16, %s3820_s13 }
 0x9a3   :  { %v1148_v19 = vpop.permute.xlu0 %1147 }
 0x9a4   :  { %v1150_v20 = vmul.f32 %v1148_v19, %v1143_v18 }
 0x9a6   :  { %1152 = vrot.lane.b32.xlu1 %v1150_v20, %s3820_s13 }
 0xa03   :  { %v949_v22 = vpop.permute.xlu1 %948 }
 0xa04   :  { %v4277_v24 = vadd.f32 %v949_v22, %v941_v21 }
 0xa06   :  { %3630 = vtanh.f32 %v4277_v24 }
 0xa13   :  { %v3631_v30 = vpop.eup %3630 }
 0xa14   :  { %v1050_v41 = vpop.permute.xlu0 %1049  ;;  %954 = vrot.lane.b32.xlu0 %v3631_v30, %s3820_s13 }
 0xa15   :  { %v4282_v43 = vadd.f32 %v1050_v41, %v1042_v34 }
 0xa17   :  { %3632 = vtanh.f32 %v4282_v43 }
 0xa18   :  { %v1153_v47 = vpop.permute.xlu1 %1152 }
 0xa19   :  { %v4286_v48 = vadd.f32 %v1153_v47, %v1145_v46 }
 0xa1b   :  { %3634 = vtanh.f32 %v4286_v48 }
 0xa24   :  { %v3633_v60 = vpop.eup %3632 }
 0xa25   :  { %1055 = vrot.lane.b32.xlu1 %v3633_v60, %s3820_s13 }
 0xa28   :  { %v3635_v49 = vpop.eup %3634 }
 0xa29   :  { %1158 = vrot.lane.b32.xlu0 %v3635_v49, %s3820_s13 }
 0xa86   :  { %v955_v7 = vpop.permute.xlu0 %954 }
 0xa87   :  { %v957_v56 = vmul.f32 %v955_v7, %v939_v6 }
 0xa89   :  { %1163 = vrot.lane.b32.xlu1 %v957_v56, %s3821_s19 }
 0xa97   :  { %v1056_v58 = vpop.permute.xlu1 %1055 }
 0xa98   :  { %v1058_v50 = vmul.f32 %v1056_v58, %v1040_v25 }
 0xa9a   :  { %1361 = vrot.lane.b32.xlu1 %v1058_v50, %s3821_s19  ;;  %1262 = vrot.lane.b32.xlu0 %v1058_v50, %s3822_s21 }
 0xa9b   :  { %v1159_v63 = vpop.permute.xlu0 %1158 }
 0xa9c   :  { %v4294_v59 = vmul.f32 %v1159_v63, %v1143_v18 }
 0xa9e   :  { %1365 = vrot.lane.b32.xlu0 %v4294_v59, %s3822_s21 }
 0xafb   :  { %v1164_v61 = vpop.permute.xlu1 %1163 }
 0xafc   :  { %3308 = vmatmul.mubr.msk.f32.vlgmr.msra.gmra.mxu0 %vm239_vm3, %v1164_v61 }
 0xafd   :  { %3330 = vmatpush3.msra.mxu0 %v4091_v26  ;;  %3345 = vmatprep.mubr.msk.f32.mxu0 %vm3819_vm0, %v3818_v0 }
 0xafe   :  { %3331 = vmatprep.subr.mxu0 %v3818_v0 }
 0xaff   :  { %3332 = vmatpush3.msra.mxu0 %v4093_v27 }
 0xb00   :  { %3333 = vmatprep.subr.mxu0 %v3818_v0 }
 0xb01   :  { %3334 = vmatpush3.msra.mxu0 %v4097_v28 }
 0xb02   :  { %3335 = vmatprep.subr.mxu0 %v3818_v0 }
 0xb03   :  { %3336 = vmatpush3.msra.mxu0 %v4101_v29 }
 0xb04   :  { %3337 = vmatprep.subr.mxu0 %v3818_v0 }
 0xb05   :  { %3338 = vmatpush3.msra.mxu0 %v4105_v32 }
 0xb06   :  { %3339 = vmatprep.subr.mxu0 %v3818_v0 }
 0xb07   :  { %3340 = vmatpush3.msra.mxu0 %v4113_v35 }
 0xb08   :  { %3341 = vmatprep.subr.mxu0 %v3818_v0 }
 0xb09   :  { %3342 = vmatpush3.msra.mxu0 %v4117_v37 }
 0xb0a   :  { %3343 = vmatprep.subr.mxu0 %v3818_v0 }
 0xb0b   :  { %3344 = vmatpush3.msra.mxu0 %v4121_v39 }
 0xb0c   :  { %v1263_v62 = vpop.permute.xlu0 %1262  ;;  %3359 = vmatprep.subr.mxu0 %v3818_v0  ;;  %v1362_v4 = vpop.permute.xlu1 %1361 }
 0xb0d   :  { %v1265_v2 = vsel %vm239_vm3, %v1164_v61, %v1263_v62 }
 0xb0e   :  { %3327 = vmatmul.mubr.msk.f32.vlgmr.msra.gmra.mxu1 %vm451_vm4, %v1265_v2 }
 0xb0f   :  { %3349 = vmatpush3.msra.mxu1 %v3903_v3  ;;  %3356 = vmatprep.mubr.msk.f32.mxu1 %vm3819_vm0, %v3818_v0  ;;  %v217_v3 = vadd.f32 %v3953_v17, %v4066_v53 }
 0xb10   :  { %v1366_v6 = vpop.permute.xlu0 %1365  ;;  %3350 = vmatprep.subr.mxu1 %v3818_v0 }
 0xb11   :  { %v1368_v23 = vsel %vm239_vm3, %v1362_v4, %v1366_v6  ;;  %3351 = vmatpush3.msra.mxu1 %v3909_v5 }
 0xb12   :  { %3346 = vmatmul.mubr.msk.f32.vlgmr.msra.gmra.mxu0 %vm451_vm4, %v1368_v23  ;;  %3352 = vmatprep.subr.mxu1 %v3818_v0 }
 0xb13   :  { %3353 = vmatpush3.msra.mxu1 %v3919_v8  ;;  %3360 = vmatpush3.msra.mxu0 %v3964_v31 }
 0xb14   :  { %3354 = vmatprep.subr.mxu1 %v3818_v0  ;;  %3361 = vmatprep.subr.mxu0 %v3818_v0 }
 0xb15   :  { %3355 = vmatpush3.msra.mxu1 %v3926_v10  ;;  %3362 = vmatpush3.msra.mxu0 %v3972_v33 }
 0xb16   :  { %3363 = vmatprep.subr.mxu0 %v3818_v0  ;;  %3378 = vmatprep.subr.mxu1 %v3818_v0 }
 0xb17   :  { %3364 = vmatpush3.msra.mxu0 %v3987_v36  ;;  %3375 = vmatprep.mubr.msk.f32.mxu0 %vm3819_vm0, %v3818_v0 }
 0xb18   :  { %3365 = vmatprep.subr.mxu0 %v3818_v0 }
 0xb19   :  { %3366 = vmatpush3.msra.mxu0 %v3998_v38 }
 0xb1a   :  { %3367 = vmatprep.subr.mxu0 %v3818_v0 }
 0xb1b   :  { %3368 = vmatpush3.msra.mxu0 %v4009_v40 }
 0xb1c   :  { %3369 = vmatprep.subr.mxu0 %v3818_v0 }
 0xb1d   :  { %3370 = vmatpush3.msra.mxu0 %v4020_v42 }
 0xb1e   :  { %3371 = vmatprep.subr.mxu0 %v3818_v0 }
 0xb1f   :  { %3372 = vmatpush3.msra.mxu0 %v4028_v44 }
 0xb20   :  { %3373 = vmatprep.subr.mxu0 %v3818_v0 }
 0xb21   :  { %3374 = vmatpush3.msra.mxu0 %v4040_v45 }
 0xb22   :  { %3397 = vmatprep.subr.mxu0 %v3818_v0 }
 0xbbc   :  { %v1233_v5 = vpop.f32.mrf.mxu0 }
 0xbbd   :  { %v1237_v8 = vadd.f32 %v1233_v5, %v217_v3 }
 0xbbe   :  { %v3309_v10 = vpop.f32.mrf.mxu0 }
 0xbbf   :  { %3636 = vtanh.f32 %v1237_v8  ;;  %v1238_v53 = vmul.f32 0.5, %v1237_v8  ;;  %v4429_v8 = vld [vmem:[%s4852_s4 + $0x38] sm:$0xff]  ;;  %v4437_v10 = vld [vmem:[%s4850_s2] sm:$0xff] }
 0xbcc   :  { %v3637_v31 = vpop.eup %3636 }
 0xbcd   :  { %1245 = vrot.lane.b32.xlu1 %v3637_v31, %s3820_s13  ;;  %v4443_v31 = vld [vmem:[%s4852_s4 + $0x30] sm:$0xff] }
 0xbce   :  { %v1335_v33 = vpop.f32.mrf.mxu1 }
 0xbcf   :  { %v1336_v36 = vadd.f32 %v4077_v57, %v1335_v33  ;;  %v4451_v33 = vld [vmem:[%s4852_s4 + $0x28] sm:$0xff] }
 0xbd0   :  { %v3328_v38 = vpop.f32.mrf.mxu1 }
 0xbd1   :  { %3638 = vtanh.f32 %v1336_v36  ;;  %v1339_v11 = vmul.f32 0.5, %v1336_v36  ;;  %v4460_v36 = vld [vmem:[%s4852_s4 + $0x20] sm:$0xff]  ;;  %v4467_v38 = vld [vmem:[%s4852_s4 + $0x18] sm:$0xff] }
 0xbd2   :  { %v1438_v40 = vpop.f32.mrf.mxu0 }
 0xbd3   :  { %v1439_v42 = vadd.f32 %v4184_v1, %v1438_v40  ;;  %v4474_v40 = vld [vmem:[%s4852_s4 + $0x10] sm:$0xff] }
 0xbd4   :  { %v3347_v44 = vpop.f32.mrf.mxu0 }
 0xbd5   :  { %3640 = vtanh.f32 %v1439_v42  ;;  %v1442_v12 = vmul.f32 0.5, %v1439_v42  ;;  %v4481_v42 = vld [vmem:[%s4852_s4 + $0x8] sm:$0xff]  ;;  %v4488_v44 = vld [vmem:[%s4852_s4] sm:$0xff] }
 0xbd6   :  { %3642 = vtanh.f32 %v1238_v53 }
 0xbd7   :  { %3644 = vtanh.f32 %v1339_v11 }
 0xbd8   :  { %3646 = vtanh.f32 %v1442_v12 }
 0xbde   :  { %v3639_v45 = vpop.eup %3638 }
 0xbdf   :  { %1346 = vrot.lane.b32.xlu0 %v3639_v45, %s3820_s13  ;;  %v4495_v45 = vld [vmem:[%s4851_s3] ss:$0 sm:$0xff] }
 0xbe2   :  { %v3641_v17 = vpop.eup %3640 }
 0xbe3   :  { %1449 = vrot.lane.b32.xlu1 %v3641_v17, %s3820_s13  ;;  %v3643_v9 = vpop.eup %3642  ;;  %v222_v17 = vadd.f32 %v4495_v45, %v4064_v52 }
 0xbe4   :  { %v1240_v51 = vmul.f32 0.5, %v3643_v9  ;;  %v3645_v16 = vpop.eup %3644 }
 0xbe5   :  { %v1341_v18 = vmul.f32 0.5, %v3645_v16  ;;  %v3647_v19 = vpop.eup %3646 }
 0xbe6   :  { %v1241_v25 = vadd.f32 0.5, %v1240_v51  ;;  %v1444_v21 = vmul.f32 0.5, %v3647_v19 }
 0xbe7   :  { %v1342_v20 = vadd.f32 0.5, %v1341_v18 }
 0xbe8   :  { %v1445_v34 = vadd.f32 0.5, %v1444_v21  ;;  %v1243_v47 = vmul.f32 %v1241_v25, %v4277_v24 }
 0xbe9   :  { %v1344_v56 = vmul.f32 %v1342_v20, %v4282_v43 }
 0xbea   :  { %v1447_v63 = vmul.f32 %v1445_v34, %v4286_v48 }
 0xc3f   :  { %v1246_v13 = vpop.permute.xlu1 %1245 }
 0xc40   :  { %v1248_v15 = vmul.f32 %v1246_v13, %v1241_v25 }
 0xc42   :  { %1250 = vrot.lane.b32.xlu0 %v1248_v15, %s3820_s13 }
 0xc51   :  { %v1347_v22 = vpop.permute.xlu0 %1346 }
 0xc52   :  { %v1349_v30 = vmul.f32 %v1347_v22, %v1342_v20 }
 0xc54   :  { %1351 = vrot.lane.b32.xlu1 %v1349_v30, %s3820_s13 }
 0xc55   :  { %v1450_v41 = vpop.permute.xlu1 %1449 }
 0xc56   :  { %v1452_v46 = vmul.f32 %v1450_v41, %v1445_v34 }
 0xc58   :  { %1454 = vrot.lane.b32.xlu0 %v1452_v46, %s3820_s13 }
 0xcb4   :  { %v1251_v60 = vpop.permute.xlu0 %1250 }
 0xcb5   :  { %v4360_v49 = vadd.f32 %v1251_v60, %v1243_v47 }
 0xcb7   :  { %3648 = vtanh.f32 %v4360_v49 }
 0xcc4   :  { %v3649_v7 = vpop.eup %3648 }
 0xcc5   :  { %1256 = vrot.lane.b32.xlu1 %v3649_v7, %s3820_s13 }
 0xcc6   :  { %v1352_v58 = vpop.permute.xlu1 %1351 }
 0xcc7   :  { %v4365_v50 = vadd.f32 %v1352_v58, %v1344_v56 }
 0xcc9   :  { %3650 = vtanh.f32 %v4365_v50 }
 0xcca   :  { %v1455_v61 = vpop.permute.xlu0 %1454 }
 0xccb   :  { %v4369_v62 = vadd.f32 %v1455_v61, %v1447_v63 }
 0xccd   :  { %3652 = vtanh.f32 %v4369_v62 }
 0xcd6   :  { %v3651_v24 = vpop.eup %3650 }
 0xcd7   :  { %1357 = vrot.lane.b32.xlu0 %v3651_v24, %s3820_s13 }
 0xcda   :  { %v3653_v2 = vpop.eup %3652 }
 0xcdb   :  { %1460 = vrot.lane.b32.xlu1 %v3653_v2, %s3820_s13 }
 0xd37   :  { %v1257_v4 = vpop.permute.xlu1 %1256 }
 0xd38   :  { %v1259_v43 = vmul.f32 %v1257_v4, %v1241_v25 }
 0xd3a   :  { %1465 = vrot.lane.b32.xlu0 %v1259_v43, %s3821_s19 }
 0xd49   :  { %v1358_v6 = vpop.permute.xlu0 %1357 }
 0xd4a   :  { %v1360_v23 = vmul.f32 %v1358_v6, %v1342_v20 }
 0xd4c   :  { %1663 = vrot.lane.b32.xlu0 %v1360_v23, %s3821_s19  ;;  %1564 = vrot.lane.b32.xlu1 %v1360_v23, %s3822_s21 }
 0xd4d   :  { %v1461_v48 = vpop.permute.xlu1 %1460 }
 0xd4e   :  { %v4377_v3 = vmul.f32 %v1461_v48, %v1445_v34 }
 0xd50   :  { %1667 = vrot.lane.b32.xlu1 %v4377_v3, %s3822_s21 }
 0xdac   :  { %v1466_v5 = vpop.permute.xlu0 %1465 }
 0xdad   :  { %3357 = vmatmul.mubr.msk.f32.vlgmr.msra.gmra.mxu1 %vm239_vm3, %v1466_v5 }
 0xdae   :  { %3379 = vmatpush3.msra.mxu1 %v4091_v26  ;;  %3394 = vmatprep.mubr.msk.f32.mxu1 %vm3819_vm0, %v3818_v0 }
 0xdaf   :  { %3380 = vmatprep.subr.mxu1 %v3818_v0 }
 0xdb0   :  { %3381 = vmatpush3.msra.mxu1 %v4093_v27 }
 0xdb1   :  { %3382 = vmatprep.subr.mxu1 %v3818_v0 }
 0xdb2   :  { %3383 = vmatpush3.msra.mxu1 %v4097_v28  ;;  %v4405_v28 = vld [vmem:[%s4850_s2 + $0x18] sm:$0xff] }
 0xdb3   :  { %3384 = vmatprep.subr.mxu1 %v3818_v0 }
 0xdb4   :  { %3385 = vmatpush3.msra.mxu1 %v4101_v29 }
 0xdb5   :  { %3386 = vmatprep.subr.mxu1 %v3818_v0 }
 0xdb6   :  { %3387 = vmatpush3.msra.mxu1 %v4105_v32 }
 0xdb7   :  { %3388 = vmatprep.subr.mxu1 %v3818_v0 }
 0xdb8   :  { %3389 = vmatpush3.msra.mxu1 %v4113_v35 }
 0xdb9   :  { %3390 = vmatprep.subr.mxu1 %v3818_v0 }
 0xdba   :  { %3391 = vmatpush3.msra.mxu1 %v4117_v37  ;;  %v4415_v37 = vld [vmem:[%s4850_s2 + $0x10] sm:$0xff] }
 0xdbb   :  { %3392 = vmatprep.subr.mxu1 %v3818_v0 }
 0xdbc   :  { %3393 = vmatpush3.msra.mxu1 %v4121_v39  ;;  %v4423_v39 = vld [vmem:[%s4850_s2 + $0x8] sm:$0xff] }
 0xdbd   :  { %3408 = vmatprep.subr.mxu1 %v3818_v0 }
 0xdbe   :  { %v1565_v26 = vpop.permute.xlu1 %1564  ;;  %v1664_v29 = vpop.permute.xlu0 %1663 }
 0xdbf   :  { %v1567_v27 = vsel %vm239_vm3, %v1466_v5, %v1565_v26 }
 0xdc0   :  { %3376 = vmatmul.mubr.msk.f32.vlgmr.msra.gmra.mxu0 %vm451_vm4, %v1567_v27 }
 0xdc1   :  { %3398 = vmatpush3.msra.mxu0 %v4405_v28  ;;  %3405 = vmatprep.mubr.msk.f32.mxu0 %vm3819_vm0, %v3818_v0 }
 0xdc2   :  { %v1668_v32 = vpop.permute.xlu1 %1667  ;;  %3399 = vmatprep.subr.mxu0 %v3818_v0 }
 0xdc3   :  { %v1670_v35 = vsel %vm239_vm3, %v1664_v29, %v1668_v32  ;;  %3400 = vmatpush3.msra.mxu0 %v4415_v37 }
 0xdc4   :  { %3395 = vmatmul.mubr.msk.f32.vlgmr.msra.gmra.mxu1 %vm451_vm4, %v1670_v35  ;;  %3401 = vmatprep.subr.mxu0 %v3818_v0 }
 0xdc5   :  { %3402 = vmatpush3.msra.mxu0 %v4423_v39  ;;  %3409 = vmatpush3.msra.mxu1 %v4429_v8 }
 0xdc6   :  { %3403 = vmatprep.subr.mxu0 %v3818_v0  ;;  %3410 = vmatprep.subr.mxu1 %v3818_v0 }
 0xdc7   :  { %3404 = vmatpush3.msra.mxu0 %v4437_v10  ;;  %3411 = vmatpush3.msra.mxu1 %v4443_v31 }
 0xdc8   :  { %3412 = vmatprep.subr.mxu1 %v3818_v0  ;;  %3427 = vmatprep.subr.mxu0 %v3818_v0 }
 0xdc9   :  { %3413 = vmatpush3.msra.mxu1 %v4451_v33  ;;  %3424 = vmatprep.mubr.msk.f32.mxu1 %vm3819_vm0, %v3818_v0 }
 0xdca   :  { %3414 = vmatprep.subr.mxu1 %v3818_v0 }
 0xdcb   :  { %3415 = vmatpush3.msra.mxu1 %v4460_v36 }
 0xdcc   :  { %3416 = vmatprep.subr.mxu1 %v3818_v0 }
 0xdcd   :  { %3417 = vmatpush3.msra.mxu1 %v4467_v38 }
 0xdce   :  { %3418 = vmatprep.subr.mxu1 %v3818_v0 }
 0xdcf   :  { %3419 = vmatpush3.msra.mxu1 %v4474_v40 }
 0xdd0   :  { %3420 = vmatprep.subr.mxu1 %v3818_v0 }
 0xdd1   :  { %3421 = vmatpush3.msra.mxu1 %v4481_v42 }
 0xdd2   :  { %3422 = vmatprep.subr.mxu1 %v3818_v0 }
 0xdd3   :  { %3423 = vmatpush3.msra.mxu1 %v4488_v44 }
 0xdd4   :  { %3446 = vmatprep.subr.mxu1 %v3818_v0 }
 0xe6d   :  { %v1535_v53 = vpop.f32.mrf.mxu1 }
 0xe6e   :  { %v1539_v9 = vadd.f32 %v1535_v53, %v222_v17 }
 0xe6f   :  { %v3358_v11 = vpop.f32.mrf.mxu1 }
 0xe70   :  { %3654 = vtanh.f32 %v1539_v9  ;;  %v1540_v20 = vmul.f32 0.5, %v1539_v9 }
 0xe7d   :  { %v3655_v51 = vpop.eup %3654 }
 0xe7e   :  { %1547 = vrot.lane.b32.xlu0 %v3655_v51, %s3820_s13 }
 0xe80   :  { %v1637_v12 = vpop.f32.mrf.mxu0 }
 0xe81   :  { %v1638_v25 = vadd.f32 %v4077_v57, %v1637_v12 }
 0xe82   :  { %v3377_v13 = vpop.f32.mrf.mxu0 }
 0xe83   :  { %3656 = vtanh.f32 %v1638_v25  ;;  %v1641_v22 = vmul.f32 0.5, %v1638_v25  ;;  %v4530_v25 = vld [vmem:[#allocation4 + $0x38] sm:$0xff]  ;;  %v4536_v13 = vld [vmem:[#allocation4 + $0x30] sm:$0xff] }
 0xe84   :  { %v1740_v15 = vpop.f32.mrf.mxu1 }
 0xe85   :  { %v1741_v16 = vadd.f32 %v4184_v1, %v1740_v15  ;;  %v4540_v15 = vld [vmem:[#allocation4 + $0x28] sm:$0xff] }
 0xe86   :  { %v3396_v18 = vpop.f32.mrf.mxu1 }
 0xe87   :  { %3658 = vtanh.f32 %v1741_v16  ;;  %v1744_v57 = vmul.f32 0.5, %v1741_v16  ;;  %v4544_v16 = vld [vmem:[#allocation4 + $0x20] sm:$0xff]  ;;  %v4548_v18 = vld [vmem:[#allocation4 + $0x18] sm:$0xff] }
 0xe88   :  { %3660 = vtanh.f32 %v1540_v20  ;;  %v4560_v20 = vld [vmem:[#allocation4] sm:$0xff] }
 0xe89   :  { %3662 = vtanh.f32 %v1641_v22 }
 0xe8a   :  { %3664 = vtanh.f32 %v1744_v57 }
 0xe90   :  { %v3657_v19 = vpop.eup %3656 }
 0xe91   :  { %1648 = vrot.lane.b32.xlu1 %v3657_v19, %s3820_s13  ;;  %v4552_v19 = vld [vmem:[#allocation4 + $0x10] sm:$0xff] }
 0xe94   :  { %v3659_v52 = vpop.eup %3658 }
 0xe95   :  { %1751 = vrot.lane.b32.xlu0 %v3659_v52, %s3820_s13  ;;  %v3661_v21 = vpop.eup %3660  ;;  %v4556_v52 = vld [vmem:[#allocation4 + $0x8] sm:$0xff] }
 0xe96   :  { %v1542_v30 = vmul.f32 0.5, %v3661_v21  ;;  %v3663_v47 = vpop.eup %3662 }
 0xe97   :  { %v1643_v60 = vmul.f32 0.5, %v3663_v47  ;;  %v3665_v7 = vpop.eup %3664  ;;  %v4602_v47 = vld [vmem:[%s4853_s5] ss:$0 sm:$0xff] }
 0xe98   :  { %v1543_v34 = vadd.f32 0.5, %v1542_v30  ;;  %v1746_v58 = vmul.f32 0.5, %v3665_v7 }
 0xe99   :  { %v1644_v56 = vadd.f32 0.5, %v1643_v60 }
 0xe9a   :  { %v1747_v24 = vadd.f32 0.5, %v1746_v58  ;;  %v1545_v43 = vmul.f32 %v1543_v34, %v4360_v49 }
 0xe9b   :  { %v1646_v5 = vmul.f32 %v1644_v56, %v4365_v50 }
 0xe9c   :  { %v1749_v29 = vmul.f32 %v1747_v24, %v4369_v62 }
 0xef0   :  { %v1548_v41 = vpop.permute.xlu0 %1547 }
 0xef1   :  { %v1550_v46 = vmul.f32 %v1548_v41, %v1543_v34 }
 0xef3   :  { %1552 = vrot.lane.b32.xlu1 %v1550_v46, %s3820_s13 }
 0xf03   :  { %v1649_v63 = vpop.permute.xlu1 %1648 }
 0xf04   :  { %v1651_v61 = vmul.f32 %v1649_v63, %v1644_v56 }
 0xf06   :  { %1653 = vrot.lane.b32.xlu0 %v1651_v61, %s3820_s13 }
 0xf07   :  { %v1752_v2 = vpop.permute.xlu0 %1751 }
 0xf08   :  { %v1754_v4 = vmul.f32 %v1752_v2, %v1747_v24 }
 0xf0a   :  { %1756 = vrot.lane.b32.xlu1 %v1754_v4, %s3820_s13 }
 0xf65   :  { %v1553_v6 = vpop.permute.xlu1 %1552 }
 0xf66   :  { %v4508_v23 = vadd.f32 %v1553_v6, %v1545_v43 }
 0xf68   :  { %3666 = vtanh.f32 %v4508_v23 }
 0xf75   :  { %v3667_v48 = vpop.eup %3666 }
 0xf76   :  { %1558 = vrot.lane.b32.xlu0 %v3667_v48, %s3820_s13 }
 0xf78   :  { %v1654_v26 = vpop.permute.xlu0 %1653 }
 0xf79   :  { %v4513_v27 = vadd.f32 %v1654_v26, %v1646_v5 }
 0xf7b   :  { %3668 = vtanh.f32 %v4513_v27 }
 0xf7c   :  { %v1757_v32 = vpop.permute.xlu1 %1756 }
 0xf7d   :  { %v4517_v35 = vadd.f32 %v1757_v32, %v1749_v29 }
 0xf7f   :  { %3670 = vtanh.f32 %v4517_v35 }
 0xf88   :  { %v3669_v49 = vpop.eup %3668 }
 0xf89   :  { %1659 = vrot.lane.b32.xlu1 %v3669_v49, %s3820_s13 }
 0xf8c   :  { %v3671_v17 = vpop.eup %3670 }
 0xf8d   :  { %1762 = vrot.lane.b32.xlu0 %v3671_v17, %s3820_s13 }
 0xfe8   :  { %v1559_v53 = vpop.permute.xlu0 %1558 }
 0xfe9   :  { %v1561_v50 = vmul.f32 %v1559_v53, %v1543_v34 }
 0xfeb   :  { %1767 = vrot.lane.b32.xlu1 %v1561_v50, %s3821_s19 }
 0xffb   :  { %v1660_v9 = vpop.permute.xlu1 %1659 }
 0xffc   :  { %v1662_v11 = vmul.f32 %v1660_v9, %v1644_v56 }
 0xffe   :  { %1965 = vrot.lane.b32.xlu1 %v1662_v11, %s3821_s19  ;;  %1866 = vrot.lane.b32.xlu0 %v1662_v11, %s3822_s21 }
 0xfff   :  { %v1763_v62 = vpop.permute.xlu0 %1762 }
0x1000   :  { %v4525_v51 = vmul.f32 %v1763_v62, %v1747_v24 }
0x1002   :  { %1969 = vrot.lane.b32.xlu0 %v4525_v51, %s3822_s21 }
0x105d   :  { %v1768_v12 = vpop.permute.xlu1 %1767 }
0x105e   :  { %3406 = vmatmul.mubr.msk.f32.vlgmr.msra.gmra.mxu0 %vm239_vm3, %v1768_v12 }
0x105f   :  { %3428 = vmatpush3.msra.mxu0 %v4530_v25  ;;  %3443 = vmatprep.mubr.msk.f32.mxu0 %vm3819_vm0, %v3818_v0 }
0x1060   :  { %3429 = vmatprep.subr.mxu0 %v3818_v0 }
0x1061   :  { %3430 = vmatpush3.msra.mxu0 %v4536_v13 }
0x1062   :  { %3431 = vmatprep.subr.mxu0 %v3818_v0 }
0x1063   :  { %3432 = vmatpush3.msra.mxu0 %v4540_v15 }
0x1064   :  { %3433 = vmatprep.subr.mxu0 %v3818_v0 }
0x1065   :  { %3434 = vmatpush3.msra.mxu0 %v4544_v16 }
0x1066   :  { %3435 = vmatprep.subr.mxu0 %v3818_v0 }
0x1067   :  { %3436 = vmatpush3.msra.mxu0 %v4548_v18 }
0x1068   :  { %3437 = vmatprep.subr.mxu0 %v3818_v0 }
0x1069   :  { %3438 = vmatpush3.msra.mxu0 %v4552_v19 }
0x106a   :  { %3439 = vmatprep.subr.mxu0 %v3818_v0 }
0x106b   :  { %3440 = vmatpush3.msra.mxu0 %v4556_v52 }
0x106c   :  { %3441 = vmatprep.subr.mxu0 %v3818_v0 }
0x106d   :  { %3442 = vmatpush3.msra.mxu0 %v4560_v20 }
0x106e   :  { %3457 = vmatprep.subr.mxu0 %v3818_v0 }
0x1070   :  { %v1867_v21 = vpop.permute.xlu0 %1866  ;;  %v1966_v30 = vpop.permute.xlu1 %1965 }
0x1071   :  { %v1869_v22 = vsel %vm239_vm3, %v1768_v12, %v1867_v21 }
0x1072   :  { %3425 = vmatmul.mubr.msk.f32.vlgmr.msra.gmra.mxu1 %vm451_vm4, %v1869_v22 }
0x1073   :  { %3447 = vmatpush3.msra.mxu1 %v4405_v28  ;;  %3454 = vmatprep.mubr.msk.f32.mxu1 %vm3819_vm0, %v3818_v0  ;;  %v227_v28 = vadd.f32 %v4495_v45, %v4070_v55 }
0x1074   :  { %v1970_v57 = vpop.permute.xlu0 %1969  ;;  %3448 = vmatprep.subr.mxu1 %v3818_v0 }
0x1075   :  { %v1972_v34 = vsel %vm239_vm3, %v1966_v30, %v1970_v57  ;;  %3449 = vmatpush3.msra.mxu1 %v4415_v37 }
0x1076   :  { %3444 = vmatmul.mubr.msk.f32.vlgmr.msra.gmra.mxu0 %vm451_vm4, %v1972_v34  ;;  %3450 = vmatprep.subr.mxu1 %v3818_v0 }
0x1077   :  { %3451 = vmatpush3.msra.mxu1 %v4423_v39  ;;  %3458 = vmatpush3.msra.mxu0 %v4429_v8 }
0x1078   :  { %3452 = vmatprep.subr.mxu1 %v3818_v0  ;;  %3459 = vmatprep.subr.mxu0 %v3818_v0 }
0x1079   :  { %3453 = vmatpush3.msra.mxu1 %v4437_v10  ;;  %3460 = vmatpush3.msra.mxu0 %v4443_v31 }
0x107a   :  { %3461 = vmatprep.subr.mxu0 %v3818_v0  ;;  %3476 = vmatprep.subr.mxu1 %v3818_v0 }
0x107b   :  { %3462 = vmatpush3.msra.mxu0 %v4451_v33  ;;  %3473 = vmatprep.mubr.msk.f32.mxu0 %vm3819_vm0, %v3818_v0 }
0x107c   :  { %3463 = vmatprep.subr.mxu0 %v3818_v0 }
0x107d   :  { %3464 = vmatpush3.msra.mxu0 %v4460_v36 }
0x107e   :  { %3465 = vmatprep.subr.mxu0 %v3818_v0 }
0x107f   :  { %3466 = vmatpush3.msra.mxu0 %v4467_v38 }
0x1080   :  { %3467 = vmatprep.subr.mxu0 %v3818_v0 }
0x1081   :  { %3468 = vmatpush3.msra.mxu0 %v4474_v40 }
0x1082   :  { %3469 = vmatprep.subr.mxu0 %v3818_v0 }
0x1083   :  { %3470 = vmatpush3.msra.mxu0 %v4481_v42 }
0x1084   :  { %3471 = vmatprep.subr.mxu0 %v3818_v0 }
0x1085   :  { %3472 = vmatpush3.msra.mxu0 %v4488_v44 }
0x1086   :  { %3495 = vmatprep.subr.mxu0 %v3818_v0 }
0x111e   :  { %v1837_v37 = vpop.f32.mrf.mxu0 }
0x111f   :  { %v1841_v39 = vadd.f32 %v1837_v37, %v227_v28 }
0x1120   :  { %v3407_v10 = vpop.f32.mrf.mxu0 }
0x1121   :  { %3672 = vtanh.f32 %v1841_v39  ;;  %v1842_v24 = vmul.f32 0.5, %v1841_v39 }
0x112e   :  { %v3673_v41 = vpop.eup %3672 }
0x112f   :  { %1849 = vrot.lane.b32.xlu1 %v3673_v41, %s3820_s13 }
0x1132   :  { %v1939_v46 = vpop.f32.mrf.mxu1 }
0x1133   :  { %v1940_v60 = vadd.f32 %v4602_v47, %v1939_v46 }
0x1134   :  { %v3426_v7 = vpop.f32.mrf.mxu1 }
0x1135   :  { %3674 = vtanh.f32 %v1940_v60  ;;  %v1943_v4 = vmul.f32 0.5, %v1940_v60 }
0x1136   :  { %v2042_v56 = vpop.f32.mrf.mxu0 }
0x1137   :  { %v2043_v55 = vadd.f32 %v4184_v1, %v2042_v56 }
0x1138   :  { %v3445_v58 = vpop.f32.mrf.mxu0 }
0x1139   :  { %3676 = vtanh.f32 %v2043_v55  ;;  %v2046_v6 = vmul.f32 0.5, %v2043_v55 }
0x113a   :  { %3678 = vtanh.f32 %v1842_v24 }
0x113b   :  { %3680 = vtanh.f32 %v1943_v4 }
0x113c   :  { %3682 = vtanh.f32 %v2046_v6 }
0x1142   :  { %v3675_v63 = vpop.eup %3674 }
0x1143   :  { %1950 = vrot.lane.b32.xlu0 %v3675_v63, %s3820_s13 }
0x1146   :  { %v3677_v61 = vpop.eup %3676 }
0x1147   :  { %2053 = vrot.lane.b32.xlu1 %v3677_v61, %s3820_s13  ;;  %v3679_v2 = vpop.eup %3678 }
0x1148   :  { %v1844_v43 = vmul.f32 0.5, %v3679_v2  ;;  %v3681_v1 = vpop.eup %3680 }
0x1149   :  { %v1945_v29 = vmul.f32 0.5, %v3681_v1  ;;  %v3683_v32 = vpop.eup %3682 }
0x114a   :  { %v1845_v48 = vadd.f32 0.5, %v1844_v43  ;;  %v2048_v17 = vmul.f32 0.5, %v3683_v32  ;;  %v4698_v43 = vld [vmem:[%s4855_s7] ss:$0 sm:$0xff] }
0x114b   :  { %v1946_v49 = vadd.f32 0.5, %v1945_v29 }
0x114c   :  { %v2049_v9 = vadd.f32 0.5, %v2048_v17  ;;  %v1847_v12 = vmul.f32 %v1845_v48, %v4508_v23 }
0x114d   :  { %v1948_v57 = vmul.f32 %v1946_v49, %v4513_v27 }
0x114e   :  { %v2051_v37 = vmul.f32 %v2049_v9, %v4517_v35 }
0x11a1   :  { %v1850_v5 = vpop.permute.xlu1 %1849 }
0x11a2   :  { %v1852_v26 = vmul.f32 %v1850_v5, %v1845_v48 }
0x11a4   :  { %1854 = vrot.lane.b32.xlu0 %v1852_v26, %s3820_s13 }
0x11b5   :  { %v1951_v53 = vpop.permute.xlu0 %1950 }
0x11b6   :  { %v1953_v50 = vmul.f32 %v1951_v53, %v1946_v49 }
0x11b8   :  { %1955 = vrot.lane.b32.xlu1 %v1953_v50, %s3820_s13 }
0x11b9   :  { %v2054_v11 = vpop.permute.xlu1 %2053 }
0x11ba   :  { %v2056_v62 = vmul.f32 %v2054_v11, %v2049_v9 }
0x11bc   :  { %2058 = vrot.lane.b32.xlu0 %v2056_v62, %s3820_s13 }
0x1216   :  { %v1855_v21 = vpop.permute.xlu0 %1854 }
0x1217   :  { %v4612_v22 = vadd.f32 %v1855_v21, %v1847_v12 }
0x1219   :  { %3684 = vtanh.f32 %v4612_v22 }
0x1226   :  { %v3685_v30 = vpop.eup %3684 }
0x1227   :  { %1860 = vrot.lane.b32.xlu1 %v3685_v30, %s3820_s13 }
0x122a   :  { %v1956_v34 = vpop.permute.xlu1 %1955 }
0x122b   :  { %v4617_v28 = vadd.f32 %v1956_v34, %v1948_v57 }
0x122d   :  { %3686 = vtanh.f32 %v4617_v28 }
0x122e   :  { %v2059_v39 = vpop.permute.xlu0 %2058 }
0x122f   :  { %v4621_v10 = vadd.f32 %v2059_v39, %v2051_v37 }
0x1231   :  { %3688 = vtanh.f32 %v4621_v10 }
0x123a   :  { %v3687_v23 = vpop.eup %3686 }
0x123b   :  { %1961 = vrot.lane.b32.xlu0 %v3687_v23, %s3820_s13 }
0x123e   :  { %v3689_v41 = vpop.eup %3688 }
0x123f   :  { %2064 = vrot.lane.b32.xlu1 %v3689_v41, %s3820_s13 }
0x1299   :  { %v1861_v46 = vpop.permute.xlu1 %1860 }
0x129a   :  { %v1863_v27 = vmul.f32 %v1861_v46, %v1845_v48 }
0x129c   :  { %2069 = vrot.lane.b32.xlu0 %v1863_v27, %s3821_s19 }
0x12ad   :  { %v1962_v60 = vpop.permute.xlu0 %1961 }
0x12ae   :  { %v1964_v7 = vmul.f32 %v1962_v60, %v1946_v49 }
0x12b0   :  { %2267 = vrot.lane.b32.xlu0 %v1964_v7, %s3821_s19  ;;  %2168 = vrot.lane.b32.xlu1 %v1964_v7, %s3822_s21 }
0x12b1   :  { %v2065_v35 = vpop.permute.xlu1 %2064 }
0x12b2   :  { %v4629_v56 = vmul.f32 %v2065_v35, %v2049_v9 }
0x12b4   :  { %2271 = vrot.lane.b32.xlu1 %v4629_v56, %s3822_s21 }
0x130e   :  { %v2070_v55 = vpop.permute.xlu0 %2069 }
0x130f   :  { %3455 = vmatmul.mubr.msk.f32.vlgmr.msra.gmra.mxu1 %vm239_vm3, %v2070_v55 }
0x1310   :  { %3477 = vmatpush3.msra.mxu1 %v4530_v25  ;;  %3492 = vmatprep.mubr.msk.f32.mxu1 %vm3819_vm0, %v3818_v0 }
0x1311   :  { %3478 = vmatprep.subr.mxu1 %v3818_v0 }
0x1312   :  { %3479 = vmatpush3.msra.mxu1 %v4536_v13 }
0x1313   :  { %3480 = vmatprep.subr.mxu1 %v3818_v0 }
0x1314   :  { %3481 = vmatpush3.msra.mxu1 %v4540_v15 }
0x1315   :  { %3482 = vmatprep.subr.mxu1 %v3818_v0 }
0x1316   :  { %3483 = vmatpush3.msra.mxu1 %v4544_v16 }
0x1317   :  { %3484 = vmatprep.subr.mxu1 %v3818_v0 }
0x1318   :  { %3485 = vmatpush3.msra.mxu1 %v4548_v18 }
0x1319   :  { %3486 = vmatprep.subr.mxu1 %v3818_v0 }
0x131a   :  { %3487 = vmatpush3.msra.mxu1 %v4552_v19 }
0x131b   :  { %3488 = vmatprep.subr.mxu1 %v3818_v0 }
0x131c   :  { %3489 = vmatpush3.msra.mxu1 %v4556_v52 }
0x131d   :  { %3490 = vmatprep.subr.mxu1 %v3818_v0 }
0x131e   :  { %3491 = vmatpush3.msra.mxu1 %v4560_v20 }
0x131f   :  { %3514 = vmatprep.subr.mxu1 %v3818_v0 }
0x1322   :  { %v2169_v58 = vpop.permute.xlu1 %2168  ;;  %v2268_v61 = vpop.permute.xlu0 %2267 }
0x1323   :  { %v2171_v63 = vsel %vm239_vm3, %v2070_v55, %v2169_v58 }
0x1324   :  { %3474 = vmatmul.mubr.msk.f32.vlgmr.msra.gmra.mxu0 %vm451_vm4, %v2171_v63 }
0x1325   :  { %3496 = vmatpush3.msra.mxu0 %v4429_v8  ;;  %3511 = vmatprep.mubr.msk.f32.mxu0 %vm3819_vm0, %v3818_v0  ;;  %v232_v8 = vadd.f32 %v4495_v45, %v4068_v54 }
0x1326   :  { %v2272_v24 = vpop.permute.xlu1 %2271  ;;  %3497 = vmatprep.subr.mxu0 %v3818_v0 }
0x1327   :  { %v2274_v2 = vsel %vm239_vm3, %v2268_v61, %v2272_v24  ;;  %3498 = vmatpush3.msra.mxu0 %v4443_v31 }
0x1328   :  { %3493 = vmatmul.mubr.msk.f32.vlgmr.msra.gmra.mxu1 %vm451_vm4, %v2274_v2  ;;  %3499 = vmatprep.subr.mxu0 %v3818_v0 }
0x1329   :  { %3500 = vmatpush3.msra.mxu0 %v4451_v33  ;;  %3515 = vmatpush3.msra.mxu1 %v4530_v25 }
0x132a   :  { %3501 = vmatprep.subr.mxu0 %v3818_v0  ;;  %3516 = vmatprep.subr.mxu1 %v3818_v0 }
0x132b   :  { %3502 = vmatpush3.msra.mxu0 %v4460_v36  ;;  %3517 = vmatpush3.msra.mxu1 %v4536_v13 }
0x132c   :  { %3503 = vmatprep.subr.mxu0 %v3818_v0  ;;  %3518 = vmatprep.subr.mxu1 %v3818_v0 }
0x132d   :  { %3504 = vmatpush3.msra.mxu0 %v4467_v38  ;;  %3519 = vmatpush3.msra.mxu1 %v4540_v15 }
0x132e   :  { %3505 = vmatprep.subr.mxu0 %v3818_v0  ;;  %3520 = vmatprep.subr.mxu1 %v3818_v0 }
0x132f   :  { %3506 = vmatpush3.msra.mxu0 %v4474_v40  ;;  %3521 = vmatpush3.msra.mxu1 %v4544_v16 }
0x1330   :  { %3507 = vmatprep.subr.mxu0 %v3818_v0  ;;  %3522 = vmatprep.subr.mxu1 %v3818_v0 }
0x1331   :  { %3508 = vmatpush3.msra.mxu0 %v4481_v42  ;;  %3523 = vmatpush3.msra.mxu1 %v4548_v18 }
0x1332   :  { %3509 = vmatprep.subr.mxu0 %v3818_v0  ;;  %3524 = vmatprep.subr.mxu1 %v3818_v0 }
0x1333   :  { %3510 = vmatpush3.msra.mxu0 %v4488_v44  ;;  %3525 = vmatpush3.msra.mxu1 %v4552_v19 }
0x1334   :  { %3526 = vmatprep.subr.mxu1 %v3818_v0  ;;  %3530 = vmatprep.mubr.msk.f32.mxu1 %vm3819_vm0, %v3818_v0 }
0x1335   :  { %3527 = vmatpush3.msra.mxu1 %v4556_v52  ;;  %3533 = vmatprep.subr.mxu0 %v3818_v0 }
0x1336   :  { %3528 = vmatprep.subr.mxu1 %v3818_v0 }
0x1337   :  { %3529 = vmatpush3.msra.mxu1 %v4560_v20 }
0x13cf   :  { %v2139_v31 = vpop.f32.mrf.mxu1 }
0x13d0   :  { %v2143_v33 = vadd.f32 %v2139_v31, %v232_v8 }
0x13d1   :  { %v3456_v36 = vpop.f32.mrf.mxu1 }
0x13d2   :  { %3690 = vtanh.f32 %v2143_v33  ;;  %v2144_v5 = vmul.f32 0.5, %v2143_v33 }
0x13df   :  { %v3691_v38 = vpop.eup %3690 }
0x13e0   :  { %2151 = vrot.lane.b32.xlu0 %v3691_v38, %s3820_s13 }
0x13e4   :  { %v2241_v40 = vpop.f32.mrf.mxu0 }
0x13e5   :  { %v2242_v42 = vadd.f32 %v4602_v47, %v2241_v40 }
0x13e6   :  { %v3475_v44 = vpop.f32.mrf.mxu0 }
0x13e7   :  { %3692 = vtanh.f32 %v2242_v42  ;;  %v2245_v29 = vmul.f32 0.5, %v2242_v42 }
0x13e8   :  { %v2344_v4 = vpop.f32.mrf.mxu1 }
0x13e9   :  { %v2345_v54 = vadd.f32 %v4698_v43, %v2344_v4 }
0x13ea   :  { %v3494_v45 = vpop.f32.mrf.mxu1 }
0x13eb   :  { %3694 = vtanh.f32 %v2345_v54  ;;  %v2348_v49 = vmul.f32 0.5, %v2345_v54 }
0x13ec   :  { %3696 = vtanh.f32 %v2144_v5 }
0x13ed   :  { %3698 = vtanh.f32 %v2245_v29 }
0x13ee   :  { %3700 = vtanh.f32 %v2348_v49 }
0x13f4   :  { %v3693_v6 = vpop.eup %3692 }
0x13f5   :  { %2252 = vrot.lane.b32.xlu1 %v3693_v6, %s3820_s13 }
0x13f8   :  { %v3695_v48 = vpop.eup %3694 }
0x13f9   :  { %2355 = vrot.lane.b32.xlu0 %v3695_v48, %s3820_s13  ;;  %v3697_v26 = vpop.eup %3696 }
0x13fa   :  { %v2146_v1 = vmul.f32 0.5, %v3697_v26  ;;  %v3699_v50 = vpop.eup %3698 }
0x13fb   :  { %v2247_v9 = vmul.f32 0.5, %v3699_v50  ;;  %v3701_v11 = vpop.eup %3700 }
0x13fc   :  { %v2147_v32 = vadd.f32 0.5, %v2146_v1  ;;  %v2350_v12 = vmul.f32 0.5, %v3701_v11 }
0x13fd   :  { %v2248_v62 = vadd.f32 0.5, %v2247_v9 }
0x13fe   :  { %v2351_v57 = vadd.f32 0.5, %v2350_v12  ;;  %v2149_v39 = vmul.f32 %v2147_v32, %v4612_v22 }
0x13ff   :  { %v2250_v27 = vmul.f32 %v2248_v62, %v4617_v28 }
0x1400   :  { %v2353_v35 = vmul.f32 %v2351_v57, %v4621_v10 }
0x1452   :  { %v2152_v17 = vpop.permute.xlu0 %2151 }
0x1453   :  { %v2154_v53 = vmul.f32 %v2152_v17, %v2147_v32 }
0x1455   :  { %2156 = vrot.lane.b32.xlu1 %v2154_v53, %s3820_s13 }
0x1467   :  { %v2253_v21 = vpop.permute.xlu1 %2252 }
0x1468   :  { %v2255_v30 = vmul.f32 %v2253_v21, %v2248_v62 }
0x146a   :  { %2257 = vrot.lane.b32.xlu0 %v2255_v30, %s3820_s13 }
0x146b   :  { %v2356_v34 = vpop.permute.xlu0 %2355 }
0x146c   :  { %v2358_v37 = vmul.f32 %v2356_v34, %v2351_v57 }
0x146e   :  { %2360 = vrot.lane.b32.xlu1 %v2358_v37, %s3820_s13 }
0x14c7   :  { %v2157_v23 = vpop.permute.xlu1 %2156 }
0x14c8   :  { %v4707_v41 = vadd.f32 %v2157_v23, %v2149_v39 }
0x14ca   :  { %3702 = vtanh.f32 %v4707_v41 }
0x14d7   :  { %v3703_v46 = vpop.eup %3702 }
0x14d8   :  { %2162 = vrot.lane.b32.xlu0 %v3703_v46, %s3820_s13 }
0x14dc   :  { %v2258_v60 = vpop.permute.xlu0 %2257 }
0x14dd   :  { %v4712_v7 = vadd.f32 %v2258_v60, %v2250_v27 }
0x14df   :  { %3704 = vtanh.f32 %v4712_v7 }
0x14e0   :  { %v2361_v55 = vpop.permute.xlu1 %2360 }
0x14e1   :  { %v4716_v58 = vadd.f32 %v2361_v55, %v2353_v35 }
0x14e3   :  { %3706 = vtanh.f32 %v4716_v58 }
0x14ec   :  { %v3705_v22 = vpop.eup %3704 }
0x14ed   :  { %2263 = vrot.lane.b32.xlu1 %v3705_v22, %s3820_s13 }
0x14f0   :  { %v3707_v63 = vpop.eup %3706 }
0x14f1   :  { %2366 = vrot.lane.b32.xlu0 %v3707_v63, %s3820_s13 }
0x154a   :  { %v2163_v61 = vpop.permute.xlu0 %2162 }
0x154b   :  { %v2165_v28 = vmul.f32 %v2163_v61, %v2147_v32  ;;  %v2709_v61 = vld [vmem:[#allocation6 + $0x10] sm:$0xff] }
0x154d   :  { %2371 = vrot.lane.b32.xlu1 %v2165_v28, %s3821_s19 }
0x155f   :  { %v2264_v24 = vpop.permute.xlu1 %2263 }
0x1560   :  { %v2266_v2 = vmul.f32 %v2264_v24, %v2248_v62 }
0x1562   :  { %2474 = vrot.lane.b32.xlu1 %v2266_v2, %s3821_s19  ;;  %2375 = vrot.lane.b32.xlu0 %v2266_v2, %s3822_s21 }
0x1563   :  { %v2367_v10 = vpop.permute.xlu0 %2366 }
0x1564   :  { %v4724_v8 = vmul.f32 %v2367_v10, %v2351_v57 }
0x1566   :  { %2478 = vrot.lane.b32.xlu0 %v4724_v8, %s3822_s21 }
0x15bf   :  { %v2372_v31 = vpop.permute.xlu1 %2371 }
0x15c0   :  { %2681 = vst.msk [vmem:[%s4859_s11] sm:$0xff] %vm239_vm3, %v2372_v31 }
0x15d4   :  { %v2376_v33 = vpop.permute.xlu0 %2375  ;;  %v2475_v38 = vpop.permute.xlu1 %2474 }
0x15d5   :  { %v2378_v36 = vsel %vm239_vm3, %v2372_v31, %v2376_v33 }
0x15d6   :  { %3512 = vmatmul.mubr.msk.f32.vlgmr.msra.gmra.mxu0 %vm451_vm4, %v2378_v36 }
0x15d7   :  { %3534 = vmatpush3.msra.mxu0 %v4530_v25  ;;  %3549 = vmatprep.mubr.msk.f32.mxu0 %vm3819_vm0, %v3818_v0 }
0x15d8   :  { %v2479_v40 = vpop.permute.xlu0 %2478  ;;  %3535 = vmatprep.subr.mxu0 %v3818_v0 }
0x15d9   :  { %v2481_v42 = vsel %vm239_vm3, %v2475_v38, %v2479_v40  ;;  %3536 = vmatpush3.msra.mxu0 %v4536_v13 }
0x15da   :  { %3531 = vmatmul.mubr.msk.f32.vlgmr.msra.gmra.mxu1 %vm451_vm4, %v2481_v42  ;;  %3537 = vmatprep.subr.mxu0 %v3818_v0 }
0x15db   :  { %3538 = vmatpush3.msra.mxu0 %v4540_v15 }
0x15dc   :  { %3539 = vmatprep.subr.mxu0 %v3818_v0 }
0x15dd   :  { %3540 = vmatpush3.msra.mxu0 %v4544_v16 }
0x15de   :  { %3541 = vmatprep.subr.mxu0 %v3818_v0 }
0x15df   :  { %3542 = vmatpush3.msra.mxu0 %v4548_v18 }
0x15e0   :  { %3543 = vmatprep.subr.mxu0 %v3818_v0 }
0x15e1   :  { %3544 = vmatpush3.msra.mxu0 %v4552_v19 }
0x15e2   :  { %3545 = vmatprep.subr.mxu0 %v3818_v0 }
0x15e3   :  { %3546 = vmatpush3.msra.mxu0 %v4556_v52 }
0x15e4   :  { %3547 = vmatprep.subr.mxu0 %v3818_v0 }
0x15e5   :  { %3548 = vmatpush3.msra.mxu0 %v4560_v20 }
0x1696   :  { %v2448_v25 = vpop.f32.mrf.mxu0 }
0x1697   :  { %v2449_v13 = vadd.f32 %v4602_v47, %v2448_v25 }
0x1698   :  { %v3513_v15 = vpop.f32.mrf.mxu0 }
0x1699   :  { %3708 = vtanh.f32 %v2449_v13  ;;  %v2452_v52 = vmul.f32 0.5, %v2449_v13  ;;  %v2914_v15 = vld [vmem:[%s4857_s9] ss:$0 sm:$0xff] }
0x169a   :  { %v2551_v16 = vpop.f32.mrf.mxu1 }
0x169b   :  { %v2552_v18 = vadd.f32 %v4698_v43, %v2551_v16 }
0x169c   :  { %v3532_v44 = vpop.f32.mrf.mxu1 }
0x169d   :  { %3710 = vtanh.f32 %v2552_v18  ;;  %v2555_v0 = vmul.f32 0.5, %v2552_v18 }
0x169e   :  { %3712 = vtanh.f32 %v2452_v52 }
0x169f   :  { %3714 = vtanh.f32 %v2555_v0 }
0x16a6   :  { %v3709_v4 = vpop.eup %3708 }
0x16a7   :  { %2459 = vrot.lane.b32.xlu1 %v3709_v4, %s3820_s13 }
0x16aa   :  { %v3711_v19 = vpop.eup %3710 }
0x16ab   :  { %2562 = vrot.lane.b32.xlu0 %v3711_v19, %s3820_s13  ;;  %v3713_v20 = vpop.eup %3712 }
0x16ac   :  { %v2454_v54 = vmul.f32 0.5, %v3713_v20  ;;  %v3715_v47 = vpop.eup %3714 }
0x16ad   :  { %v2557_v6 = vmul.f32 0.5, %v3715_v47 }
0x16ae   :  { %v2455_v45 = vadd.f32 0.5, %v2454_v54 }
0x16af   :  { %v2558_v26 = vadd.f32 0.5, %v2557_v6 }
0x16b0   :  { %v2457_v32 = vmul.f32 %v2455_v45, %v4712_v7 }
0x16b1   :  { %v2560_v53 = vmul.f32 %v2558_v26, %v4716_v58 }
0x1719   :  { %v2460_v48 = vpop.permute.xlu1 %2459 }
0x171a   :  { %v2462_v5 = vmul.f32 %v2460_v48, %v2455_v45 }
0x171c   :  { %2464 = vrot.lane.b32.xlu1 %v2462_v5, %s3820_s13 }
0x171d   :  { %v2563_v1 = vpop.permute.xlu0 %2562 }
0x171e   :  { %v2565_v29 = vmul.f32 %v2563_v1, %v2558_v26 }
0x1720   :  { %2567 = vrot.lane.b32.xlu0 %v2565_v29, %s3820_s13 }
0x178e   :  { %v2465_v49 = vpop.permute.xlu1 %2464 }
0x178f   :  { %v4760_v17 = vadd.f32 %v2465_v49, %v2457_v32 }
0x1791   :  { %3716 = vtanh.f32 %v4760_v17 }
0x1792   :  { %v2568_v50 = vpop.permute.xlu0 %2567 }
0x1793   :  { %v2570_v9 = vadd.f32 %v2568_v50, %v2560_v53 }
0x1795   :  { %3718 = vtanh.f32 %v2570_v9 }
0x179e   :  { %v3717_v11 = vpop.eup %3716 }
0x179f   :  { %2470 = vrot.lane.b32.xlu1 %v3717_v11, %s3820_s13 }
0x17a2   :  { %v3719_v62 = vpop.eup %3718 }
0x17a3   :  { %2573 = vrot.lane.b32.xlu0 %v3719_v62, %s3820_s13 }
0x1811   :  { %v2471_v12 = vpop.permute.xlu1 %2470 }
0x1812   :  { %v2473_v21 = vmul.f32 %v2471_v12, %v2455_v45 }
0x1814   :  { %2578 = vrot.lane.b32.xlu1 %v2473_v21, %s3821_s19 }
0x1815   :  { %v2574_v30 = vpop.permute.xlu0 %2573 }
0x1816   :  { %v2576_v57 = vmul.f32 %v2574_v30, %v2558_v26 }
0x1818   :  { %2582 = vrot.lane.b32.xlu0 %v2576_v57, %s3822_s21 }
0x1886   :  { %v2579_v34 = vpop.permute.xlu1 %2578 }
0x1887   :  { %2910 = vst.msk [vmem:[%s4859_s11 + $0x8] sm:$0xff] %vm239_vm3, %v2579_v34 }
0x188a   :  { %v2583_v37 = vpop.permute.xlu0 %2582 }
0x188b   :  { %v2585_v39 = vsel %vm239_vm3, %v2579_v34, %v2583_v37 }
0x188c   :  { %3550 = vmatmul.mubr.msk.f32.vlgmr.msra.gmra.mxu0 %vm451_vm4, %v2585_v39 }
0x194c   :  { %v2655_v23 = vpop.f32.mrf.mxu0 }
0x194d   :  { %v2656_v46 = vadd.f32 %v4698_v43, %v2655_v23  ;;  %v2710_v43 = vld [vmem:[#allocation6 + $0x18] sm:$0xff] }
0x194e   :  { %v3551_v27 = vpop.f32.mrf.mxu0  ;;  %3552 = vmatprep.subr.mxu1 %v2710_v43 }
0x194f   :  { %3720 = vtanh.f32 %v2656_v46  ;;  %v2659_v7 = vmul.f32 0.5, %v2656_v46  ;;  %3553 = vmatpush3.msra.mxu1 %v2710_v43 }
0x1950   :  { %3554 = vmatprep.subr.mxu1 %v2709_v61 }
0x1951   :  { %3722 = vtanh.f32 %v2659_v7  ;;  %3555 = vmatpush3.msra.mxu1 %v2709_v61 }
0x195c   :  { %v3721_v60 = vpop.eup %3720 }
0x195d   :  { %2666 = vrot.lane.b32.xlu1 %v3721_v60, %s3820_s13 }
0x195e   :  { %v3723_v35 = vpop.eup %3722 }
0x195f   :  { %v2661_v55 = vmul.f32 0.5, %v3723_v35 }
0x1961   :  { %v2662_v58 = vadd.f32 0.5, %v2661_v55 }
0x1963   :  { %v2664_v28 = vmul.f32 %v2662_v58, %v2570_v9 }
0x19cf   :  { %v2667_v22 = vpop.permute.xlu1 %2666 }
0x19d0   :  { %v2669_v63 = vmul.f32 %v2667_v22, %v2662_v58 }
0x19d2   :  { %2671 = vrot.lane.b32.xlu0 %v2669_v63, %s3820_s13 }
0x19d6   :  { %2718 = vrot.lane.b32.xlu0 %v4211_v14, %s3821_s19 }
0x19da   :  { %2722 = vrot.lane.b32.xlu0 %v4377_v3, %s3821_s19  ;;  %v2708_v3 = vld [vmem:[#allocation6 + $0x8] sm:$0xff] }
0x19db   :  { %3556 = vmatprep.subr.mxu1 %v2708_v3 }
0x19dc   :  { %3557 = vmatpush3.msra.mxu1 %v2708_v3 }
0x19de   :  { %2726 = vrot.lane.b32.xlu0 %v4629_v56, %s3821_s19  ;;  %v2707_v56 = vld [vmem:[#allocation6] sm:$0xff] }
0x19df   :  { %3558 = vmatprep.subr.mxu1 %v2707_v56 }
0x19e0   :  { %3559 = vmatpush3.msra.mxu1 %v2707_v56 }
0x19e2   :  { %2730 = vrot.lane.b32.xlu0 %v2576_v57, %s3821_s19 }
0x19e6   :  { %2683 = vrot.lane.b32.xlu0 %v4707_v41, %s3822_s21 }
0x1a44   :  { %v2672_v24 = vpop.permute.xlu0 %2671 }
0x1a45   :  { %v2674_v14 = vadd.f32 %v2672_v24, %v2664_v28 }
0x1a47   :  { %3724 = vtanh.f32 %v2674_v14  ;;  %2702 = vrot.lane.b32.xlu0 %v2674_v14, %s3822_s21 }
0x1a48   :  { %v2719_v2 = vpop.permute.xlu0 %2718 }
0x1a49   :  { %3560 = vmatprep.mubr.msk.f32.mxu1 %vm239_vm3, %v2719_v2 }
0x1a4c   :  { %v2723_v41 = vpop.permute.xlu0 %2722 }
0x1a50   :  { %v2727_v10 = vpop.permute.xlu0 %2726 }
0x1a54   :  { %v3725_v31 = vpop.eup %3724  ;;  %v2731_v33 = vpop.permute.xlu0 %2730 }
0x1a55   :  { %2677 = vrot.lane.b32.xlu1 %v3725_v31, %s3820_s13 }
0x1a58   :  { %v2684_v36 = vpop.permute.xlu0 %2683 }
0x1a59   :  { %2686 = vst.msk [vmem:[%s4860_s12] sm:$0xff] %vm239_vm3, %v2684_v36  ;;  %2720 = vrot.lane.b32.xlu1 %v4294_v59, %s3821_s19 }
0x1a5d   :  { %2724 = vrot.lane.b32.xlu1 %v4525_v51, %s3821_s19 }
0x1a61   :  { %2728 = vrot.lane.b32.xlu1 %v4724_v8, %s3821_s19 }
0x1ab9   :  { %v2703_v38 = vpop.permute.xlu0 %2702 }
0x1aba   :  { %2913 = vst.msk [vmem:[%s4860_s12 + $0x10] sm:$0xff] %vm239_vm3, %v2703_v38 }
0x1ac7   :  { %v2678_v40 = vpop.permute.xlu1 %2677 }
0x1ac8   :  { %v2680_v42 = vmul.f32 %v2678_v40, %v2662_v58 }
0x1aca   :  { %2696 = vrot.lane.b32.xlu1 %v2680_v42, %s3821_s19 }
0x1acb   :  { %v2721_v25 = vpop.permute.xlu1 %2720 }
0x1acc   :  { %3561 = vmatmul.mubr.msk.f32.vlgmr.msra.gmra.mxu1 %vm239_vm3, %v2721_v25 }
0x1acd   :  { %3563 = vmatprep.mubr.msk.f32.mxu1 %vm239_vm3, %v2723_v41 }
0x1ace   :  { %2690 = vrot.lane.b32.xlu1 %v4760_v17, %s3822_s21 }
0x1acf   :  { %v2725_v59 = vpop.permute.xlu1 %2724 }
0x1ad0   :  { %3564 = vmatmul.mubr.msk.f32.gmra.mxu1 %vm239_vm3, %v2725_v59 }
0x1ad1   :  { %3566 = vmatprep.mubr.msk.f32.mxu1 %vm239_vm3, %v2727_v10 }
0x1ad3   :  { %v2729_v51 = vpop.permute.xlu1 %2728 }
0x1ad4   :  { %3567 = vmatmul.mubr.msk.f32.gmra.mxu1 %vm239_vm3, %v2729_v51 }
0x1ad5   :  { %3569 = vmatprep.mubr.msk.f32.mxu1 %vm239_vm3, %v2731_v33 }
0x1b3c   :  { %v2697_v8 = vpop.permute.xlu1 %2696 }
0x1b3d   :  { %2912 = vst.msk [vmem:[%s4859_s11 + $0x10] sm:$0xff] %vm239_vm3, %v2697_v8  ;;  %3570 = vmatmul.mubr.msk.f32.gmra.mxu1 %vm239_vm3, %v2697_v8 }
0x1b40   :  { %v2691_v13 = vpop.permute.xlu1 %2690 }
0x1b41   :  { %2911 = vst.msk [vmem:[%s4860_s12 + $0x8] sm:$0xff] %vm239_vm3, %v2691_v13 }
0x1b8c   :  { %v3562_v16 = vpop.f32.mrf.mxu1 }
0x1b8d   :  { %v2820_v18 = vadd.f32 %v3562_v16, %v2914_v15 }
0x1b8e   :  { %v2814_v44 = vpop.f32.mrf.mxu1 }
0x1b8f   :  { %2854 = vst [vmem:[%s4858_s10 + $0x8] sm:$0xff] %v2820_v18  ;;  %v2815_v4 = vadd.f32 %v2914_v15, %v2814_v44 }
0x1b90   :  { %v3565_v19 = vpop.f32.mrf.mxu1 }
0x1b91   :  { %2853 = vst [vmem:[%s4858_s10] sm:$0xff] %v2815_v4  ;;  %v2830_v52 = vadd.f32 %v3565_v19, %v2914_v15 }
0x1b92   :  { %v2824_v0 = vpop.f32.mrf.mxu1 }
0x1b93   :  { %2856 = vst [vmem:[%s4858_s10 + $0x18] sm:$0xff] %v2830_v52  ;;  %v2825_v20 = vadd.f32 %v2914_v15, %v2824_v0 }
0x1b94   :  { %v3568_v54 = vpop.f32.mrf.mxu1 }
0x1b95   :  { %2855 = vst [vmem:[%s4858_s10 + $0x10] sm:$0xff] %v2825_v20  ;;  %v2840_v47 = vadd.f32 %v3568_v54, %v2914_v15 }
0x1b96   :  { %v2834_v45 = vpop.f32.mrf.mxu1 }
0x1b97   :  { %2858 = vst [vmem:[%s4858_s10 + $0x28] sm:$0xff] %v2840_v47  ;;  %v2835_v6 = vadd.f32 %v2914_v15, %v2834_v45 }
0x1b99   :  { %2857 = vst [vmem:[%s4858_s10 + $0x20] sm:$0xff] %v2835_v6 }
0x1bfd   :  { %v3571_v48 = vpop.f32.mrf.mxu1 }
0x1bfe   :  { %v2850_v5 = vadd.f32 %v3571_v48, %v2914_v15 }
0x1bff   :  { %v2844_v26 = vpop.f32.mrf.mxu1 }
0x1c00   :  { %2860 = vst [vmem:[%s4858_s10 + $0x38] sm:$0xff] %v2850_v5  ;;  %v2845_v1 = vadd.f32 %v2914_v15, %v2844_v26 }
0x1c02   :  { %2859 = vst [vmem:[%s4858_s10 + $0x30] sm:$0xff] %v2845_v1 }
0x1c03   :  { %2873 = vsyncpa [#allocation3], 1 }
0x1c04   :  { %2874 = vsyncpa [#allocation5], 1 }

</bundles_post_ra>
